<compile_context>
chip_gen: v7x
topology: tpu7x:2x2x1
jax: 0.10.0
libtpu: 0.0.40
codegen_flags: <defaults>
</compile_context>

<pallas_src>
import jax
import jax.numpy as jnp
import numpy as np
from jax.experimental import pallas as pl
from jax.experimental.pallas import tpu as pltpu

BN_EPS = 1e-5
VMEM_SPEC = pl.BlockSpec(memory_space=pltpu.MemorySpace.VMEM)


# ----------------------------------------------------------------------------
# Fused kernel: conv(1x1)+BN+ReLU x3 -> max over points -> FC+BN+ReLU x2 ->
# fc3 (+ identity folded into bias).
# ----------------------------------------------------------------------------
def _make_stn3d_kernel(batch, n_points):
    def kernel(x_ref,
               w1_ref, a1_ref, w2_ref, a2_ref, w3_ref, a3_ref,
               w4_ref, a4_ref, w5_ref, a5_ref,
               w6_ref, b6_ref,
               out_ref):
        def affine_relu(z, w_ref, a_ref):
            # matmul + folded (BN, bias) per-channel affine + ReLU
            z = jnp.dot(z, w_ref[...], preferred_element_type=jnp.float32)
            return jnp.maximum(z * a_ref[0:1, :] + a_ref[1:2, :], 0.0)

        # Pointwise-conv stack on the channels-last flattened (B*N, C) matrix.
        z = x_ref[...]                            # (B*N, 3)
        z = affine_relu(z, w1_ref, a1_ref)        # (B*N, 64)
        z = affine_relu(z, w2_ref, a2_ref)        # (B*N, 128)
        z = affine_relu(z, w3_ref, a3_ref)        # (B*N, 1024)

        # Global max-pool over each batch element's points.  Static,
        # sublane-aligned slices (n_points % 8 == 0) keep this 2D throughout.
        pooled = jnp.concatenate(
            [jnp.max(z[b * n_points:(b + 1) * n_points, :],
                     axis=0, keepdims=True)
             for b in range(batch)],
            axis=0)                               # (B, 1024)

        # FC stack.
        z = affine_relu(pooled, w4_ref, a4_ref)   # (B, 512)
        z = affine_relu(z, w5_ref, a5_ref)        # (B, 256)

        # fc3; the 3x3 identity is pre-folded into b6 by the wrapper.
        out_ref[...] = (jnp.dot(z, w6_ref[...],
                                preferred_element_type=jnp.float32)
                        + b6_ref[...])            # (B, 9)
    return kernel


def stn3d_forward(x, params):
    b, c, n = x.shape
    assert c == 3 and n % 8 == 0
    # Channels-last flatten; layout plumbing only (kernel-size-1 convs).
    x2d = jnp.transpose(x, (0, 2, 1)).reshape(b * n, c)
    out9 = pl.pallas_call(
        _make_stn3d_kernel(b, n),
        out_shape=jax.ShapeDtypeStruct((b, 9), jnp.float32),
        in_specs=[VMEM_SPEC] * 13,
        out_specs=VMEM_SPEC,
    )(x2d,
      params["w1_t"], params["a1"], params["w2_t"], params["a2"],
      params["w3_t"], params["a3"], params["w4_t"], params["a4"],
      params["w5_t"], params["a5"], params["w6_t"], params["b6"])
    return out9.reshape(b, 3, 3)


# ----------------------------------------------------------------------------
# Parameter construction (deterministic, synthetic) + BN folding.
# ----------------------------------------------------------------------------
def fold_bn(bias, gamma, beta, mean, var, eps=BN_EPS):
    scale = gamma / jnp.sqrt(var + eps)
    shift = (bias - mean) * scale + beta
    return jnp.stack([scale, shift], axis=0)      # (2, C_out)


def make_params(key):
    # conv1..3 then fc1..2 (each followed by a BatchNorm), finally fc3.
    layer_dims = [(3, 64), (64, 128), (128, 1024), (1024, 512), (512, 256)]
    keys = jax.random.split(key, 6 * len(layer_dims) + 2)
    ki = iter(keys)

    def u(shape, s):
        return jax.random.uniform(next(ki), shape, jnp.float32, -s, s)

    raw, kp = {}, {}
    for idx, (cin, cout) in enumerate(layer_dims, start=1):
        s = 1.0 / float(np.sqrt(cin))
        w = u((cout, cin), s)                     # PyTorch layout (C_out, C_in)
        bias = u((cout,), s)
        gamma = 1.0 + u((cout,), 0.1)
        beta = u((cout,), 0.1)
        mean = u((cout,), 0.1)
        var = 1.0 + u((cout,), 0.1)
        raw[f"l{idx}"] = (w, bias, gamma, beta, mean, var)
        kp[f"w{idx}_t"] = w.T                     # (C_in, C_out) for x @ W
        kp[f"a{idx}"] = fold_bn(bias, gamma, beta, mean, var)

    s = 1.0 / float(np.sqrt(256))
    w6 = u((9, 256), s)
    b6 = u((9,), s)
    raw["l6"] = (w6, b6)
    iden = jnp.array([1, 0, 0, 0, 1, 0, 0, 0, 1], jnp.float32)
    kp["w6_t"] = w6.T                             # (256, 9)
    kp["b6"] = (b6 + iden).reshape(1, 9)          # identity folded into bias
    return kp, raw


# ----------------------------------------------------------------------------
# Pure-JAX reference (mirrors the PyTorch forward) for a numeric check.
# ----------------------------------------------------------------------------
def stn3d_reference(x, raw):
    def bn(z, g, bt, m, v):
        return g * (z - m) / jnp.sqrt(v + BN_EPS) + bt

    b = x.shape[0]
    z = x                                          # (B, 3, N)
    for idx in (1, 2, 3):
        w, bias, g, bt, m, v = raw[f"l{idx}"]
        z = jnp.einsum("oc,bcn->bon", w, z) + bias[None, :, None]
        z = jnp.maximum(bn(z, g[None, :, None], bt[None, :, None],
                           m[None, :, None], v[None, :, None]), 0.0)
    z = jnp.max(z, axis=2)                         # (B, 1024)
    for idx in (4, 5):
        w, bias, g, bt, m, v = raw[f"l{idx}"]
        z = z @ w.T + bias
        z = jnp.maximum(bn(z, g, bt, m, v), 0.0)
    w6, b6 = raw["l6"]
    z = z @ w6.T + b6
    iden = jnp.array([1, 0, 0, 0, 1, 0, 0, 0, 1], jnp.float32)
    return (z + iden[None, :]).reshape(b, 3, 3)


if __name__ == "__main__":
    key = jax.random.PRNGKey(0)
    k_x, k_p = jax.random.split(key)

    B, N = 2, 16                                   # (batch, points)
    x = jax.random.normal(k_x, (B, 3, N), jnp.float32)
    params, raw = make_params(k_p)

    out = jax.block_until_ready(jax.jit(stn3d_forward)(x, params))
    ref = stn3d_reference(x, raw)

    assert out.shape == (B, 3, 3)
    assert bool(jnp.all(jnp.isfinite(out)))
    assert bool(jnp.allclose(out, ref, atol=2e-2, rtol=2e-2)), (
        "kernel output does not match JAX reference")

    print("KERNEL_OK")
</pallas_src>

<mosaic_0001>
module attributes {stable_mosaic.version = 11 : i64} {
  func.func @kernel(%arg0: memref<32x3xf32, #tpu.memory_space<vmem>>, %arg1: memref<3x64xf32, #tpu.memory_space<vmem>>, %arg2: memref<2x64xf32, #tpu.memory_space<vmem>>, %arg3: memref<64x128xf32, #tpu.memory_space<vmem>>, %arg4: memref<2x128xf32, #tpu.memory_space<vmem>>, %arg5: memref<128x1024xf32, #tpu.memory_space<vmem>>, %arg6: memref<2x1024xf32, #tpu.memory_space<vmem>>, %arg7: memref<1024x512xf32, #tpu.memory_space<vmem>>, %arg8: memref<2x512xf32, #tpu.memory_space<vmem>>, %arg9: memref<512x256xf32, #tpu.memory_space<vmem>>, %arg10: memref<2x256xf32, #tpu.memory_space<vmem>>, %arg11: memref<256x9xf32, #tpu.memory_space<vmem>>, %arg12: memref<1x9xf32, #tpu.memory_space<vmem>>, %arg13: memref<2x9xf32, #tpu.memory_space<vmem>>) attributes {dimension_semantics = [], scalar_prefetch = 0 : i64, scratch_operands = 0 : i64, tpu.core_type = #tpu.core_type<tc>} {
    %c0 = arith.constant 0 : index
    %c0_0 = arith.constant 0 : index
    %0 = vector.load %arg0[%c0, %c0_0] : memref<32x3xf32, #tpu.memory_space<vmem>>, vector<32x3xf32>
    %c0_1 = arith.constant 0 : index
    %c0_2 = arith.constant 0 : index
    %1 = vector.load %arg1[%c0_1, %c0_2] : memref<3x64xf32, #tpu.memory_space<vmem>>, vector<3x64xf32>
    %cst = arith.constant dense<0.000000e+00> : vector<32x64xf32>
    %2 = tpu.matmul %0, %1, %cst {dimension_numbers = #tpu.dot_dimension_numbers<[1], [0], [0], [1], [0, 0, 1, 1], [], []>} : vector<32x3xf32>, vector<3x64xf32>, vector<32x64xf32> -> vector<32x64xf32>
    %c0_3 = arith.constant 0 : index
    %c0_4 = arith.constant 0 : index
    %3 = vector.load %arg2[%c0_3, %c0_4] : memref<2x64xf32, #tpu.memory_space<vmem>>, vector<1x64xf32>
    %4 = vector.broadcast %3 : vector<1x64xf32> to vector<32x64xf32>
    %5 = arith.mulf %2, %4 : vector<32x64xf32>
    %c1 = arith.constant 1 : index
    %c0_5 = arith.constant 0 : index
    %6 = vector.load %arg2[%c1, %c0_5] : memref<2x64xf32, #tpu.memory_space<vmem>>, vector<1x64xf32>
    %7 = vector.broadcast %6 : vector<1x64xf32> to vector<32x64xf32>
    %8 = arith.addf %5, %7 : vector<32x64xf32>
    %cst_6 = arith.constant 0.000000e+00 : f32
    %9 = vector.broadcast %cst_6 : f32 to vector<32x64xf32>
    %10 = arith.maximumf %8, %9 : vector<32x64xf32>
    %c0_7 = arith.constant 0 : index
    %c0_8 = arith.constant 0 : index
    %11 = vector.load %arg3[%c0_7, %c0_8] : memref<64x128xf32, #tpu.memory_space<vmem>>, vector<64x128xf32>
    %cst_9 = arith.constant dense<0.000000e+00> : vector<32x128xf32>
    %12 = tpu.matmul %10, %11, %cst_9 {dimension_numbers = #tpu.dot_dimension_numbers<[1], [0], [0], [1], [0, 0, 1, 1], [], []>} : vector<32x64xf32>, vector<64x128xf32>, vector<32x128xf32> -> vector<32x128xf32>
    %c0_10 = arith.constant 0 : index
    %c0_11 = arith.constant 0 : index
    %13 = vector.load %arg4[%c0_10, %c0_11] : memref<2x128xf32, #tpu.memory_space<vmem>>, vector<1x128xf32>
    %14 = vector.broadcast %13 : vector<1x128xf32> to vector<32x128xf32>
    %15 = arith.mulf %12, %14 : vector<32x128xf32>
    %c1_12 = arith.constant 1 : index
    %c0_13 = arith.constant 0 : index
    %16 = vector.load %arg4[%c1_12, %c0_13] : memref<2x128xf32, #tpu.memory_space<vmem>>, vector<1x128xf32>
    %17 = vector.broadcast %16 : vector<1x128xf32> to vector<32x128xf32>
    %18 = arith.addf %15, %17 : vector<32x128xf32>
    %cst_14 = arith.constant 0.000000e+00 : f32
    %19 = vector.broadcast %cst_14 : f32 to vector<32x128xf32>
    %20 = arith.maximumf %18, %19 : vector<32x128xf32>
    %c0_15 = arith.constant 0 : index
    %c0_16 = arith.constant 0 : index
    %21 = vector.load %arg5[%c0_15, %c0_16] : memref<128x1024xf32, #tpu.memory_space<vmem>>, vector<128x1024xf32>
    %cst_17 = arith.constant dense<0.000000e+00> : vector<32x1024xf32>
    %22 = tpu.matmul %20, %21, %cst_17 {dimension_numbers = #tpu.dot_dimension_numbers<[1], [0], [0], [1], [0, 0, 1, 1], [], []>} : vector<32x128xf32>, vector<128x1024xf32>, vector<32x1024xf32> -> vector<32x1024xf32>
    %c0_18 = arith.constant 0 : index
    %c0_19 = arith.constant 0 : index
    %23 = vector.load %arg6[%c0_18, %c0_19] : memref<2x1024xf32, #tpu.memory_space<vmem>>, vector<1x1024xf32>
    %24 = vector.broadcast %23 : vector<1x1024xf32> to vector<32x1024xf32>
    %25 = arith.mulf %22, %24 : vector<32x1024xf32>
    %c1_20 = arith.constant 1 : index
    %c0_21 = arith.constant 0 : index
    %26 = vector.load %arg6[%c1_20, %c0_21] : memref<2x1024xf32, #tpu.memory_space<vmem>>, vector<1x1024xf32>
    %27 = vector.broadcast %26 : vector<1x1024xf32> to vector<32x1024xf32>
    %28 = arith.addf %25, %27 : vector<32x1024xf32>
    %cst_22 = arith.constant 0.000000e+00 : f32
    %29 = vector.broadcast %cst_22 : f32 to vector<32x1024xf32>
    %30 = arith.maximumf %28, %29 : vector<32x1024xf32>
    %31 = vector.extract_strided_slice %30 {offsets = [0, 0], sizes = [16, 1024], strides = [1, 1]} : vector<32x1024xf32> to vector<16x1024xf32>
    %cst_23 = arith.constant dense<0xFF800000> : vector<1024xf32>
    %32 = vector.multi_reduction <maximumf>, %31, %cst_23 [0] : vector<16x1024xf32> to vector<1024xf32>
    %33 = vector.shape_cast %32 : vector<1024xf32> to vector<1x1024xf32>
    %34 = vector.extract_strided_slice %30 {offsets = [16, 0], sizes = [16, 1024], strides = [1, 1]} : vector<32x1024xf32> to vector<16x1024xf32>
    %cst_24 = arith.constant dense<0xFF800000> : vector<1024xf32>
    %35 = vector.multi_reduction <maximumf>, %34, %cst_24 [0] : vector<16x1024xf32> to vector<1024xf32>
    %36 = vector.shape_cast %35 : vector<1024xf32> to vector<1x1024xf32>
    %37 = tpu.concatenate %33, %36 in 0 : vector<1x1024xf32>, vector<1x1024xf32> -> vector<2x1024xf32>
    %c0_25 = arith.constant 0 : index
    %c0_26 = arith.constant 0 : index
    %38 = vector.load %arg7[%c0_25, %c0_26] : memref<1024x512xf32, #tpu.memory_space<vmem>>, vector<1024x512xf32>
    %cst_27 = arith.constant dense<0.000000e+00> : vector<2x512xf32>
    %39 = tpu.matmul %37, %38, %cst_27 {dimension_numbers = #tpu.dot_dimension_numbers<[1], [0], [0], [1], [0, 0, 1, 1], [], []>} : vector<2x1024xf32>, vector<1024x512xf32>, vector<2x512xf32> -> vector<2x512xf32>
    %c0_28 = arith.constant 0 : index
    %c0_29 = arith.constant 0 : index
    %40 = vector.load %arg8[%c0_28, %c0_29] : memref<2x512xf32, #tpu.memory_space<vmem>>, vector<1x512xf32>
    %41 = vector.broadcast %40 : vector<1x512xf32> to vector<2x512xf32>
    %42 = arith.mulf %39, %41 : vector<2x512xf32>
    %c1_30 = arith.constant 1 : index
    %c0_31 = arith.constant 0 : index
    %43 = vector.load %arg8[%c1_30, %c0_31] : memref<2x512xf32, #tpu.memory_space<vmem>>, vector<1x512xf32>
    %44 = vector.broadcast %43 : vector<1x512xf32> to vector<2x512xf32>
    %45 = arith.addf %42, %44 : vector<2x512xf32>
    %cst_32 = arith.constant 0.000000e+00 : f32
    %46 = vector.broadcast %cst_32 : f32 to vector<2x512xf32>
    %47 = arith.maximumf %45, %46 : vector<2x512xf32>
    %c0_33 = arith.constant 0 : index
    %c0_34 = arith.constant 0 : index
    %48 = vector.load %arg9[%c0_33, %c0_34] : memref<512x256xf32, #tpu.memory_space<vmem>>, vector<512x256xf32>
    %cst_35 = arith.constant dense<0.000000e+00> : vector<2x256xf32>
    %49 = tpu.matmul %47, %48, %cst_35 {dimension_numbers = #tpu.dot_dimension_numbers<[1], [0], [0], [1], [0, 0, 1, 1], [], []>} : vector<2x512xf32>, vector<512x256xf32>, vector<2x256xf32> -> vector<2x256xf32>
    %c0_36 = arith.constant 0 : index
    %c0_37 = arith.constant 0 : index
    %50 = vector.load %arg10[%c0_36, %c0_37] : memref<2x256xf32, #tpu.memory_space<vmem>>, vector<1x256xf32>
    %51 = vector.broadcast %50 : vector<1x256xf32> to vector<2x256xf32>
    %52 = arith.mulf %49, %51 : vector<2x256xf32>
    %c1_38 = arith.constant 1 : index
    %c0_39 = arith.constant 0 : index
    %53 = vector.load %arg10[%c1_38, %c0_39] : memref<2x256xf32, #tpu.memory_space<vmem>>, vector<1x256xf32>
    %54 = vector.broadcast %53 : vector<1x256xf32> to vector<2x256xf32>
    %55 = arith.addf %52, %54 : vector<2x256xf32>
    %cst_40 = arith.constant 0.000000e+00 : f32
    %56 = vector.broadcast %cst_40 : f32 to vector<2x256xf32>
    %57 = arith.maximumf %55, %56 : vector<2x256xf32>
    %c0_41 = arith.constant 0 : index
    %c0_42 = arith.constant 0 : index
    %58 = vector.load %arg11[%c0_41, %c0_42] : memref<256x9xf32, #tpu.memory_space<vmem>>, vector<256x9xf32>
    %cst_43 = arith.constant dense<0.000000e+00> : vector<2x9xf32>
    %59 = tpu.matmul %57, %58, %cst_43 {dimension_numbers = #tpu.dot_dimension_numbers<[1], [0], [0], [1], [0, 0, 1, 1], [], []>} : vector<2x256xf32>, vector<256x9xf32>, vector<2x9xf32> -> vector<2x9xf32>
    %c0_44 = arith.constant 0 : index
    %c0_45 = arith.constant 0 : index
    %60 = vector.load %arg12[%c0_44, %c0_45] : memref<1x9xf32, #tpu.memory_space<vmem>>, vector<1x9xf32>
    %61 = vector.broadcast %60 : vector<1x9xf32> to vector<2x9xf32>
    %62 = arith.addf %59, %61 : vector<2x9xf32>
    %c0_46 = arith.constant 0 : index
    %c0_47 = arith.constant 0 : index
    %63 = vector.load %arg13[%c0_46, %c0_47] : memref<2x9xf32, #tpu.memory_space<vmem>>, vector<2x9xf32>
    tpu.vector_store %arg13[%c0_46, %c0_47], %62 {strides = array<i32>} : memref<2x9xf32, #tpu.memory_space<vmem>>, vector<2x9xf32>,
    return
  }
}

</mosaic_0001>

<bundles_post_ra>
// kernel: stn3d_forward.1
= control target key start
LH: loop header
LB: loop body
LE: loop exit
PB: predicated region body
PF: predicated region fallthrough
CT: control target
= control target key end

     0   :  { %18 = vsyncpa [#allocation3], 0  ;;  %s4515_s0 = inlined_call_operand.vmem [shape: f32[32,3], index: 0, kind: input, shape index: {}]   ;;  %s4516_s1 = inlined_call_operand.hbm [shape: f32[3,64], index: 1, kind: input, shape index: {}]   ;;  %s4517_s2 = inlined_call_operand.hbm [shape: f32[2,64], index: 2, kind: input, shape index: {}]   ;;  %s4518_s3 = inlined_call_operand.hbm [shape: f32[64,128], index: 3, kind: input, shape index: {}]   ;;  %s4519_s4 = inlined_call_operand.hbm [shape: f32[2,128], index: 4, kind: input, shape index: {}]   ;;  %s4520_s5 = inlined_call_operand.hbm [shape: f32[128,1024], index: 5, kind: input, shape index: {}]   ;;  %s4521_s6 = inlined_call_operand.hbm [shape: f32[2,1024], index: 6, kind: input, shape index: {}]   ;;  %s4522_s7 = inlined_call_operand.hbm [shape: f32[1024,512], index: 7, kind: input, shape index: {}]   ;;  %s4523_s8 = inlined_call_operand.hbm [shape: f32[2,512], index: 8, kind: input, shape index: {}]   ;;  %s4524_s9 = inlined_call_operand.hbm [shape: f32[512,256], index: 9, kind: input, shape index: {}]   ;;  %s4525_s10 = inlined_call_operand.hbm [shape: f32[2,256], index: 10, kind: input, shape index: {}]   ;;  %s4526_s11 = inlined_call_operand.vmem [shape: f32[256,9], index: 11, kind: input, shape index: {}]   ;;  %s4527_s12 = inlined_call_operand.hbm [shape: f32[1,9], index: 12, kind: input, shape index: {}]   ;;  %s4528_s13 = inlined_call_operand.vmem [shape: f32[2,9], index: 13, kind: output, shape index: {}]  }
   0x1   :  { %19 = vsyncpa [#allocation5], 0 }
   0x2   :  { %20 = vsyncpa [#allocation8], 0 }
   0x3   :  { %21 = vsyncpa [#allocation11], 0 }
   0x4   :  { %22 = vsyncpa [#allocation14], 0 }
   0x5   :  { %23 = vsyncpa [#allocation17], 0  ;;  %s3981_s25 = smov [#allocation4]   ;;  %s3982_s27 = smov [#allocation7]  }
   0x6   :  { %s42_s26 = sshll.u32 %s3981_s25, 4  ;;  %s64_s28 = sshll.u32 %s3982_s27, 4  ;;  %s43_s26 = int_to_ptr.vmem [resolvable:$true] %s42_s26  ;;  %s65_s28 = int_to_ptr.vmem [resolvable:$true] %s64_s28 }
   0x7   :  { %s3727_s14 = scalar_lea.hbm %s4517_s2, 32 }
   0x8   :  { %p3728_p0 = scmp.ne.s32.totalorder %s4517_s2, %s3727_s14  ;;  %p3731_p1 = scmp.lt.u32.totalorder %s3727_s14, %s4517_s2 }
   0xa   :  { %p3733_p2 = pnand %p3731_p1, %p3728_p0 }
   0xc   :  { %3736 = shalt.err (!%p3733_p2)
}
   0xd   :  { %s3737_s19 = scalar_lea.vmem %s43_s26, 32  ;;  %p3742_p4 = scmp.lt.s32.totalorder %s43_s26, %s43_s26 }
   0xe   :  { %p3738_p3 = scmp.ne.s32.totalorder %s43_s26, %s3737_s19  ;;  %p3743_p5 = scmp.lt.s32.totalorder %s3737_s19, %s3737_s19 }
  0x10   :  { %p3744_p6 = por %p3743_p5, %p3742_p4 }
  0x12   :  { %p3745_p7 = pnand %p3744_p6, %p3738_p3 }
  0x14   :  { %3748 = shalt.err (!%p3745_p7)
}
  0x15   :  { %45 = dma.hbm_to_vmem [thread:$0]  %s4517_s2, 32, %s43_s26, [#allocation5]  }
  0x16   :  { %s3749_s24 = scalar_lea.hbm %s4519_s4, 32 }
  0x17   :  { %p3750_p8 = scmp.ne.s32.totalorder %s4519_s4, %s3749_s24  ;;  %p3753_p9 = scmp.lt.u32.totalorder %s3749_s24, %s4519_s4 }
  0x19   :  { %p3755_p10 = pnand %p3753_p9, %p3750_p8 }
  0x1b   :  { %3758 = shalt.err (!%p3755_p10)
}
  0x1c   :  { %s3759_s14 = scalar_lea.vmem %s65_s28, 32  ;;  %p3764_p12 = scmp.lt.s32.totalorder %s65_s28, %s65_s28 }
  0x1d   :  { %p3760_p11 = scmp.ne.s32.totalorder %s65_s28, %s3759_s14  ;;  %p3765_p13 = scmp.lt.s32.totalorder %s3759_s14, %s3759_s14 }
  0x1f   :  { %p3766_p0 = por %p3765_p13, %p3764_p12 }
  0x21   :  { %p3767_p1 = pnand %p3766_p0, %p3760_p11 }
  0x23   :  { %3770 = shalt.err (!%p3767_p1)
}
  0x24   :  { %67 = dma.hbm_to_vmem [thread:$0]  %s4519_s4, 32, %s65_s28, [#allocation8]  }
  0x25   :  { %s3983_s15 = smov [#allocation10]   ;;  %s3984_s17 = smov [#allocation13]  }
  0x26   :  { %s86_s16 = sshll.u32 %s3983_s15, 4  ;;  %s108_s18 = sshll.u32 %s3984_s17, 4  ;;  %s87_s16 = int_to_ptr.vmem [resolvable:$true] %s86_s16  ;;  %s109_s18 = int_to_ptr.vmem [resolvable:$true] %s108_s18 }
  0x27   :  { %s3771_s21 = scalar_lea.hbm %s4521_s6, 256 }
  0x28   :  { %p3772_p2 = scmp.ne.s32.totalorder %s4521_s6, %s3771_s21  ;;  %p3775_p3 = scmp.lt.u32.totalorder %s3771_s21, %s4521_s6 }
  0x2a   :  { %p3777_p4 = pnand %p3775_p3, %p3772_p2 }
  0x2c   :  { %3780 = shalt.err (!%p3777_p4)
}
  0x2d   :  { %s3781_s4 = scalar_lea.vmem %s87_s16, 256  ;;  %p3786_p6 = scmp.lt.s32.totalorder %s87_s16, %s87_s16 }
  0x2e   :  { %p3782_p5 = scmp.ne.s32.totalorder %s87_s16, %s3781_s4  ;;  %p3787_p7 = scmp.lt.s32.totalorder %s3781_s4, %s3781_s4 }
  0x30   :  { %p3788_p8 = por %p3787_p7, %p3786_p6 }
  0x32   :  { %p3789_p9 = pnand %p3788_p8, %p3782_p5 }
  0x34   :  { %3792 = shalt.err (!%p3789_p9)
}
  0x35   :  { %89 = dma.hbm_to_vmem [thread:$0]  %s4521_s6, 256, %s87_s16, [#allocation11]  }
  0x36   :  { %s3793_s14 = scalar_lea.hbm %s4523_s8, 128 }
  0x37   :  { %p3794_p10 = scmp.ne.s32.totalorder %s4523_s8, %s3793_s14  ;;  %p3797_p11 = scmp.lt.u32.totalorder %s3793_s14, %s4523_s8 }
  0x39   :  { %p3799_p12 = pnand %p3797_p11, %p3794_p10 }
  0x3b   :  { %3802 = shalt.err (!%p3799_p12)
}
  0x3c   :  { %s3803_s19 = scalar_lea.vmem %s109_s18, 128  ;;  %p3808_p0 = scmp.lt.s32.totalorder %s109_s18, %s109_s18 }
  0x3d   :  { %p3804_p13 = scmp.ne.s32.totalorder %s109_s18, %s3803_s19  ;;  %p3809_p1 = scmp.lt.s32.totalorder %s3803_s19, %s3803_s19 }
  0x3f   :  { %p3810_p2 = por %p3809_p1, %p3808_p0 }
  0x41   :  { %p3811_p3 = pnand %p3810_p2, %p3804_p13 }
  0x43   :  { %3814 = shalt.err (!%p3811_p3)
}
  0x44   :  { %111 = dma.hbm_to_vmem [thread:$0]  %s4523_s8, 128, %s109_s18, [#allocation14]  }
  0x45   :  { %s3985_s20 = smov [#allocation16]   ;;  %s3986_s22 = smov [#allocation2]  }
  0x46   :  { %s130_s21 = sshll.u32 %s3985_s20, 4  ;;  %s32_s23 = sshll.u32 %s3986_s22, 4  ;;  %s131_s21 = int_to_ptr.vmem [resolvable:$true] %s130_s21  ;;  %s33_s23 = int_to_ptr.vmem [resolvable:$true] %s32_s23 }
  0x47   :  { %s3815_s4 = scalar_lea.hbm %s4525_s10, 64 }
  0x48   :  { %p3816_p4 = scmp.ne.s32.totalorder %s4525_s10, %s3815_s4  ;;  %p3819_p5 = scmp.lt.u32.totalorder %s3815_s4, %s4525_s10 }
  0x4a   :  { %p3821_p6 = pnand %p3819_p5, %p3816_p4 }
  0x4c   :  { %3824 = shalt.err (!%p3821_p6)
}
  0x4d   :  { %s3825_s8 = scalar_lea.vmem %s131_s21, 64  ;;  %p3830_p8 = scmp.lt.s32.totalorder %s131_s21, %s131_s21 }
  0x4e   :  { %p3826_p7 = scmp.ne.s32.totalorder %s131_s21, %s3825_s8  ;;  %p3831_p9 = scmp.lt.s32.totalorder %s3825_s8, %s3825_s8 }
  0x50   :  { %p3832_p10 = por %p3831_p9, %p3830_p8 }
  0x52   :  { %p3833_p11 = pnand %p3832_p10, %p3826_p7 }
  0x54   :  { %3836 = shalt.err (!%p3833_p11)
}
  0x55   :  { %133 = dma.hbm_to_vmem [thread:$0]  %s4525_s10, 64, %s131_s21, [#allocation17]  }
  0x56   :  { %s3837_s15 = scalar_lea.hbm %s4516_s1, 64 }
  0x57   :  { %p3838_p12 = scmp.ne.s32.totalorder %s4516_s1, %s3837_s15  ;;  %p3841_p13 = scmp.lt.u32.totalorder %s3837_s15, %s4516_s1 }
  0x59   :  { %p3843_p0 = pnand %p3841_p13, %p3838_p12 }
  0x5b   :  { %3846 = shalt.err (!%p3843_p0)
}
  0x5c   :  { %s3847_s20 = scalar_lea.vmem %s33_s23, 64  ;;  %p3852_p2 = scmp.lt.s32.totalorder %s33_s23, %s33_s23 }
  0x5d   :  { %p3848_p1 = scmp.ne.s32.totalorder %s33_s23, %s3847_s20  ;;  %p3853_p3 = scmp.lt.s32.totalorder %s3847_s20, %s3847_s20 }
  0x5f   :  { %p3854_p4 = por %p3853_p3, %p3852_p2 }
  0x61   :  { %p3855_p5 = pnand %p3854_p4, %p3848_p1 }
  0x63   :  { %3858 = shalt.err (!%p3855_p5)
}
  0x64   :  { %35 = dma.hbm_to_vmem [thread:$0]  %s4516_s1, 64, %s33_s23, [#allocation3]  }
  0x65   :  { %s3987_s22 = smov [#allocation6]   ;;  %s3859_s28 = scalar_lea.hbm %s4518_s3, 1024 }
  0x66   :  { %s51_s24 = sshll.u32 %s3987_s22, 4  ;;  %p3860_p6 = scmp.ne.s32.totalorder %s4518_s3, %s3859_s28  ;;  %s52_s24 = int_to_ptr.vmem [resolvable:$true] %s51_s24 }
  0x67   :  { %p3863_p7 = scmp.lt.u32.totalorder %s3859_s28, %s4518_s3 }
  0x69   :  { %p3865_p8 = pnand %p3863_p7, %p3860_p6 }
  0x6b   :  { %3868 = shalt.err (!%p3865_p8)
}
  0x6c   :  { %s3869_s18 = scalar_lea.vmem %s52_s24, 1024  ;;  %p3874_p10 = scmp.lt.s32.totalorder %s52_s24, %s52_s24 }
  0x6d   :  { %p3870_p9 = scmp.ne.s32.totalorder %s52_s24, %s3869_s18  ;;  %p3875_p11 = scmp.lt.s32.totalorder %s3869_s18, %s3869_s18 }
  0x6f   :  { %p3876_p12 = por %p3875_p11, %p3874_p10 }
  0x71   :  { %p3877_p13 = pnand %p3876_p12, %p3870_p9 }
  0x73   :  { %3880 = shalt.err (!%p3877_p13)
}
  0x74   :  { %s3988_s1 = smov 128   ;;  %s3989_s23 = smov 8  }
  0x75   :  { %57 = dma.hbm_to_vmem [thread:$0]  %s4518_s3, 1024, %s52_s24, [#allocation5], %s3988_s1, %s3988_s1, %s3989_s23  }
  0x76   :  { %s3990_s26 = smov [#allocation9]   ;;  %s3881_s6 = scalar_lea.hbm %s4520_s5, 16384 }
  0x77   :  { %s73_s15 = sshll.u32 %s3990_s26, 4  ;;  %p3882_p0 = scmp.ne.s32.totalorder %s4520_s5, %s3881_s6  ;;  %s74_s15 = int_to_ptr.vmem [resolvable:$true] %s73_s15 }
  0x78   :  { %p3885_p1 = scmp.lt.u32.totalorder %s3881_s6, %s4520_s5 }
  0x7a   :  { %p3887_p2 = pnand %p3885_p1, %p3882_p0 }
  0x7c   :  { %3890 = shalt.err (!%p3887_p2)
}
  0x7d   :  { %s3891_s22 = scalar_lea.vmem %s74_s15, 16384  ;;  %p3896_p4 = scmp.lt.s32.totalorder %s74_s15, %s74_s15 }
  0x7e   :  { %p3892_p3 = scmp.ne.s32.totalorder %s74_s15, %s3891_s22  ;;  %p3897_p5 = scmp.lt.s32.totalorder %s3891_s22, %s3891_s22 }
  0x80   :  { %p3898_p6 = por %p3897_p5, %p3896_p4 }
  0x82   :  { %p3899_p7 = pnand %p3898_p6, %p3892_p3 }
  0x84   :  { %3902 = shalt.err (!%p3899_p7)
}
  0x85   :  { %s3991_s3 = smov 1024   ;;  %s3992_s24 = smov 64  }
  0x86   :  { %79 = dma.hbm_to_vmem [thread:$0]  %s4520_s5, 16384, %s74_s15, [#allocation8], %s3991_s3, %s3991_s3, %s3992_s24  }
  0x87   :  { %s3993_s28 = smov [#allocation12]   ;;  %s3903_s8 = scalar_lea.hbm %s4522_s7, 65536 }
  0x88   :  { %s95_s27 = sshll.u32 %s3993_s28, 4  ;;  %p3904_p8 = scmp.ne.s32.totalorder %s4522_s7, %s3903_s8  ;;  %s96_s27 = int_to_ptr.vmem [resolvable:$true] %s95_s27 }
  0x89   :  { %p3907_p9 = scmp.lt.u32.totalorder %s3903_s8, %s4522_s7 }
  0x8b   :  { %p3909_p10 = pnand %p3907_p9, %p3904_p8 }
  0x8d   :  { %3912 = shalt.err (!%p3909_p10)
}
  0x8e   :  { %s3913_s2 = scalar_lea.vmem %s96_s27, 65536  ;;  %p3918_p12 = scmp.lt.s32.totalorder %s96_s27, %s96_s27 }
  0x8f   :  { %p3914_p11 = scmp.ne.s32.totalorder %s96_s27, %s3913_s2  ;;  %p3919_p13 = scmp.lt.s32.totalorder %s3913_s2, %s3913_s2 }
  0x91   :  { %p3920_p0 = por %p3919_p13, %p3918_p12 }
  0x93   :  { %p3921_p1 = pnand %p3920_p0, %p3914_p11 }
  0x95   :  { %3924 = shalt.err (!%p3921_p1)
}
  0x96   :  { %s3994_s5 = smov 512   ;;  %s3995_s26 = smov 32  }
  0x97   :  { %101 = dma.hbm_to_vmem [thread:$0]  %s4522_s7, 65536, %s96_s27, [#allocation11], %s3994_s5, %s3994_s5, %s3995_s26  }
  0x98   :  { %s3996_s19 = smov [#allocation15]   ;;  %s3925_s10 = scalar_lea.hbm %s4524_s9, 16384 }
  0x99   :  { %s117_s6 = sshll.u32 %s3996_s19, 4  ;;  %p3926_p2 = scmp.ne.s32.totalorder %s4524_s9, %s3925_s10  ;;  %s118_s6 = int_to_ptr.vmem [resolvable:$true] %s117_s6 }
  0x9a   :  { %p3929_p3 = scmp.lt.u32.totalorder %s3925_s10, %s4524_s9 }
  0x9c   :  { %p3931_p4 = pnand %p3929_p3, %p3926_p2 }
  0x9e   :  { %3934 = shalt.err (!%p3931_p4)
}
  0x9f   :  { %s3935_s25 = scalar_lea.vmem %s118_s6, 16384  ;;  %p3940_p6 = scmp.lt.s32.totalorder %s118_s6, %s118_s6 }
  0xa0   :  { %p3936_p5 = scmp.ne.s32.totalorder %s118_s6, %s3935_s25  ;;  %p3941_p7 = scmp.lt.s32.totalorder %s3935_s25, %s3935_s25 }
  0xa2   :  { %p3942_p8 = por %p3941_p7, %p3940_p6 }
  0xa4   :  { %p3943_p9 = pnand %p3942_p8, %p3936_p5 }
  0xa6   :  { %3946 = shalt.err (!%p3943_p9)
}
  0xa7   :  { %s3997_s7 = smov 256   ;;  %s3998_s4 = smov 16  }
  0xa8   :  { %123 = dma.hbm_to_vmem [thread:$0]  %s4524_s9, 16384, %s118_s6, [#allocation14], %s3997_s7, %s3997_s7, %s3998_s4  }
  0xa9   :  { %s3999_s29 = smov [#allocation18]   ;;  %s3947_s1 = scalar_lea.hbm %s4527_s12, 16 }
  0xaa   :  { %s142_s30 = sshll.u32 %s3999_s29, 4  ;;  %p3948_p10 = scmp.ne.s32.totalorder %s4527_s12, %s3947_s1  ;;  %s143_s30 = int_to_ptr.vmem [resolvable:$true] %s142_s30 }
  0xab   :  { %p3951_p11 = scmp.lt.u32.totalorder %s3947_s1, %s4527_s12 }
  0xad   :  { %p3953_p12 = pnand %p3951_p11, %p3948_p10 }
  0xaf   :  { %3956 = shalt.err (!%p3953_p12)
}
  0xb0   :  { %s3957_s26 = scalar_lea.vmem %s143_s30, 16  ;;  %s3961_s9 = scalar_lea.vmem %s143_s30, 32 }
  0xb1   :  { %p3958_p13 = scmp.ne.s32.totalorder %s143_s30, %s3957_s26  ;;  %p3962_p0 = scmp.lt.s32.totalorder %s143_s30, %s143_s30 }
  0xb2   :  { %p3963_p1 = scmp.lt.s32.totalorder %s3961_s9, %s3957_s26 }
  0xb4   :  { %p3964_p2 = por %p3963_p1, %p3962_p0 }
  0xb6   :  { %p3965_p3 = pnand %p3964_p2, %p3958_p13 }
  0xb8   :  { %3968 = shalt.err (!%p3965_p3)
}
  0xb9   :  { %145 = dma.hbm_to_vmem [thread:$0]  %s4527_s12, 16, %s143_s30, [#allocation17]  }
  0xba   :  { %3969 = dma.done.wait [#allocation3], 64  }
  0xbb   :  { %3970 = vsyncadd [#allocation3], 4294967232 }
  0xbc   :  { %3971 = dma.done.wait [#allocation5], 1056  }
  0xbd   :  { %3972 = vsyncadd [#allocation5], 4294966240 }
  0xbe   :  { %3973 = dma.done.wait [#allocation8], 16416  }
  0xbf   :  { %3974 = vsyncadd [#allocation8], 4294950880 }
  0xc0   :  { %3975 = dma.done.wait [#allocation11], 65792  }
  0xc1   :  { %3976 = vsyncadd [#allocation11], 4294901504 }
  0xc2   :  { %3977 = dma.done.wait [#allocation14], 16512  }
  0xc3   :  { %3978 = vsyncadd [#allocation14], 4294950784 }
  0xc4   :  { %3979 = dma.done.wait [#allocation17], 80  }
  0xc5   :  { %3980 = vsyncadd [#allocation17], 4294967216  ;;  %vm197_vm0 = vcmask 1042432   ;;  %vm184_vm1 = vcmask 23552   ;;  %v183_v0 = vld [vmem:[#allocation2] sm:$0x7] }
  0xc6   :  { %v179_v1 = vld [vmem:[%s4515_s0] sm:$0xff]  ;;  %v180_v2 = vld [vmem:[%s4515_s0 + $0x8] sm:$0xff]  ;;  %2847 = vmatprep.subr.msk.mxu1 %vm197_vm0, %v183_v0  ;;  %v181_v3 = vld [vmem:[%s4515_s0 + $0x10] sm:$0xff]  ;;  %vm316_vm2 = vcmask 523264   ;;  %vm1213_vm3 = vcmask 1040384   ;;  %vm2769_vm4 = vcmask 66560  }
  0xc7   :  { %2849 = vmatprep.mubr.msk.f32.mxu1 %vm184_vm1, %v179_v1  ;;  %v308_v4 = vld [vmem:[#allocation6] sm:$0xff]  ;;  %2848 = vmatpush3.msk.msra.mxu1 %vm197_vm0, %v183_v0  ;;  %v309_v5 = vld [vmem:[#allocation6 + $0x8] sm:$0xff]  ;;  %v310_v6 = vld [vmem:[#allocation6 + $0x10] sm:$0xff] }
  0xc8   :  { %v311_v7 = vld [vmem:[#allocation6 + $0x18] sm:$0xff]  ;;  %2850 = vmatmul.mubr.msk.f32.vlgmr.msra.gmra.mrb[0].mxu1 %vm184_vm1, %v180_v2  ;;  %v2877_v8 = vpack.c.bf16 %v309_v5, %v308_v4  ;;  %v312_v11 = vld [vmem:[#allocation6 + $0x20] sm:$0xff]  ;;  %v313_v12 = vld [vmem:[#allocation6 + $0x28] sm:$0xff] }
  0xc9   :  { %v2881_v9 = vpack.c.bf16 %v311_v7, %v310_v6  ;;  %2852 = vmatprep.mubr.msk.f32.mxu1 %vm184_vm1, %v181_v3  ;;  %v182_v10 = vld [vmem:[%s4515_s0 + $0x18] sm:$0xff]  ;;  %v2885_v13 = vpack.c.bf16 %v313_v12, %v312_v11  ;;  %v437_v17 = vld [vmem:[#allocation9 + $0x8] sm:$0xff]  ;;  %v440_v23 = vld [vmem:[#allocation9 + $0x20] sm:$0xff] }
  0xca   :  { %2878 = vmatprep.subr.bf16.mxu1 %v2877_v8  ;;  %v314_v14 = vld [vmem:[#allocation6 + $0x30] sm:$0xff]  ;;  %v315_v15 = vld [vmem:[#allocation6 + $0x38] sm:$0xff]  ;;  %v448_v24 = vld [vmem:[#allocation9 + $0x60] sm:$0xff] }
  0xcb   :  { %2880 = vmatpush3.bf16.msra.mxu1 %v2877_v8  ;;  %v2889_v16 = vpack.c.bf16 %v315_v15, %v314_v14  ;;  %v445_v18 = vld [vmem:[#allocation9 + $0x48] sm:$0xff]  ;;  %v2959_v25 = vpack.c.bf16 %v448_v24, %v440_v23  ;;  %v456_v28 = vld [vmem:[#allocation9 + $0xa0] sm:$0xff]  ;;  %v2786_v56 = vld [vmem:[#allocation4] ss:$0 sm:$0xff] }
  0xcc   :  { %2853 = vmatmul.mubr.msk.f32.gmra.mrb[2].mxu1 %vm184_vm1, %v182_v10  ;;  %2882 = vmatprep.subr.bf16.mxu1 %v2881_v9  ;;  %v2893_v19 = vpack.c.bf16 %v445_v18, %v437_v17  ;;  %v441_v20 = vld [vmem:[#allocation9 + $0x28] sm:$0xff]  ;;  %v464_v30 = vld [vmem:[#allocation9 + $0xe0] sm:$0xff]  ;;  %v2787_v58 = vld [vmem:[#allocation4 + $0x1] ss:$0 sm:$0xff] }
  0xcd   :  { %v449_v21 = vld [vmem:[#allocation9 + $0x68] sm:$0xff]  ;;  %v2963_v31 = vpack.c.bf16 %v464_v30, %v456_v28  ;;  %v472_v34 = vld [vmem:[#allocation9 + $0x120] sm:$0xff] }
  0xce   :  { %v2957_v22 = vpack.c.bf16 %v449_v21, %v441_v20  ;;  %v457_v26 = vld [vmem:[#allocation9 + $0xa8] sm:$0xff]  ;;  %v480_v35 = vld [vmem:[#allocation9 + $0x160] sm:$0xff] }
  0xcf   :  { %2884 = vmatpush3.bf16.msra.mxu1 %v2881_v9  ;;  %v465_v27 = vld [vmem:[#allocation9 + $0xe8] sm:$0xff]  ;;  %v2967_v37 = vpack.c.bf16 %v480_v35, %v472_v34  ;;  %v488_v41 = vld [vmem:[#allocation9 + $0x1a0] sm:$0xff] }
  0xd0   :  { %2886 = vmatprep.subr.bf16.mxu1 %v2885_v13  ;;  %2958 = vmatprep.subr.bf16.mxu0 %v2957_v22  ;;  %v2961_v29 = vpack.c.bf16 %v465_v27, %v457_v26  ;;  %v473_v32 = vld [vmem:[#allocation9 + $0x128] sm:$0xff]  ;;  %v496_v42 = vld [vmem:[#allocation9 + $0x1e0] sm:$0xff] }
  0xd1   :  { %2960 = vmatpush1.bf16.msra.mxu0 %v2959_v25  ;;  %v481_v33 = vld [vmem:[#allocation9 + $0x168] sm:$0xff]  ;;  %v2971_v43 = vpack.c.bf16 %v496_v42, %v488_v41  ;;  %v504_v47 = vld [vmem:[#allocation9 + $0x220] sm:$0xff] }
  0xd2   :  { %2962 = vmatprep.subr.bf16.mxu0 %v2961_v29  ;;  %v2965_v36 = vpack.c.bf16 %v481_v33, %v473_v32  ;;  %v489_v38 = vld [vmem:[#allocation9 + $0x1a8] sm:$0xff]  ;;  %v512_v48 = vld [vmem:[#allocation9 + $0x260] sm:$0xff] }
  0xd3   :  { %2888 = vmatpush3.bf16.msra.mxu1 %v2885_v13  ;;  %v497_v39 = vld [vmem:[#allocation9 + $0x1e8] sm:$0xff]  ;;  %v2975_v49 = vpack.c.bf16 %v512_v48, %v504_v47  ;;  %v520_v53 = vld [vmem:[#allocation9 + $0x2a0] sm:$0xff] }
  0xd4   :  { %2890 = vmatprep.subr.bf16.mxu1 %v2889_v16  ;;  %v2969_v40 = vpack.c.bf16 %v497_v39, %v489_v38  ;;  %v505_v44 = vld [vmem:[#allocation9 + $0x228] sm:$0xff]  ;;  %v528_v54 = vld [vmem:[#allocation9 + $0x2e0] sm:$0xff] }
  0xd5   :  { %2964 = vmatpush1.bf16.msra.mxu0 %v2963_v31  ;;  %v513_v45 = vld [vmem:[#allocation9 + $0x268] sm:$0xff]  ;;  %v2979_v55 = vpack.c.bf16 %v528_v54, %v520_v53  ;;  %v436_v63 = vld [vmem:[#allocation9] sm:$0xff] }
  0xd6   :  { %2966 = vmatprep.subr.bf16.mxu0 %v2965_v36  ;;  %v2973_v46 = vpack.c.bf16 %v513_v45, %v505_v44  ;;  %v521_v50 = vld [vmem:[#allocation9 + $0x2a8] sm:$0xff]  ;;  %v444_v0 = vld [vmem:[#allocation9 + $0x40] sm:$0xff] }
  0xd7   :  { %2892 = vmatpush3.bf16.msra.mxu1 %v2889_v16  ;;  %v529_v51 = vld [vmem:[#allocation9 + $0x2e8] sm:$0xff]  ;;  %v2895_v9 = vpack.c.bf16 %v444_v0, %v436_v63  ;;  %v452_v13 = vld [vmem:[#allocation9 + $0x80] sm:$0xff] }
  0xd8   :  { %2894 = vmatprep.subr.bf16.mxu1 %v2893_v19  ;;  %v2977_v52 = vpack.c.bf16 %v529_v51, %v521_v50  ;;  %v453_v3 = vld [vmem:[#allocation9 + $0x88] sm:$0xff]  ;;  %v460_v14 = vld [vmem:[#allocation9 + $0xc0] sm:$0xff] }
  0xd9   :  { %2968 = vmatpush1.bf16.msra.mxu0 %v2967_v37  ;;  %v461_v4 = vld [vmem:[#allocation9 + $0xc8] sm:$0xff]  ;;  %v2899_v20 = vpack.c.bf16 %v460_v14, %v452_v13  ;;  %v468_v22 = vld [vmem:[#allocation9 + $0x100] sm:$0xff] }
  0xda   :  { %2970 = vmatprep.subr.bf16.mxu0 %v2969_v40  ;;  %v2897_v12 = vpack.c.bf16 %v461_v4, %v453_v3  ;;  %v469_v16 = vld [vmem:[#allocation9 + $0x108] sm:$0xff]  ;;  %v476_v23 = vld [vmem:[#allocation9 + $0x140] sm:$0xff]  ;;  %v439_v3 = vld [vmem:[#allocation9 + $0x18] sm:$0xff] }
  0xdb   :  { %v477_v17 = vld [vmem:[#allocation9 + $0x148] sm:$0xff]  ;;  %v2903_v26 = vpack.c.bf16 %v476_v23, %v468_v22  ;;  %v484_v28 = vld [vmem:[#allocation9 + $0x180] sm:$0xff]  ;;  %v447_v4 = vld [vmem:[#allocation9 + $0x58] sm:$0xff] }
  0xdc   :  { %v2901_v21 = vpack.c.bf16 %v477_v17, %v469_v16  ;;  %v485_v24 = vld [vmem:[#allocation9 + $0x188] sm:$0xff]  ;;  %v492_v29 = vld [vmem:[#allocation9 + $0x1c0] sm:$0xff]  ;;  %v438_v16 = vld [vmem:[#allocation9 + $0x10] sm:$0xff] }
  0xdd   :  { %2972 = vmatpush1.bf16.msra.mxu0 %v2971_v43  ;;  %v493_v25 = vld [vmem:[#allocation9 + $0x1c8] sm:$0xff]  ;;  %v2907_v32 = vpack.c.bf16 %v492_v29, %v484_v28  ;;  %v500_v34 = vld [vmem:[#allocation9 + $0x200] sm:$0xff]  ;;  %v446_v17 = vld [vmem:[#allocation9 + $0x50] sm:$0xff] }
  0xde   :  { %2974 = vmatprep.subr.bf16.mxu0 %v2973_v46  ;;  %v2905_v27 = vpack.c.bf16 %v493_v25, %v485_v24  ;;  %v501_v30 = vld [vmem:[#allocation9 + $0x208] sm:$0xff]  ;;  %v508_v35 = vld [vmem:[#allocation9 + $0x240] sm:$0xff]  ;;  %v1222_v22 = vld [vmem:[#allocation12] sm:$0xff]  ;;  %v2927_v25 = vpack.c.bf16 %v446_v17, %v438_v16 }
  0xdf   :  { %v509_v31 = vld [vmem:[#allocation9 + $0x248] sm:$0xff]  ;;  %v2911_v38 = vpack.c.bf16 %v508_v35, %v500_v34  ;;  %v516_v40 = vld [vmem:[#allocation9 + $0x280] sm:$0xff]  ;;  %v1226_v23 = vld [vmem:[#allocation12 + $0x20] sm:$0xff] }
  0xe0   :  { %v2909_v33 = vpack.c.bf16 %v509_v31, %v501_v30  ;;  %v517_v36 = vld [vmem:[#allocation9 + $0x288] sm:$0xff]  ;;  %v524_v41 = vld [vmem:[#allocation9 + $0x2c0] sm:$0xff]  ;;  %v454_v30 = vld [vmem:[#allocation9 + $0x90] sm:$0xff]  ;;  %v3023_v34 = vpack.c.bf16 %v1226_v23, %v1222_v22 }
  0xe1   :  { %2976 = vmatpush1.bf16.msra.mxu0 %v2975_v49  ;;  %v525_v37 = vld [vmem:[#allocation9 + $0x2c8] sm:$0xff]  ;;  %v2915_v44 = vpack.c.bf16 %v524_v41, %v516_v40  ;;  %v532_v46 = vld [vmem:[#allocation9 + $0x300] sm:$0xff]  ;;  %v462_v31 = vld [vmem:[#allocation9 + $0xd0] sm:$0xff] }
  0xe2   :  { %2978 = vmatprep.subr.bf16.mxu0 %v2977_v52  ;;  %v2913_v39 = vpack.c.bf16 %v525_v37, %v517_v36  ;;  %v533_v42 = vld [vmem:[#allocation9 + $0x308] sm:$0xff]  ;;  %v540_v47 = vld [vmem:[#allocation9 + $0x340] sm:$0xff]  ;;  %v1231_v35 = vld [vmem:[#allocation12 + $0x48] sm:$0xff]  ;;  %v2931_v37 = vpack.c.bf16 %v462_v31, %v454_v30 }
  0xe3   :  { %v541_v43 = vld [vmem:[#allocation9 + $0x348] sm:$0xff]  ;;  %v2919_v49 = vpack.c.bf16 %v540_v47, %v532_v46  ;;  %v536_v51 = vld [vmem:[#allocation9 + $0x320] sm:$0xff]  ;;  %v1235_v36 = vld [vmem:[#allocation12 + $0x68] sm:$0xff] }
  0xe4   :  { %v2917_v45 = vpack.c.bf16 %v541_v43, %v533_v42  ;;  %v537_v48 = vld [vmem:[#allocation9 + $0x328] sm:$0xff]  ;;  %v544_v52 = vld [vmem:[#allocation9 + $0x360] sm:$0xff]  ;;  %v470_v42 = vld [vmem:[#allocation9 + $0x110] sm:$0xff]  ;;  %v3025_v46 = vpack.c.bf16 %v1235_v36, %v1231_v35 }
  0xe5   :  { %2980 = vmatpush1.bf16.msra.mxu0 %v2979_v55  ;;  %v545_v50 = vld [vmem:[#allocation9 + $0x368] sm:$0xff]  ;;  %v2983_v54 = vpack.c.bf16 %v544_v52, %v536_v51  ;;  %v552_v63 = vld [vmem:[#allocation9 + $0x3a0] sm:$0xff]  ;;  %v478_v43 = vld [vmem:[#allocation9 + $0x150] sm:$0xff] }
  0xe6   :  { %v2981_v53 = vpack.c.bf16 %v545_v50, %v537_v48  ;;  %v549_v55 = vld [vmem:[#allocation9 + $0x388] sm:$0xff]  ;;  %v1230_v47 = vld [vmem:[#allocation12 + $0x40] sm:$0xff] }
  0xe7   :  { %v1234_v48 = vld [vmem:[#allocation12 + $0x60] sm:$0xff] }
  0xe8   :  { %2982 = vmatprep.subr.bf16.mxu0 %v2981_v53  ;;  %v486_v53 = vld [vmem:[#allocation9 + $0x190] sm:$0xff] }
  0xe9   :  { %2984 = vmatpush1.bf16.msra.mxu0 %v2983_v54  ;;  %v494_v54 = vld [vmem:[#allocation9 + $0x1d0] sm:$0xff] }
  0xea   :  { %v518_v17 = vld [vmem:[#allocation9 + $0x290] sm:$0xff] }
  0xeb   :  { %v1254_v23 = vld [vmem:[#allocation12 + $0x100] sm:$0xff] }
  0xec   :  { %v534_v30 = vld [vmem:[#allocation9 + $0x310] sm:$0xff] }
  0xed   :  { %v542_v31 = vld [vmem:[#allocation9 + $0x350] sm:$0xff] }
  0xee   :  { %v1262_v36 = vld [vmem:[#allocation12 + $0x140] sm:$0xff] }
 0x19b   :  { %v2851_v57 = vpop.f32.mrb[0].mxu1 }
 0x19c   :  { %v292_v59 = vmul.f32 %v2851_v57, %v2786_v56  ;;  %v267_v60 = vpop.f32.mrb[1].mxu1 }
 0x19d   :  { %v291_v61 = vmul.f32 %v2786_v56, %v267_v60 }
 0x19e   :  { %v301_v62 = vadd.f32 %v2787_v58, %v292_v59  ;;  %v556_v59 = vld [vmem:[#allocation9 + $0x3c0] sm:$0xff] }
 0x19f   :  { %v300_v1 = vadd.f32 %v2787_v58, %v291_v61  ;;  %v2854_v2 = vpop.f32.mrb[2].mxu1  ;;  %v553_v61 = vld [vmem:[#allocation9 + $0x3a8] sm:$0xff] }
 0x1a0   :  { %v294_v5 = vmul.f32 %v2854_v2, %v2786_v56  ;;  %v277_v6 = vpop.f32.mrb[3].mxu1  ;;  %v305_v10 = vmax.f32 %v301_v62, 0.0  ;;  %v561_v62 = vld [vmem:[#allocation9 + $0x3e8] sm:$0xff] }
 0x1a1   :  { %v304_v7 = vmax.f32 %v300_v1, 0.0  ;;  %v293_v8 = vmul.f32 %v2786_v56, %v277_v6  ;;  %v557_v56 = vld [vmem:[#allocation9 + $0x3c8] sm:$0xff]  ;;  %v2985_v0 = vpack.c.bf16 %v561_v62, %v553_v61  ;;  %v560_v1 = vld [vmem:[#allocation9 + $0x3e0] sm:$0xff]  ;;  %v4000_v6 = vmov 0.0   ;;  %v1242_v61 = vld [vmem:[#allocation12 + $0xa0] sm:$0xff] }
 0x1a2   :  { %v303_v11 = vadd.f32 %v2787_v58, %v294_v5  ;;  %v2921_v57 = vpack.c.bf16 %v557_v56, %v549_v55  ;;  %v2987_v2 = vpack.c.bf16 %v560_v1, %v552_v63  ;;  %v2925_v5 = vpack.c.bf16 %v447_v4, %v439_v3  ;;  %806 = vmatprep.mubr.f32.mxu0 %v4000_v6  ;;  %v503_v55 = vld [vmem:[#allocation9 + $0x218] sm:$0xff]  ;;  %v502_v3 = vld [vmem:[#allocation9 + $0x210] sm:$0xff] }
 0x1a3   :  { %v302_v15 = vadd.f32 %v2787_v58, %v293_v8  ;;  %2871 = vmatprep.mubr.msk.f32.mxu1 %vm316_vm2, %v304_v7  ;;  %v548_v58 = vld [vmem:[#allocation9 + $0x380] sm:$0xff]  ;;  %2986 = vmatprep.subr.bf16.mxu0 %v2985_v0  ;;  %v1223_v7 = vld [vmem:[#allocation12 + $0x8] sm:$0xff]  ;;  %v2939_v62 = vpack.c.bf16 %v494_v54, %v486_v53  ;;  %v510_v4 = vld [vmem:[#allocation9 + $0x250] sm:$0xff] }
 0x1a4   :  { %v307_v18 = vmax.f32 %v303_v11, 0.0  ;;  %2872 = vmatmul.mubr.msk.f32.vlgmr.msra.gmra.mrb[4].mxu1 %vm316_vm2, %v305_v10  ;;  %v2923_v60 = vpack.c.bf16 %v556_v59, %v548_v58  ;;  %2988 = vmatpush1.bf16.msra.mxu0 %v2987_v2  ;;  %v1227_v8 = vld [vmem:[#allocation12 + $0x28] sm:$0xff] }
 0x1a5   :  { %v306_v19 = vmax.f32 %v302_v15, 0.0  ;;  %2896 = vmatpush1.bf16.msra.mxu1 %v2895_v9  ;;  %v3021_v9 = vpack.c.bf16 %v1227_v8, %v1223_v7  ;;  %v2792_v10 = vld [vmem:[#allocation7] ss:$0 sm:$0xff] }
 0x1a6   :  { %2898 = vmatprep.subr.bf16.mxu1 %v2897_v12  ;;  %v2793_v12 = vld [vmem:[#allocation7 + $0x1] ss:$0 sm:$0xff] }
 0x1a7   :  { %2874 = vmatprep.mubr.msk.f32.mxu1 %vm316_vm2, %v306_v19  ;;  %3022 = vmatprep.subr.bf16.mxu0 %v3021_v9  ;;  %v463_v19 = vld [vmem:[#allocation9 + $0xd8] sm:$0xff] }
 0x1a8   :  { %2875 = vmatmul.mubr.msk.f32.gmra.mrb[6].mxu1 %vm316_vm2, %v307_v18  ;;  %v455_v18 = vld [vmem:[#allocation9 + $0x98] sm:$0xff] }
 0x1a9   :  { %2900 = vmatpush1.bf16.msra.mxu1 %v2899_v20  ;;  %628 = vmatprep.mubr.f32.mxu1 %v4000_v6  ;;  %v2929_v29 = vpack.c.bf16 %v463_v19, %v455_v18  ;;  %v511_v56 = vld [vmem:[#allocation9 + $0x258] sm:$0xff]  ;;  %v526_v18 = vld [vmem:[#allocation9 + $0x2d0] sm:$0xff] }
 0x1aa   :  { %2902 = vmatprep.subr.bf16.mxu1 %v2901_v21  ;;  %v1239_v58 = vld [vmem:[#allocation12 + $0x88] sm:$0xff]  ;;  %v2941_v2 = vpack.c.bf16 %v511_v56, %v503_v55  ;;  %v442_v56 = vld [vmem:[#allocation9 + $0x30] sm:$0xff] }
 0x1ab   :  { %v1243_v59 = vld [vmem:[#allocation12 + $0xa8] sm:$0xff] }
 0x1ac   :  { %v1247_v63 = vld [vmem:[#allocation12 + $0xc8] sm:$0xff] }
 0x1ad   :  { %2904 = vmatpush1.bf16.msra.mxu1 %v2903_v26  ;;  %v1251_v0 = vld [vmem:[#allocation12 + $0xe8] sm:$0xff] }
 0x1ae   :  { %2906 = vmatprep.subr.bf16.mxu1 %v2905_v27  ;;  %v519_v7 = vld [vmem:[#allocation9 + $0x298] sm:$0xff] }
 0x1af   :  { %v527_v8 = vld [vmem:[#allocation9 + $0x2d8] sm:$0xff] }
 0x1b0   :  { %v2945_v16 = vpack.c.bf16 %v527_v8, %v519_v7  ;;  %v535_v19 = vld [vmem:[#allocation9 + $0x318] sm:$0xff]  ;;  %v474_v8 = vld [vmem:[#allocation9 + $0x130] sm:$0xff] }
 0x1b1   :  { %2908 = vmatpush1.bf16.msra.mxu1 %v2907_v32  ;;  %v471_v32 = vld [vmem:[#allocation9 + $0x118] sm:$0xff] }
 0x1b2   :  { %2910 = vmatprep.subr.bf16.mxu1 %v2909_v33  ;;  %v479_v33 = vld [vmem:[#allocation9 + $0x158] sm:$0xff] }
 0x1b3   :  { %v2933_v41 = vpack.c.bf16 %v479_v33, %v471_v32  ;;  %v551_v32 = vld [vmem:[#allocation9 + $0x398] sm:$0xff] }
 0x1b4   :  { %v559_v33 = vld [vmem:[#allocation9 + $0x3d8] sm:$0xff] }
 0x1b5   :  { %2912 = vmatpush1.bf16.msra.mxu1 %v2911_v38  ;;  %v1279_v53 = vld [vmem:[#allocation12 + $0x1c8] sm:$0xff] }
 0x1b6   :  { %2914 = vmatprep.subr.bf16.mxu1 %v2913_v39  ;;  %v1283_v54 = vld [vmem:[#allocation12 + $0x1e8] sm:$0xff] }
 0x1b9   :  { %2916 = vmatpush1.bf16.msra.mxu1 %v2915_v44  ;;  %v487_v44 = vld [vmem:[#allocation9 + $0x198] sm:$0xff] }
 0x1ba   :  { %2918 = vmatprep.subr.bf16.mxu1 %v2917_v45  ;;  %v495_v45 = vld [vmem:[#allocation9 + $0x1d8] sm:$0xff] }
 0x1bb   :  { %v2937_v52 = vpack.c.bf16 %v495_v45, %v487_v44  ;;  %v558_v44 = vld [vmem:[#allocation9 + $0x3d0] sm:$0xff]  ;;  %v443_v45 = vld [vmem:[#allocation9 + $0x38] sm:$0xff] }
 0x1bd   :  { %2920 = vmatpush1.bf16.msra.mxu1 %v2919_v49  ;;  %v2935_v49 = vpack.c.bf16 %v478_v43, %v470_v42  ;;  %v2953_v42 = vpack.c.bf16 %v559_v33, %v551_v32  ;;  %v550_v43 = vld [vmem:[#allocation9 + $0x390] sm:$0xff] }
 0x1be   :  { %2922 = vmatprep.subr.bf16.mxu1 %v2921_v57  ;;  %v3027_v57 = vpack.c.bf16 %v1234_v48, %v1230_v47  ;;  %v538_v33 = vld [vmem:[#allocation9 + $0x330] sm:$0xff] }
 0x1c1   :  { %2924 = vmatpush1.bf16.msra.mxu1 %v2923_v60  ;;  %v1238_v60 = vld [vmem:[#allocation12 + $0x80] sm:$0xff] }
 0x1c2   :  { %2926 = vmatprep.subr.bf16.mxu1 %v2925_v5  ;;  %v3029_v5 = vpack.c.bf16 %v1243_v59, %v1239_v58  ;;  %v3031_v9 = vpack.c.bf16 %v1242_v61, %v1238_v60  ;;  %v459_v58 = vld [vmem:[#allocation9 + $0xb8] sm:$0xff]  ;;  %v3049_v61 = vpack.c.bf16 %v1283_v54, %v1279_v53  ;;  %v1232_v53 = vld [vmem:[#allocation12 + $0x50] sm:$0xff] }
 0x1c3   :  { %v467_v59 = vld [vmem:[#allocation9 + $0xf8] sm:$0xff]  ;;  %v1236_v54 = vld [vmem:[#allocation12 + $0x70] sm:$0xff] }
 0x277   :  { %v2873_v11 = vpop.f32.mrb[4].mxu1 }
 0x278   :  { %v395_v13 = vpop.f32.mrb[5].mxu1  ;;  %v420_v14 = vmul.f32 %v2873_v11, %v2792_v10  ;;  %v1246_v11 = vld [vmem:[#allocation12 + $0xc0] sm:$0xff] }
 0x279   :  { %v419_v15 = vmul.f32 %v2792_v10, %v395_v13  ;;  %v2943_v13 = vpack.c.bf16 %v510_v4, %v502_v3  ;;  %v475_v3 = vld [vmem:[#allocation9 + $0x138] sm:$0xff] }
 0x27a   :  { %v429_v26 = vadd.f32 %v2793_v12, %v420_v14  ;;  %v1255_v14 = vld [vmem:[#allocation12 + $0x108] sm:$0xff] }
 0x27b   :  { %v428_v20 = vadd.f32 %v2793_v12, %v419_v15  ;;  %v2876_v21 = vpop.f32.mrb[6].mxu1  ;;  %v1259_v15 = vld [vmem:[#allocation12 + $0x128] sm:$0xff] }
 0x27c   :  { %v405_v24 = vpop.f32.mrb[7].mxu1  ;;  %v4230_v38 = vmax.f32 %v429_v26, 0.0  ;;  %v422_v39 = vmul.f32 %v2876_v21, %v2792_v10  ;;  %v3037_v22 = vpack.c.bf16 %v1259_v15, %v1255_v14  ;;  %v1263_v26 = vld [vmem:[#allocation12 + $0x148] sm:$0xff]  ;;  %v490_v14 = vld [vmem:[#allocation9 + $0x1b0] sm:$0xff] }
 0x27d   :  { %v4225_v27 = vmax.f32 %v428_v20, 0.0  ;;  %v421_v28 = vmul.f32 %v2792_v10, %v405_v24  ;;  %v3033_v10 = vpack.c.bf16 %v1251_v0, %v1247_v63  ;;  %v543_v20 = vld [vmem:[#allocation9 + $0x358] sm:$0xff]  ;;  %v1258_v24 = vld [vmem:[#allocation12 + $0x120] sm:$0xff]  ;;  %v2993_v63 = vpack.c.bf16 %v467_v59, %v459_v58  ;;  %v1240_v59 = vld [vmem:[#allocation12 + $0x90] sm:$0xff] }
 0x27e   :  { %v431_v50 = vadd.f32 %v2793_v12, %v422_v39  ;;  %v2951_v39 = vpack.c.bf16 %v542_v31, %v534_v30  ;;  %v458_v0 = vld [vmem:[#allocation9 + $0xb0] sm:$0xff]  ;;  %v483_v4 = vld [vmem:[#allocation9 + $0x178] sm:$0xff] }
 0x27f   :  { %629 = vmatmul.mubr.f32.vlgmr.msra.gmra.mrb[8].mxu1 %v4225_v27  ;;  %807 = vmatmul.mubr.f32.vlgmr.msra.gmra.mrb[0].mxu0 %v4225_v27  ;;  %v430_v40 = vadd.f32 %v2793_v12, %v421_v28  ;;  %v1250_v12 = vld [vmem:[#allocation12 + $0xe0] sm:$0xff]  ;;  %v1267_v28 = vld [vmem:[#allocation12 + $0x168] sm:$0xff]  ;;  %v2997_v7 = vpack.c.bf16 %v483_v4, %v475_v3  ;;  %v1257_v3 = vld [vmem:[#allocation12 + $0x118] sm:$0xff] }
 0x280   :  { %2928 = vmatpush1.bf16.msra.mxu1 %v2927_v25  ;;  %634 = vmatprep.mubr.f32.mxu1 %v4000_v6  ;;  %v4242_v1 = vmax.f32 %v431_v50, 0.0  ;;  %v3035_v21 = vpack.c.bf16 %v1250_v12, %v1246_v11  ;;  %v2947_v25 = vpack.c.bf16 %v526_v18, %v518_v17  ;;  %v3041_v35 = vpack.c.bf16 %v1267_v28, %v1263_v26  ;;  %v1274_v50 = vld [vmem:[#allocation12 + $0x1a0] sm:$0xff]  ;;  %v499_v11 = vld [vmem:[#allocation9 + $0x1f8] sm:$0xff]  ;;  %v1261_v4 = vld [vmem:[#allocation12 + $0x138] sm:$0xff] }
 0x281   :  { %2930 = vmatprep.subr.bf16.mxu1 %v2929_v29  ;;  %812 = vmatprep.mubr.f32.mxu0 %v4000_v6  ;;  %v4236_v51 = vmax.f32 %v430_v40, 0.0  ;;  %v2949_v29 = vpack.c.bf16 %v543_v20, %v535_v19  ;;  %v1271_v40 = vld [vmem:[#allocation12 + $0x188] sm:$0xff]  ;;  %v498_v15 = vld [vmem:[#allocation9 + $0x1f0] sm:$0xff] }
 0x282   :  { %3024 = vmatpush1.bf16.msra.mxu0 %v3023_v34  ;;  %v3039_v34 = vpack.c.bf16 %v1258_v24, %v1254_v23  ;;  %v515_v17 = vld [vmem:[#allocation9 + $0x278] sm:$0xff]  ;;  %v3003_v18 = vpack.c.bf16 %v498_v15, %v490_v14  ;;  %v506_v20 = vld [vmem:[#allocation9 + $0x230] sm:$0xff]  ;;  %v1268_v14 = vld [vmem:[#allocation12 + $0x170] sm:$0xff] }
 0x283   :  { %635 = vmatmul.mubr.f32.gmra.mrb[10].mxu1 %v4230_v38  ;;  %813 = vmatmul.mubr.f32.gmra.mrb[2].mxu0 %v4230_v38  ;;  %v531_v23 = vld [vmem:[#allocation9 + $0x2f8] sm:$0xff]  ;;  %v522_v26 = vld [vmem:[#allocation9 + $0x2b0] sm:$0xff]  ;;  %v1273_v15 = vld [vmem:[#allocation12 + $0x198] sm:$0xff] }
 0x284   :  { %2932 = vmatpush1.bf16.msra.mxu1 %v2931_v37  ;;  %640 = vmatprep.mubr.f32.mxu1 %v4000_v6  ;;  %v1266_v37 = vld [vmem:[#allocation12 + $0x160] sm:$0xff]  ;;  %v547_v30 = vld [vmem:[#allocation9 + $0x378] sm:$0xff] }
 0x285   :  { %2934 = vmatprep.subr.bf16.mxu1 %v2933_v41  ;;  %818 = vmatprep.mubr.f32.mxu0 %v4000_v6  ;;  %v1275_v41 = vld [vmem:[#allocation12 + $0x1a8] sm:$0xff]  ;;  %v3043_v47 = vpack.c.bf16 %v1266_v37, %v1262_v36  ;;  %v530_v28 = vld [vmem:[#allocation9 + $0x2f0] sm:$0xff] }
 0x286   :  { %3026 = vmatprep.subr.bf16.mxu0 %v3025_v46  ;;  %v451_v46 = vld [vmem:[#allocation9 + $0x78] sm:$0xff]  ;;  %v3045_v48 = vpack.c.bf16 %v1275_v41, %v1271_v40  ;;  %v3011_v31 = vpack.c.bf16 %v530_v28, %v522_v26  ;;  %v554_v40 = vld [vmem:[#allocation9 + $0x3b0] sm:$0xff] }
 0x287   :  { %641 = vmatmul.mubr.f32.gmra.mrb[12].mxu1 %v4236_v51  ;;  %819 = vmatmul.mubr.f32.gmra.mrb[4].mxu0 %v4236_v51  ;;  %v2989_v55 = vpack.c.bf16 %v451_v46, %v443_v45  ;;  %v563_v36 = vld [vmem:[#allocation9 + $0x3f8] sm:$0xff]  ;;  %v562_v41 = vld [vmem:[#allocation9 + $0x3f0] sm:$0xff]  ;;  %v1224_v46 = vld [vmem:[#allocation12 + $0x10] sm:$0xff] }
 0x288   :  { %2936 = vmatpush1.bf16.msra.mxu1 %v2935_v49  ;;  %646 = vmatprep.mubr.f32.mxu1 %v4000_v6  ;;  %v1270_v49 = vld [vmem:[#allocation12 + $0x180] sm:$0xff] }
 0x289   :  { %2938 = vmatprep.subr.bf16.mxu1 %v2937_v52  ;;  %824 = vmatprep.mubr.f32.mxu0 %v4000_v6  ;;  %v2955_v52 = vpack.c.bf16 %v558_v44, %v550_v43  ;;  %v3047_v60 = vpack.c.bf16 %v1274_v50, %v1270_v49  ;;  %v1229_v43 = vld [vmem:[#allocation12 + $0x38] sm:$0xff]  ;;  %v3019_v44 = vpack.c.bf16 %v562_v41, %v554_v40  ;;  %v1286_v28 = vld [vmem:[#allocation12 + $0x200] sm:$0xff] }
 0x28a   :  { %3028 = vmatpush1.bf16.msra.mxu0 %v3027_v57  ;;  %v450_v57 = vld [vmem:[#allocation9 + $0x70] sm:$0xff]  ;;  %v1237_v49 = vld [vmem:[#allocation12 + $0x78] sm:$0xff] }
 0x28b   :  { %647 = vmatmul.mubr.f32.gmra.mrb[14].mxu1 %v4242_v1  ;;  %825 = vmatmul.mubr.f32.gmra.mrb[6].mxu0 %v4242_v1  ;;  %v1294_v41 = vld [vmem:[#allocation12 + $0x240] sm:$0xff] }
 0x28c   :  { %2940 = vmatpush1.bf16.msra.mxu1 %v2939_v62  ;;  %717 = vmatprep.mubr.f32.mxu1 %v4000_v6  ;;  %v2991_v62 = vpack.c.bf16 %v450_v57, %v442_v56  ;;  %v1245_v56 = vld [vmem:[#allocation12 + $0xb8] sm:$0xff]  ;;  %v3283_v57 = vpack.c.bf16 %v1236_v54, %v1232_v53  ;;  %v1296_v53 = vld [vmem:[#allocation12 + $0x250] sm:$0xff] }
 0x28d   :  { %2942 = vmatprep.subr.bf16.mxu1 %v2941_v2  ;;  %3030 = vmatprep.subr.bf16.mxu0 %v3029_v5  ;;  %v466_v2 = vld [vmem:[#allocation9 + $0xf0] sm:$0xff] }
 0x28e   :  { %3032 = vmatpush1.bf16.msra.mxu0 %v3031_v9  ;;  %v2995_v5 = vpack.c.bf16 %v466_v2, %v458_v0  ;;  %v482_v9 = vld [vmem:[#allocation9 + $0x170] sm:$0xff]  ;;  %v1248_v2 = vld [vmem:[#allocation12 + $0xd0] sm:$0xff] }
 0x28f   :  { %3034 = vmatprep.subr.bf16.mxu0 %v3033_v10  ;;  %v491_v10 = vld [vmem:[#allocation9 + $0x1b8] sm:$0xff]  ;;  %v2999_v12 = vpack.c.bf16 %v482_v9, %v474_v8  ;;  %v1256_v8 = vld [vmem:[#allocation12 + $0x110] sm:$0xff]  ;;  %v1265_v9 = vld [vmem:[#allocation12 + $0x158] sm:$0xff] }
 0x290   :  { %2944 = vmatpush1.bf16.msra.mxu1 %v2943_v13  ;;  %v3001_v13 = vpack.c.bf16 %v499_v11, %v491_v10  ;;  %v1269_v10 = vld [vmem:[#allocation12 + $0x178] sm:$0xff] }
 0x291   :  { %2946 = vmatprep.subr.bf16.mxu1 %v2945_v16  ;;  %v507_v16 = vld [vmem:[#allocation9 + $0x238] sm:$0xff] }
 0x292   :  { %3036 = vmatpush1.bf16.msra.mxu0 %v3035_v21  ;;  %v3005_v19 = vpack.c.bf16 %v515_v17, %v507_v16  ;;  %v514_v21 = vld [vmem:[#allocation9 + $0x270] sm:$0xff] }
 0x293   :  { %3038 = vmatprep.subr.bf16.mxu0 %v3037_v22  ;;  %v523_v22 = vld [vmem:[#allocation9 + $0x2b8] sm:$0xff]  ;;  %v3007_v24 = vpack.c.bf16 %v514_v21, %v506_v20  ;;  %v1278_v16 = vld [vmem:[#allocation12 + $0x1c0] sm:$0xff]  ;;  %v1276_v20 = vld [vmem:[#allocation12 + $0x1b0] sm:$0xff] }
 0x294   :  { %2948 = vmatpush1.bf16.msra.mxu1 %v2947_v25  ;;  %v3009_v25 = vpack.c.bf16 %v531_v23, %v523_v22  ;;  %v1282_v17 = vld [vmem:[#allocation12 + $0x1e0] sm:$0xff]  ;;  %v1281_v22 = vld [vmem:[#allocation12 + $0x1d8] sm:$0xff] }
 0x295   :  { %2950 = vmatprep.subr.bf16.mxu1 %v2949_v29  ;;  %v539_v29 = vld [vmem:[#allocation9 + $0x338] sm:$0xff]  ;;  %v3051_v21 = vpack.c.bf16 %v1282_v17, %v1278_v16  ;;  %v1285_v23 = vld [vmem:[#allocation12 + $0x1f8] sm:$0xff]  ;;  %v1322_v16 = vld [vmem:[#allocation12 + $0x320] sm:$0xff] }
 0x296   :  { %3040 = vmatpush1.bf16.msra.mxu0 %v3039_v34  ;;  %v3013_v32 = vpack.c.bf16 %v547_v30, %v539_v29  ;;  %v546_v34 = vld [vmem:[#allocation9 + $0x370] sm:$0xff]  ;;  %v3305_v29 = vpack.c.bf16 %v1285_v23, %v1281_v22  ;;  %v1280_v30 = vld [vmem:[#allocation12 + $0x1d0] sm:$0xff]  ;;  %v1321_v17 = vld [vmem:[#allocation12 + $0x318] sm:$0xff] }
 0x297   :  { %3042 = vmatprep.subr.bf16.mxu0 %v3041_v35  ;;  %v555_v35 = vld [vmem:[#allocation9 + $0x3b8] sm:$0xff]  ;;  %v3015_v37 = vpack.c.bf16 %v546_v34, %v538_v33  ;;  %v1289_v33 = vld [vmem:[#allocation12 + $0x218] sm:$0xff] }
 0x298   :  { %2952 = vmatpush1.bf16.msra.mxu1 %v2951_v39  ;;  %v3017_v39 = vpack.c.bf16 %v563_v36, %v555_v35  ;;  %v1293_v34 = vld [vmem:[#allocation12 + $0x238] sm:$0xff]  ;;  %v1295_v36 = vld [vmem:[#allocation12 + $0x248] sm:$0xff] }
 0x299   :  { %2954 = vmatprep.subr.bf16.mxu1 %v2953_v42  ;;  %v1225_v42 = vld [vmem:[#allocation12 + $0x18] sm:$0xff]  ;;  %v1327_v22 = vld [vmem:[#allocation12 + $0x348] sm:$0xff] }
 0x29a   :  { %3044 = vmatpush1.bf16.msra.mxu0 %v3043_v47  ;;  %v3277_v45 = vpack.c.bf16 %v1229_v43, %v1225_v42  ;;  %v1228_v47 = vld [vmem:[#allocation12 + $0x30] sm:$0xff]  ;;  %v1298_v42 = vld [vmem:[#allocation12 + $0x260] sm:$0xff]  ;;  %v3309_v43 = vpack.c.bf16 %v1293_v34, %v1289_v33  ;;  %v1331_v23 = vld [vmem:[#allocation12 + $0x368] sm:$0xff] }
 0x29b   :  { %3046 = vmatprep.subr.bf16.mxu0 %v3045_v48  ;;  %v1233_v48 = vld [vmem:[#allocation12 + $0x58] sm:$0xff]  ;;  %v3279_v50 = vpack.c.bf16 %v1228_v47, %v1224_v46  ;;  %v3059_v46 = vpack.c.bf16 %v1298_v42, %v1294_v41  ;;  %v1328_v33 = vld [vmem:[#allocation12 + $0x350] sm:$0xff]  ;;  %v1335_v34 = vld [vmem:[#allocation12 + $0x388] sm:$0xff] }
 0x29c   :  { %2956 = vmatpush1.bf16.msra.mxu1 %v2955_v52  ;;  %v3281_v52 = vpack.c.bf16 %v1237_v49, %v1233_v48  ;;  %v1297_v47 = vld [vmem:[#allocation12 + $0x258] sm:$0xff]  ;;  %v1303_v49 = vld [vmem:[#allocation12 + $0x288] sm:$0xff]  ;;  %v1338_v41 = vld [vmem:[#allocation12 + $0x3a0] sm:$0xff] }
 0x29d   :  { %2990 = vmatprep.subr.bf16.mxu1 %v2989_v55  ;;  %v1241_v55 = vld [vmem:[#allocation12 + $0x98] sm:$0xff] }
 0x29e   :  { %3048 = vmatpush1.bf16.msra.mxu0 %v3047_v60  ;;  %v3285_v58 = vpack.c.bf16 %v1245_v56, %v1241_v55  ;;  %v1244_v60 = vld [vmem:[#allocation12 + $0xb0] sm:$0xff]  ;;  %v1301_v48 = vld [vmem:[#allocation12 + $0x278] sm:$0xff] }
 0x29f   :  { %718 = vmatmul.mubr.f32.vlgmr.msra.gmra.mrb[16].mxu1 %v4225_v27  ;;  %3050 = vmatprep.subr.bf16.mxu0 %v3049_v61  ;;  %v1249_v61 = vld [vmem:[#allocation12 + $0xd8] sm:$0xff]  ;;  %v3313_v55 = vpack.c.bf16 %v1301_v48, %v1297_v47  ;;  %v1300_v56 = vld [vmem:[#allocation12 + $0x270] sm:$0xff]  ;;  %v1343_v47 = vld [vmem:[#allocation12 + $0x3c8] sm:$0xff] }
 0x2a0   :  { %2992 = vmatpush1.bf16.msra.mxu1 %v2991_v62  ;;  %723 = vmatprep.mubr.f32.mxu1 %v4000_v6  ;;  %v1253_v62 = vld [vmem:[#allocation12 + $0xf8] sm:$0xff]  ;;  %v1347_v48 = vld [vmem:[#allocation12 + $0x3e8] sm:$0xff] }
 0x2a1   :  { %2994 = vmatprep.subr.bf16.mxu1 %v2993_v63  ;;  %v3287_v63 = vpack.c.bf16 %v1244_v60, %v1240_v59  ;;  %v3289_v0 = vpack.c.bf16 %v1253_v62, %v1249_v61  ;;  %v1305_v59 = vld [vmem:[#allocation12 + $0x298] sm:$0xff]  ;;  %v3315_v62 = vpack.c.bf16 %v1300_v56, %v1296_v53  ;;  %v1342_v53 = vld [vmem:[#allocation12 + $0x3c0] sm:$0xff] }
 0x2a2   :  { %3052 = vmatpush1.bf16.msra.mxu0 %v3051_v21  ;;  %v1309_v60 = vld [vmem:[#allocation12 + $0x2b8] sm:$0xff]  ;;  %v1320_v21 = vld [vmem:[#allocation12 + $0x310] sm:$0xff] }
 0x2a3   :  { %724 = vmatmul.mubr.f32.gmra.mrb[18].mxu1 %v4230_v38  ;;  %v1337_v42 = vld [vmem:[#allocation12 + $0x398] sm:$0xff] }
 0x2a4   :  { %2996 = vmatpush1.bf16.msra.mxu1 %v2995_v5  ;;  %729 = vmatprep.mubr.f32.mxu1 %v4000_v6  ;;  %v1349_v56 = vld [vmem:[#allocation12 + $0x3f8] sm:$0xff] }
 0x2a5   :  { %2998 = vmatprep.subr.bf16.mxu1 %v2997_v7  ;;  %v3293_v7 = vpack.c.bf16 %v1261_v4, %v1257_v3  ;;  %v1308_v3 = vld [vmem:[#allocation12 + $0x2b0] sm:$0xff] }
 0x2a7   :  { %730 = vmatmul.mubr.f32.gmra.mrb[20].mxu1 %v4236_v51 }
 0x2a8   :  { %3000 = vmatpush1.bf16.msra.mxu1 %v2999_v12  ;;  %735 = vmatprep.mubr.f32.mxu1 %v4000_v6  ;;  %v3297_v12 = vpack.c.bf16 %v1269_v10, %v1265_v9 }
 0x2a9   :  { %3002 = vmatprep.subr.bf16.mxu1 %v3001_v13  ;;  %v1264_v13 = vld [vmem:[#allocation12 + $0x150] sm:$0xff] }
 0x2ab   :  { %736 = vmatmul.mubr.f32.gmra.mrb[22].mxu1 %v4242_v1 }
 0x2ac   :  { %3004 = vmatpush1.bf16.msra.mxu1 %v3003_v18  ;;  %895 = vmatprep.mubr.f32.mxu1 %v4000_v6 }
 0x2ad   :  { %3006 = vmatprep.subr.bf16.mxu1 %v3005_v19  ;;  %v1272_v19 = vld [vmem:[#allocation12 + $0x190] sm:$0xff] }
 0x2b0   :  { %3008 = vmatpush1.bf16.msra.mxu1 %v3007_v24  ;;  %v1291_v24 = vld [vmem:[#allocation12 + $0x228] sm:$0xff] }
 0x2b1   :  { %3010 = vmatprep.subr.bf16.mxu1 %v3009_v25  ;;  %v3303_v25 = vpack.c.bf16 %v1276_v20, %v1272_v19 }
 0x2b4   :  { %3012 = vmatpush1.bf16.msra.mxu1 %v3011_v31  ;;  %v1284_v31 = vld [vmem:[#allocation12 + $0x1f0] sm:$0xff] }
 0x2b5   :  { %3014 = vmatprep.subr.bf16.mxu1 %v3013_v32  ;;  %v1290_v32 = vld [vmem:[#allocation12 + $0x220] sm:$0xff] }
 0x2b6   :  { %v3055_v35 = vpack.c.bf16 %v1290_v32, %v1286_v28  ;;  %v1330_v28 = vld [vmem:[#allocation12 + $0x360] sm:$0xff] }
 0x2b8   :  { %3016 = vmatpush1.bf16.msra.mxu1 %v3015_v37  ;;  %v1299_v37 = vld [vmem:[#allocation12 + $0x268] sm:$0xff] }
 0x2b9   :  { %3018 = vmatprep.subr.bf16.mxu1 %v3017_v39  ;;  %v3307_v39 = vpack.c.bf16 %v1284_v31, %v1280_v30  ;;  %v3057_v40 = vpack.c.bf16 %v1299_v37, %v1295_v36  ;;  %v1333_v30 = vld [vmem:[#allocation12 + $0x378] sm:$0xff]  ;;  %v1332_v37 = vld [vmem:[#allocation12 + $0x370] sm:$0xff] }
 0x2bc   :  { %3020 = vmatpush1.bf16.msra.mxu1 %v3019_v44  ;;  %v1288_v44 = vld [vmem:[#allocation12 + $0x210] sm:$0xff] }
 0x2bd   :  { %3278 = vmatprep.subr.bf16.mxu1 %v3277_v45  ;;  %v1292_v45 = vld [vmem:[#allocation12 + $0x230] sm:$0xff] }
 0x2bf   :  { %896 = vmatmul.mubr.f32.vlgmr.msra.gmra.mrb[24].mxu1 %v4225_v27  ;;  %v1252_v27 = vld [vmem:[#allocation12 + $0xf0] sm:$0xff] }
 0x2c0   :  { %901 = vmatprep.mubr.f32.mxu1 %v4000_v6  ;;  %3280 = vmatpush1.bf16.msra.mxu1 %v3279_v50  ;;  %v3291_v5 = vpack.c.bf16 %v1252_v27, %v1248_v2  ;;  %v1307_v50 = vld [vmem:[#allocation12 + $0x2a8] sm:$0xff]  ;;  %v3317_v27 = vpack.c.bf16 %v1309_v60, %v1305_v59 }
 0x2c1   :  { %3282 = vmatprep.subr.bf16.mxu1 %v3281_v52  ;;  %v3311_v52 = vpack.c.bf16 %v1292_v45, %v1288_v44  ;;  %v3061_v54 = vpack.c.bf16 %v1307_v50, %v1303_v49  ;;  %v1315_v2 = vld [vmem:[#allocation12 + $0x2e8] sm:$0xff]  ;;  %v3331_v45 = vpack.c.bf16 %v1332_v37, %v1328_v33  ;;  %v1340_v50 = vld [vmem:[#allocation12 + $0x3b0] sm:$0xff] }
 0x2c2   :  { %v1351_v59 = vld [vmem:[#allocation12 + $0x408] sm:$0xff] }
 0x2c3   :  { %902 = vmatmul.mubr.f32.gmra.mrb[26].mxu1 %v4230_v38  ;;  %v1260_v38 = vld [vmem:[#allocation12 + $0x130] sm:$0xff]  ;;  %v1355_v60 = vld [vmem:[#allocation12 + $0x428] sm:$0xff] }
 0x2c4   :  { %907 = vmatprep.mubr.f32.mxu1 %v4000_v6  ;;  %3284 = vmatpush1.bf16.msra.mxu1 %v3283_v57  ;;  %v3295_v11 = vpack.c.bf16 %v1260_v38, %v1256_v8  ;;  %v1302_v57 = vld [vmem:[#allocation12 + $0x280] sm:$0xff]  ;;  %v1313_v8 = vld [vmem:[#allocation12 + $0x2d8] sm:$0xff] }
 0x2c5   :  { %3286 = vmatprep.subr.bf16.mxu1 %v3285_v58  ;;  %v1306_v58 = vld [vmem:[#allocation12 + $0x2a0] sm:$0xff]  ;;  %v1317_v38 = vld [vmem:[#allocation12 + $0x2f8] sm:$0xff] }
 0x2c6   :  { %v3063_v61 = vpack.c.bf16 %v1306_v58, %v1302_v57 }
 0x2c7   :  { %908 = vmatmul.mubr.f32.gmra.mrb[28].mxu1 %v4236_v51  ;;  %v1277_v51 = vld [vmem:[#allocation12 + $0x1b8] sm:$0xff] }
 0x2c8   :  { %913 = vmatprep.mubr.f32.mxu1 %v4000_v6  ;;  %3288 = vmatpush1.bf16.msra.mxu1 %v3287_v63  ;;  %v3299_v6 = vpack.c.bf16 %v1268_v14, %v1264_v13  ;;  %v3301_v18 = vpack.c.bf16 %v1277_v51, %v1273_v15  ;;  %v1304_v63 = vld [vmem:[#allocation12 + $0x290] sm:$0xff]  ;;  %v1323_v13 = vld [vmem:[#allocation12 + $0x328] sm:$0xff]  ;;  %v3321_v14 = vpack.c.bf16 %v1317_v38, %v1313_v8 }
 0x2c9   :  { %3290 = vmatprep.subr.bf16.mxu1 %v3289_v0  ;;  %v1311_v0 = vld [vmem:[#allocation12 + $0x2c8] sm:$0xff]  ;;  %v3319_v10 = vpack.c.bf16 %v1308_v3, %v1304_v63  ;;  %v1316_v15 = vld [vmem:[#allocation12 + $0x2f0] sm:$0xff] }
 0x2ca   :  { %v3065_v4 = vpack.c.bf16 %v1315_v2, %v1311_v0  ;;  %v1348_v63 = vld [vmem:[#allocation12 + $0x3f0] sm:$0xff]  ;;  %v3085_v0 = vpack.c.bf16 %v1355_v60, %v1351_v59  ;;  %v1353_v2 = vld [vmem:[#allocation12 + $0x418] sm:$0xff] }
 0x2cb   :  { %914 = vmatmul.mubr.f32.gmra.mrb[30].mxu1 %v4242_v1  ;;  %v1287_v1 = vld [vmem:[#allocation12 + $0x208] sm:$0xff] }
 0x2cc   :  { %3292 = vmatpush1.bf16.msra.mxu1 %v3291_v5  ;;  %v3053_v26 = vpack.c.bf16 %v1291_v24, %v1287_v1  ;;  %v1310_v5 = vld [vmem:[#allocation12 + $0x2c0] sm:$0xff]  ;;  %v1324_v24 = vld [vmem:[#allocation12 + $0x330] sm:$0xff] }
 0x2cd   :  { %3294 = vmatprep.subr.bf16.mxu1 %v3293_v7  ;;  %v1314_v7 = vld [vmem:[#allocation12 + $0x2e0] sm:$0xff]  ;;  %v3327_v32 = vpack.c.bf16 %v1324_v24, %v1320_v21 }
 0x2ce   :  { %3054 = vmatprep.subr.bf16.mxu0 %v3053_v26  ;;  %v3067_v9 = vpack.c.bf16 %v1314_v7, %v1310_v5  ;;  %v1326_v26 = vld [vmem:[#allocation12 + $0x340] sm:$0xff]  ;;  %v922_v5 = vlaneseq }
 0x2cf   :  { %3056 = vmatpush1.bf16.msra.mxu0 %v3055_v35  ;;  %v3075_v31 = vpack.c.bf16 %v1330_v28, %v1326_v26  ;;  %v1339_v35 = vld [vmem:[#allocation12 + $0x3a8] sm:$0xff] }
 0x2d0   :  { %3296 = vmatpush1.bf16.msra.mxu1 %v3295_v11  ;;  %3058 = vmatprep.subr.bf16.mxu0 %v3057_v40  ;;  %v1312_v11 = vld [vmem:[#allocation12 + $0x2d0] sm:$0xff]  ;;  %v1334_v40 = vld [vmem:[#allocation12 + $0x380] sm:$0xff]  ;;  %v4263_v7 = vshrl.u32 %v922_v5, 7 }
 0x2d1   :  { %3298 = vmatprep.subr.bf16.mxu1 %v3297_v12  ;;  %v1319_v12 = vld [vmem:[#allocation12 + $0x308] sm:$0xff]  ;;  %v3323_v20 = vpack.c.bf16 %v1316_v15, %v1312_v11  ;;  %v3079_v44 = vpack.c.bf16 %v1338_v41, %v1334_v40 }
 0x2d2   :  { %v3069_v51 = vpack.c.bf16 %v1323_v13, %v1319_v12  ;;  %v4266_v8 = vsub.s32 0, %v4263_v7  ;;  %v940_v38 = vsub.s32 4, %v4263_v7  ;;  %v944_v11 = vsub.s32 5, %v4263_v7 }
 0x2d3   :  { %3060 = vmatpush1.bf16.msra.mxu0 %v3059_v46  ;;  %v1336_v46 = vld [vmem:[#allocation12 + $0x390] sm:$0xff] }
 0x2d4   :  { %3300 = vmatpush1.bf16.msra.mxu1 %v3299_v6  ;;  %3062 = vmatprep.subr.bf16.mxu0 %v3061_v54  ;;  %v1318_v6 = vld [vmem:[#allocation12 + $0x300] sm:$0xff]  ;;  %v3335_v58 = vpack.c.bf16 %v1340_v50, %v1336_v46 }
 0x2d5   :  { %3302 = vmatprep.subr.bf16.mxu1 %v3301_v18  ;;  %v1325_v18 = vld [vmem:[#allocation12 + $0x338] sm:$0xff]  ;;  %v3071_v19 = vpack.c.bf16 %v1322_v16, %v1318_v6  ;;  %v1346_v54 = vld [vmem:[#allocation12 + $0x3e0] sm:$0xff] }
 0x2d6   :  { %v3325_v1 = vpack.c.bf16 %v1325_v18, %v1321_v17  ;;  %v3083_v57 = vpack.c.bf16 %v1346_v54, %v1342_v53 }
 0x2d7   :  { %3064 = vmatpush1.bf16.msra.mxu0 %v3063_v61 }
 0x2d8   :  { %3304 = vmatpush1.bf16.msra.mxu1 %v3303_v25  ;;  %3066 = vmatprep.subr.bf16.mxu0 %v3065_v4  ;;  %v3073_v25 = vpack.c.bf16 %v1331_v23, %v1327_v22 }
 0x2d9   :  { %3306 = vmatprep.subr.bf16.mxu1 %v3305_v29  ;;  %v1329_v29 = vld [vmem:[#allocation12 + $0x358] sm:$0xff] }
 0x2da   :  { %v3329_v36 = vpack.c.bf16 %v1333_v30, %v1329_v29 }
 0x2db   :  { %3068 = vmatpush1.bf16.msra.mxu0 %v3067_v9  ;;  %v4269_v9 = vld [vmem:[#allocation10] ss:$2 sm:$0xff] }
 0x2dc   :  { %3308 = vmatpush1.bf16.msra.mxu1 %v3307_v39  ;;  %3070 = vmatprep.subr.bf16.mxu0 %v3069_v51  ;;  %v3077_v39 = vpack.c.bf16 %v1339_v35, %v1335_v34  ;;  %v925_v12 = vrot.slane %v4269_v9, %v4266_v8  ;;  %v941_v13 = vrot.slane %v4269_v9, %v940_v38 }
 0x2dd   :  { %3310 = vmatprep.subr.bf16.mxu1 %v3309_v43  ;;  %v1341_v43 = vld [vmem:[#allocation12 + $0x3b8] sm:$0xff]  ;;  %v4285_v51 = vrot.slane %v4269_v9, %v944_v11 }
 0x2de   :  { %v3333_v49 = vpack.c.bf16 %v1341_v43, %v1337_v42 }
 0x2df   :  { %3072 = vmatpush1.bf16.msra.mxu0 %v3071_v19 }
 0x2e0   :  { %3312 = vmatpush1.bf16.msra.mxu1 %v3311_v52  ;;  %3074 = vmatprep.subr.bf16.mxu0 %v3073_v25  ;;  %v3081_v52 = vpack.c.bf16 %v1347_v48, %v1343_v47 }
 0x2e1   :  { %3314 = vmatprep.subr.bf16.mxu1 %v3313_v55  ;;  %v1345_v55 = vld [vmem:[#allocation12 + $0x3d8] sm:$0xff] }
 0x2e2   :  { %v3337_v61 = vpack.c.bf16 %v1349_v56, %v1345_v55 }
 0x2e3   :  { %3076 = vmatpush1.bf16.msra.mxu0 %v3075_v31 }
 0x2e4   :  { %3316 = vmatpush1.bf16.msra.mxu1 %v3315_v62  ;;  %3078 = vmatprep.subr.bf16.mxu0 %v3077_v39  ;;  %v1344_v62 = vld [vmem:[#allocation12 + $0x3d0] sm:$0xff] }
 0x2e5   :  { %3318 = vmatprep.subr.bf16.mxu1 %v3317_v27  ;;  %v1357_v27 = vld [vmem:[#allocation12 + $0x438] sm:$0xff]  ;;  %v3339_v3 = vpack.c.bf16 %v1348_v63, %v1344_v62 }
 0x2e6   :  { %v3341_v4 = vpack.c.bf16 %v1357_v27, %v1353_v2 }
 0x2e7   :  { %3080 = vmatpush1.bf16.msra.mxu0 %v3079_v44 }
 0x2e8   :  { %3320 = vmatpush1.bf16.msra.mxu1 %v3319_v10  ;;  %3082 = vmatprep.subr.bf16.mxu0 %v3081_v52  ;;  %v4272_v10 = vsub.s32 1, %v4263_v7 }
 0x2e9   :  { %3322 = vmatprep.subr.bf16.mxu1 %v3321_v14  ;;  %v4278_v14 = vld [vmem:[#allocation10 + $0x1] ss:$2 sm:$0xff] }
 0x2ea   :  { %v4282_v15 = vrot.slane %v4269_v9, %v4272_v10  ;;  %v1000_v18 = vrot.slane %v4278_v14, %v4266_v8  ;;  %v1020_v25 = vrot.slane %v4278_v14, %v944_v11 }
 0x2eb   :  { %3084 = vmatpush1.bf16.msra.mxu0 %v3083_v57 }
 0x2ec   :  { %3324 = vmatpush1.bf16.msra.mxu1 %v3323_v20  ;;  %3086 = vmatprep.subr.bf16.mxu0 %v3085_v0  ;;  %v1016_v20 = vrot.slane %v4278_v14, %v940_v38 }
 0x2ed   :  { %3326 = vmatprep.subr.bf16.mxu1 %v3325_v1  ;;  %v1004_v1 = vrot.slane %v4278_v14, %v4272_v10 }
 0x2f0   :  { %3328 = vmatpush1.bf16.msra.mxu1 %v3327_v32 }
 0x2f1   :  { %3330 = vmatprep.subr.bf16.mxu1 %v3329_v36 }
 0x2f4   :  { %3332 = vmatpush1.bf16.msra.mxu1 %v3331_v45 }
 0x2f5   :  { %3334 = vmatprep.subr.bf16.mxu1 %v3333_v49 }
 0x2f8   :  { %3336 = vmatpush1.bf16.msra.mxu1 %v3335_v58 }
 0x2f9   :  { %3338 = vmatprep.subr.bf16.mxu1 %v3337_v61 }
 0x2fc   :  { %3340 = vmatpush1.bf16.msra.mxu1 %v3339_v3 }
 0x2fd   :  { %3342 = vmatprep.subr.bf16.mxu1 %v3341_v4 }
 0x352   :  { %v630_v6 = vpop.f32.mrb[8].mxu1  ;;  %v808_v16 = vpop.f32.mrb[0].mxu0 }
 0x353   :  { %v962_v17 = vmul.f32 %v925_v12, %v630_v6  ;;  %v966_v19 = vmul.f32 %v941_v13, %v808_v16  ;;  %v632_v21 = vpop.f32.mrb[9].mxu1  ;;  %v810_v22 = vpop.f32.mrb[1].mxu0 }
 0x354   :  { %v963_v23 = vmul.f32 %v4282_v15, %v632_v21  ;;  %v967_v24 = vmul.f32 %v4285_v51, %v810_v22 }
 0x355   :  { %v1037_v29 = vadd.f32 %v1000_v18, %v962_v17  ;;  %v1041_v30 = vadd.f32 %v1016_v20, %v966_v19 }
 0x356   :  { %v636_v26 = vpop.f32.mrb[10].mxu1  ;;  %v814_v28 = vpop.f32.mrb[2].mxu0  ;;  %v1038_v35 = vadd.f32 %v1004_v1, %v963_v23  ;;  %v1042_v36 = vadd.f32 %v1020_v25, %v967_v24 }
 0x357   :  { %v970_v31 = vmul.f32 %v925_v12, %v636_v26  ;;  %v974_v32 = vmul.f32 %v941_v13, %v814_v28  ;;  %v638_v33 = vpop.f32.mrb[11].mxu1  ;;  %v816_v34 = vpop.f32.mrb[3].mxu0  ;;  %v1069_v46 = vmax.f32 %v1037_v29, 0.0  ;;  %v1073_v47 = vmax.f32 %v1041_v30, 0.0 }
 0x358   :  { %v971_v37 = vmul.f32 %v4282_v15, %v638_v33  ;;  %v975_v39 = vmul.f32 %v4285_v51, %v816_v34  ;;  %v1070_v53 = vmax.f32 %v1038_v35, 0.0  ;;  %v1074_v54 = vmax.f32 %v1042_v36, 0.0 }
 0x359   :  { %v1045_v40 = vadd.f32 %v1000_v18, %v970_v31  ;;  %v1049_v41 = vadd.f32 %v1016_v20, %v974_v32 }
 0x35a   :  { %v1046_v42 = vadd.f32 %v1004_v1, %v971_v37  ;;  %v1050_v43 = vadd.f32 %v1020_v25, %v975_v39  ;;  %v642_v44 = vpop.f32.mrb[12].mxu1  ;;  %v820_v45 = vpop.f32.mrb[4].mxu0 }
 0x35b   :  { %v1077_v48 = vmax.f32 %v1045_v40, 0.0  ;;  %v1081_v49 = vmax.f32 %v1049_v41, 0.0  ;;  %v644_v50 = vpop.f32.mrb[13].mxu1  ;;  %v822_v52 = vpop.f32.mrb[5].mxu0  ;;  %v978_v59 = vmul.f32 %v925_v12, %v642_v44  ;;  %v982_v60 = vmul.f32 %v941_v13, %v820_v45 }
 0x35c   :  { %v1078_v55 = vmax.f32 %v1046_v42, 0.0  ;;  %v1082_v56 = vmax.f32 %v1050_v43, 0.0  ;;  %v979_v63 = vmul.f32 %v4282_v15, %v644_v50  ;;  %v983_v0 = vmul.f32 %v4285_v51, %v822_v52 }
 0x35d   :  { %v1101_v57 = vmax.f32 %v1069_v46, %v1077_v48  ;;  %v1129_v58 = vmax.f32 %v1073_v47, %v1081_v49  ;;  %v1053_v6 = vadd.f32 %v1000_v18, %v978_v59  ;;  %v1057_v16 = vadd.f32 %v1016_v20, %v982_v60 }
 0x35e   :  { %v1108_v61 = vmax.f32 %v1070_v53, %v1078_v55  ;;  %v1136_v62 = vmax.f32 %v1074_v54, %v1082_v56  ;;  %v648_v2 = vpop.f32.mrb[14].mxu1  ;;  %v826_v27 = vpop.f32.mrb[6].mxu0  ;;  %v1054_v21 = vadd.f32 %v1004_v1, %v979_v63  ;;  %v1058_v22 = vadd.f32 %v1020_v25, %v983_v0 }
 0x35f   :  { %v1102_v3 = vrot.slane %v1101_v57, 4  ;;  %v650_v4 = vpop.f32.mrb[15].mxu1  ;;  %v828_v5 = vpop.f32.mrb[7].mxu0  ;;  %v986_v17 = vmul.f32 %v925_v12, %v648_v2  ;;  %v990_v19 = vmul.f32 %v941_v13, %v826_v27  ;;  %v1130_v31 = vrot.slane %v1129_v58, 4 }
 0x360   :  { %v1109_v38 = vrot.slane %v1108_v61, 4  ;;  %v1137_v11 = vrot.slane %v1136_v62, 4  ;;  %v987_v23 = vmul.f32 %v4282_v15, %v650_v4  ;;  %v991_v24 = vmul.f32 %v4285_v51, %v828_v5  ;;  %v1354_v4 = vld [vmem:[#allocation12 + $0x420] sm:$0xff] }
 0x361   :  { %v1103_v26 = vmax.f32 %v1101_v57, %v1102_v3  ;;  %v1061_v29 = vadd.f32 %v1000_v18, %v986_v17  ;;  %v1065_v30 = vadd.f32 %v1016_v20, %v990_v19  ;;  %v1085_v35 = vmax.f32 %v1053_v6, 0.0  ;;  %v1350_v3 = vld [vmem:[#allocation12 + $0x400] sm:$0xff] }
 0x362   :  { %v1110_v28 = vmax.f32 %v1108_v61, %v1109_v38  ;;  %v1138_v32 = vmax.f32 %v1136_v62, %v1137_v11  ;;  %v1062_v33 = vadd.f32 %v1004_v1, %v987_v23  ;;  %v1066_v34 = vadd.f32 %v1020_v25, %v991_v24 }
 0x363   :  { %v1089_v36 = vmax.f32 %v1057_v16, 0.0  ;;  %v1093_v37 = vmax.f32 %v1061_v29, 0.0  ;;  %v1097_v39 = vmax.f32 %v1065_v30, 0.0  ;;  %v1086_v12 = vmax.f32 %v1054_v21, 0.0  ;;  %v1352_v21 = vld [vmem:[#allocation12 + $0x410] sm:$0xff]  ;;  %v1359_v29 = vld [vmem:[#allocation12 + $0x448] sm:$0xff] }
 0x364   :  { %v1090_v13 = vmax.f32 %v1058_v22, 0.0  ;;  %v1094_v40 = vmax.f32 %v1062_v33, 0.0  ;;  %v1098_v41 = vmax.f32 %v1066_v34, 0.0  ;;  %v1104_v42 = vrot.slane %v1103_v26, 2  ;;  %v1363_v30 = vld [vmem:[#allocation12 + $0x468] sm:$0xff] }
 0x365   :  { %v1111_v15 = vrot.slane %v1110_v28, 2  ;;  %v1157_v43 = vmax.f32 %v1085_v35, %v1093_v37  ;;  %v1185_v51 = vmax.f32 %v1089_v36, %v1097_v39  ;;  %v1139_v44 = vrot.slane %v1138_v32, 2  ;;  %v1361_v37 = vld [vmem:[#allocation12 + $0x458] sm:$0xff] }
 0x366   :  { %v1164_v45 = vmax.f32 %v1086_v12, %v1094_v40  ;;  %v1192_v18 = vmax.f32 %v1090_v13, %v1098_v41  ;;  %v1131_v47 = vmax.f32 %v1129_v58, %v1130_v31  ;;  %v4302_v48 = vsub.s32 2, %v4263_v7  ;;  %v1365_v39 = vld [vmem:[#allocation12 + $0x478] sm:$0xff] }
 0x367   :  { %v1158_v20 = vrot.slane %v1157_v43, 4  ;;  %v1186_v46 = vrot.slane %v1185_v51, 4  ;;  %v1105_v49 = vmax.f32 %v1103_v26, %v1104_v42  ;;  %v1112_v52 = vmax.f32 %v1110_v28, %v1111_v15  ;;  %v1356_v28 = vld [vmem:[#allocation12 + $0x430] sm:$0xff] }
 0x368   :  { %v1165_v1 = vrot.slane %v1164_v45, 4  ;;  %v1193_v25 = vrot.slane %v1192_v18, 4  ;;  %v4305_v55 = vsub.s32 3, %v4263_v7  ;;  %v1140_v56 = vmax.f32 %v1138_v32, %v1139_v44  ;;  %v1358_v44 = vld [vmem:[#allocation12 + $0x440] sm:$0xff] }
 0x369   :  { %v1159_v50 = vmax.f32 %v1157_v43, %v1158_v20  ;;  %v1187_v59 = vmax.f32 %v1185_v51, %v1186_v46  ;;  %v1132_v60 = vrot.slane %v1131_v47, 2  ;;  %v4309_v58 = vrot.slane %v4269_v9, %v4302_v48 }
 0x36a   :  { %v1166_v53 = vmax.f32 %v1164_v45, %v1165_v1  ;;  %v1194_v54 = vmax.f32 %v1192_v18, %v1193_v25  ;;  %v1106_v63 = vrot.slane %v1105_v49, 1  ;;  %v4313_v2 = vrot.slane %v4278_v14, %v4302_v48  ;;  %v1362_v45 = vld [vmem:[#allocation12 + $0x460] sm:$0xff]  ;;  %v1360_v1 = vld [vmem:[#allocation12 + $0x450] sm:$0xff] }
 0x36b   :  { %v1160_v57 = vrot.slane %v1159_v50, 2  ;;  %v1113_v27 = vrot.slane %v1112_v52, 1  ;;  %v4317_v5 = vrot.slane %v4269_v9, %v4305_v55  ;;  %v1141_v11 = vrot.slane %v1140_v56, 1  ;;  %v1364_v25 = vld [vmem:[#allocation12 + $0x470] sm:$0xff] }
 0x36c   :  { %v1167_v61 = vrot.slane %v1166_v53, 2  ;;  %v1195_v62 = vrot.slane %v1194_v54, 2  ;;  %v1188_v17 = vrot.slane %v1187_v59, 2  ;;  %v4321_v19 = vrot.slane %v4278_v14, %v4305_v55 }
 0x36d   :  { %v1161_v0 = vmax.f32 %v1159_v50, %v1160_v57  ;;  %v4323_v22 = vmax.f32 %v1131_v47, %v1132_v60  ;;  %v3087_v26 = vpack.c.bf16 %v1354_v4, %v1350_v3  ;;  %v1114_v34 = vmax.f32 %v1112_v52, %v1113_v27  ;;  %v1373_v57 = vld [vmem:[#allocation12 + $0x4b8] sm:$0xff]  ;;  %v1366_v27 = vld [vmem:[#allocation12 + $0x480] sm:$0xff] }
 0x36e   :  { %v1168_v38 = vmax.f32 %v1166_v53, %v1167_v61  ;;  %v1196_v6 = vmax.f32 %v1194_v54, %v1195_v62  ;;  %v1107_v35 = vmax.f32 %v1105_v49, %v1106_v63  ;;  %v1142_v40 = vmax.f32 %v1140_v56, %v1141_v11  ;;  %v1367_v49 = vld [vmem:[#allocation12 + $0x488] sm:$0xff]  ;;  %v1369_v56 = vld [vmem:[#allocation12 + $0x498] sm:$0xff]  ;;  %v1370_v3 = vld [vmem:[#allocation12 + $0x4a0] sm:$0xff] }
 0x36f   :  { %v1162_v16 = vrot.slane %v1161_v0, 1  ;;  %v1189_v42 = vmax.f32 %v1187_v59, %v1188_v17  ;;  %v3343_v43 = vpack.c.bf16 %v1356_v28, %v1352_v21  ;;  %v3089_v51 = vpack.c.bf16 %v1363_v30, %v1359_v29  ;;  %v1371_v54 = vld [vmem:[#allocation12 + $0x4a8] sm:$0xff]  ;;  %v1368_v21 = vld [vmem:[#allocation12 + $0x490] sm:$0xff] }
 0x370   :  { %v1169_v24 = vrot.slane %v1168_v38, 1  ;;  %v1197_v31 = vrot.slane %v1196_v6, 1  ;;  %v3345_v47 = vpack.c.bf16 %v1365_v39, %v1361_v37  ;;  %v1134_v61 = vrot.slane %v4323_v22, 1  ;;  %v1379_v30 = vld [vmem:[#allocation12 + $0x4e8] sm:$0xff] }
 0x371   :  { %v1163_v36 = vmax.f32 %v1161_v0, %v1162_v16  ;;  %v3091_v63 = vpack.c.bf16 %v1362_v45, %v1358_v44  ;;  %v3347_v0 = vpack.c.bf16 %v1364_v25, %v1360_v1  ;;  %v1190_v4 = vrot.slane %v1189_v42, 1 }
 0x372   :  { %v719_v23 = vpop.f32.mrb[16].mxu1  ;;  %v1170_v13 = vmax.f32 %v1168_v38, %v1169_v24  ;;  %v1198_v41 = vmax.f32 %v1196_v6, %v1197_v31  ;;  %v3093_v16 = vpack.c.bf16 %v1371_v54, %v1367_v49  ;;  %v3349_v17 = vpack.c.bf16 %v1373_v57, %v1369_v56  ;;  %v1375_v24 = vld [vmem:[#allocation12 + $0x4c8] sm:$0xff]  ;;  %v1377_v31 = vld [vmem:[#allocation12 + $0x4d8] sm:$0xff] }
 0x373   :  { %v964_v32 = vmul.f32 %v4309_v58, %v719_v23  ;;  %v721_v33 = vpop.f32.mrb[17].mxu1  ;;  %v1214_v15 = vsel %vm1213_vm3, %v1107_v35, %v1163_v36  ;;  %v1372_v23 = vld [vmem:[#allocation12 + $0x4b0] sm:$0xff]  ;;  %v3095_v39 = vpack.c.bf16 %v1370_v3, %v1366_v27 }
 0x374   :  { %v965_v12 = vmul.f32 %v4317_v5, %v721_v33  ;;  %v1215_v46 = vsel %vm1213_vm3, %v1114_v34, %v1170_v13  ;;  %v4331_v50 = vsel %vm1213_vm3, %v1142_v40, %v1198_v41  ;;  %v1135_v33 = vmax.f32 %v4323_v22, %v1134_v61  ;;  %v1378_v13 = vld [vmem:[#allocation12 + $0x4e0] sm:$0xff] }
 0x375   :  { %v1039_v18 = vadd.f32 %v4313_v2, %v964_v32  ;;  %1798 = vmatprep.mubr.f32.mxu0 %v1215_v46  ;;  %2082 = vmatprep.mubr.f32.mxu1 %v1215_v46  ;;  %v1381_v32 = vld [vmem:[#allocation12 + $0x4f8] sm:$0xff]  ;;  %v1191_v34 = vmax.f32 %v1189_v42, %v1190_v4  ;;  %v3351_v41 = vpack.c.bf16 %v1372_v23, %v1368_v21  ;;  %v1384_v4 = vld [vmem:[#allocation12 + $0x510] sm:$0xff] }
 0x376   :  { %v725_v20 = vpop.f32.mrb[18].mxu1  ;;  %v1040_v59 = vadd.f32 %v4321_v19, %v965_v12  ;;  %1799 = vmatmul.mubr.f32.vlgmr.msra.gmra.mrb[8].mxu0 %v1214_v15  ;;  %2083 = vmatmul.mubr.f32.vlgmr.msra.gmra.mrb[32].mxu1 %v1214_v15  ;;  %v1374_v12 = vld [vmem:[#allocation12 + $0x4c0] sm:$0xff]  ;;  %v1376_v15 = vld [vmem:[#allocation12 + $0x4d0] sm:$0xff]  ;;  %v3097_v22 = vpack.c.bf16 %v1379_v30, %v1375_v24  ;;  %v3353_v42 = vpack.c.bf16 %v1381_v32, %v1377_v31  ;;  %v1397_v21 = vld [vmem:[#allocation12 + $0x578] sm:$0xff] }
 0x377   :  { %v972_v52 = vmul.f32 %v4309_v58, %v725_v20  ;;  %v727_v53 = vpop.f32.mrb[19].mxu1  ;;  %3088 = vmatpush1.bf16.msra.mxu0 %v3087_v26  ;;  %3344 = vmatpush1.bf16.msra.mxu1 %v3343_v43  ;;  %v1071_v38 = vmax.f32 %v1039_v18, 0.0  ;;  %v1380_v43 = vld [vmem:[#allocation12 + $0x4f0] sm:$0xff]  ;;  %v1383_v18 = vld [vmem:[#allocation12 + $0x508] sm:$0xff]  ;;  %v3099_v49 = vpack.c.bf16 %v1378_v13, %v1374_v12  ;;  %v1390_v24 = vld [vmem:[#allocation12 + $0x540] sm:$0xff] }
 0x378   :  { %v973_v60 = vmul.f32 %v4317_v5, %v727_v53  ;;  %3090 = vmatprep.subr.bf16.mxu0 %v3089_v51  ;;  %3346 = vmatprep.subr.bf16.mxu1 %v3345_v47  ;;  %v1072_v35 = vmax.f32 %v1040_v59, 0.0  ;;  %v4343_v51 = vsel %vm1213_vm3, %v1135_v33, %v1191_v34  ;;  %v1387_v20 = vld [vmem:[#allocation12 + $0x528] sm:$0xff]  ;;  %v1389_v53 = vld [vmem:[#allocation12 + $0x538] sm:$0xff]  ;;  %v3355_v59 = vpack.c.bf16 %v1380_v43, %v1376_v15  ;;  %v1394_v30 = vld [vmem:[#allocation12 + $0x560] sm:$0xff] }
 0x379   :  { %v1047_v62 = vadd.f32 %v4313_v2, %v972_v52  ;;  %v1385_v52 = vld [vmem:[#allocation12 + $0x518] sm:$0xff]  ;;  %v1392_v31 = vld [vmem:[#allocation12 + $0x550] sm:$0xff]  ;;  %v3107_v15 = vpack.c.bf16 %v1394_v30, %v1390_v24  ;;  %v1419_v24 = vld [vmem:[#allocation12 + $0x628] sm:$0xff] }
 0x37a   :  { %v1048_v11 = vadd.f32 %v4321_v19, %v973_v60  ;;  %v731_v6 = vpop.f32.mrb[20].mxu1  ;;  %v3357_v3 = vpack.c.bf16 %v1389_v53, %v1385_v52  ;;  %v1396_v32 = vld [vmem:[#allocation12 + $0x570] sm:$0xff]  ;;  %v1401_v13 = vld [vmem:[#allocation12 + $0x598] sm:$0xff]  ;;  %v948_v53 = vsub.s32 6, %v4263_v7  ;;  %v1418_v30 = vld [vmem:[#allocation12 + $0x620] sm:$0xff] }
 0x37b   :  { %v1079_v28 = vmax.f32 %v1047_v62, 0.0  ;;  %v980_v26 = vmul.f32 %v4309_v58, %v731_v6  ;;  %v733_v29 = vpop.f32.mrb[21].mxu1  ;;  %3092 = vmatpush1.bf16.msra.mxu0 %v3091_v63  ;;  %3348 = vmatpush1.bf16.msra.mxu1 %v3347_v0  ;;  %v3101_v62 = vpack.c.bf16 %v1387_v20, %v1383_v18  ;;  %v1382_v63 = vld [vmem:[#allocation12 + $0x500] sm:$0xff]  ;;  %v3363_v43 = vpack.c.bf16 %v1396_v32, %v1392_v31 }
 0x37c   :  { %v1080_v36 = vmax.f32 %v1048_v11, 0.0  ;;  %v981_v37 = vmul.f32 %v4317_v5, %v733_v29  ;;  %3094 = vmatprep.subr.bf16.mxu0 %v3093_v16  ;;  %3350 = vmatprep.subr.bf16.mxu1 %v3349_v17  ;;  %v1386_v0 = vld [vmem:[#allocation12 + $0x520] sm:$0xff]  ;;  %v1391_v11 = vld [vmem:[#allocation12 + $0x548] sm:$0xff]  ;;  %v1393_v17 = vld [vmem:[#allocation12 + $0x558] sm:$0xff] }
 0x37d   :  { %v1115_v40 = vmax.f32 %v1071_v38, %v1079_v28  ;;  %v1055_v47 = vadd.f32 %v4313_v2, %v980_v26  ;;  %v1388_v38 = vld [vmem:[#allocation12 + $0x530] sm:$0xff]  ;;  %v1395_v16 = vld [vmem:[#allocation12 + $0x568] sm:$0xff]  ;;  %v3103_v29 = vpack.c.bf16 %v1386_v0, %v1382_v63  ;;  %v1402_v18 = vld [vmem:[#allocation12 + $0x5a0] sm:$0xff] }
 0x37e   :  { %v1122_v44 = vmax.f32 %v1072_v35, %v1080_v36  ;;  %v737_v45 = vpop.f32.mrb[22].mxu1  ;;  %v1056_v56 = vadd.f32 %v4321_v19, %v981_v37  ;;  %v3105_v35 = vpack.c.bf16 %v1395_v16, %v1391_v11  ;;  %v3361_v36 = vpack.c.bf16 %v1397_v21, %v1393_v17  ;;  %v1399_v37 = vld [vmem:[#allocation12 + $0x588] sm:$0xff]  ;;  %v1406_v0 = vld [vmem:[#allocation12 + $0x5c0] sm:$0xff]  ;;  %v1412_v11 = vld [vmem:[#allocation12 + $0x5f0] sm:$0xff] }
 0x37f   :  { %v1116_v46 = vrot.slane %v1115_v40, 4  ;;  %v988_v1 = vmul.f32 %v4309_v58, %v737_v45  ;;  %v739_v25 = vpop.f32.mrb[23].mxu1  ;;  %3096 = vmatpush1.bf16.msra.mxu0 %v3095_v39  ;;  %3352 = vmatpush1.bf16.msra.mxu1 %v3351_v41  ;;  %v1087_v6 = vmax.f32 %v1055_v47, 0.0  ;;  %v1403_v39 = vld [vmem:[#allocation12 + $0x5a8] sm:$0xff]  ;;  %v1400_v47 = vld [vmem:[#allocation12 + $0x590] sm:$0xff]  ;;  %v4354_v16 = vrot.slane %v4269_v9, %v948_v53 }
 0x380   :  { %v1123_v54 = vrot.slane %v1122_v44, 4  ;;  %v989_v57 = vmul.f32 %v4317_v5, %v739_v25  ;;  %3098 = vmatprep.subr.bf16.mxu0 %v3097_v22  ;;  %3354 = vmatprep.subr.bf16.mxu1 %v3353_v42  ;;  %v3109_v22 = vpack.c.bf16 %v1403_v39, %v1399_v37  ;;  %v1398_v42 = vld [vmem:[#allocation12 + $0x580] sm:$0xff]  ;;  %v1407_v25 = vld [vmem:[#allocation12 + $0x5c8] sm:$0xff]  ;;  %v1420_v37 = vld [vmem:[#allocation12 + $0x630] sm:$0xff] }
 0x381   :  { %v1117_v60 = vmax.f32 %v1115_v40, %v1116_v46  ;;  %v1063_v61 = vadd.f32 %v4313_v2, %v988_v1  ;;  %v1088_v2 = vmax.f32 %v1056_v56, 0.0  ;;  %v1405_v40 = vld [vmem:[#allocation12 + $0x5b8] sm:$0xff]  ;;  %v1404_v1 = vld [vmem:[#allocation12 + $0x5b0] sm:$0xff]  ;;  %v1423_v39 = vld [vmem:[#allocation12 + $0x648] sm:$0xff] }
 0x382   :  { %v1124_v27 = vmax.f32 %v1122_v44, %v1123_v54  ;;  %v1064_v58 = vadd.f32 %v4321_v19, %v989_v57  ;;  %v3359_v19 = vpack.c.bf16 %v1388_v38, %v1384_v4  ;;  %v3365_v46 = vpack.c.bf16 %v1405_v40, %v1401_v13  ;;  %v1411_v54 = vld [vmem:[#allocation12 + $0x5e8] sm:$0xff]  ;;  %v1409_v56 = vld [vmem:[#allocation12 + $0x5d8] sm:$0xff]  ;;  %v1408_v38 = vld [vmem:[#allocation12 + $0x5d0] sm:$0xff] }
 0x383   :  { %v1095_v5 = vmax.f32 %v1063_v61, 0.0  ;;  %v1118_v28 = vrot.slane %v1117_v60, 2  ;;  %3100 = vmatpush1.bf16.msra.mxu0 %v3099_v49  ;;  %3356 = vmatpush1.bf16.msra.mxu1 %v3355_v59  ;;  %v1413_v57 = vld [vmem:[#allocation12 + $0x5f8] sm:$0xff]  ;;  %v3367_v63 = vpack.c.bf16 %v1404_v1, %v1400_v47  ;;  %v1422_v47 = vld [vmem:[#allocation12 + $0x640] sm:$0xff] }
 0x384   :  { %v1096_v23 = vmax.f32 %v1064_v58, 0.0  ;;  %v1125_v33 = vrot.slane %v1124_v27, 2  ;;  %3102 = vmatprep.subr.bf16.mxu0 %v3101_v62  ;;  %3358 = vmatprep.subr.bf16.mxu1 %v3357_v3  ;;  %v3111_v62 = vpack.c.bf16 %v1402_v18, %v1398_v42  ;;  %v1410_v58 = vld [vmem:[#allocation12 + $0x5e0] sm:$0xff]  ;;  %v3369_v4 = vpack.c.bf16 %v1413_v57, %v1409_v56  ;;  %v1431_v56 = vld [vmem:[#allocation12 + $0x688] sm:$0xff] }
 0x385   :  { %v1171_v26 = vmax.f32 %v1087_v6, %v1095_v5  ;;  %v1119_v44 = vmax.f32 %v1117_v60, %v1118_v28  ;;  %v952_v60 = vsub.s32 7, %v4263_v7  ;;  %v1415_v7 = vld [vmem:[#allocation12 + $0x608] sm:$0xff]  ;;  %v1417_v28 = vld [vmem:[#allocation12 + $0x618] sm:$0xff]  ;;  %v1426_v1 = vld [vmem:[#allocation12 + $0x660] sm:$0xff] }
 0x386   :  { %v1178_v34 = vmax.f32 %v1088_v2, %v1096_v23  ;;  %v1126_v49 = vmax.f32 %v1124_v27, %v1125_v33  ;;  %v3113_v27 = vpack.c.bf16 %v1411_v54, %v1407_v25  ;;  %v3115_v2 = vpack.c.bf16 %v1410_v58, %v1406_v0  ;;  %v1428_v54 = vld [vmem:[#allocation12 + $0x670] sm:$0xff] }
 0x387   :  { %v1172_v12 = vrot.slane %v1171_v26, 4  ;;  %3104 = vmatpush1.bf16.msra.mxu0 %v3103_v29  ;;  %3360 = vmatpush1.bf16.msra.mxu1 %v3359_v19  ;;  %v1120_v3 = vrot.slane %v1119_v44, 1  ;;  %v4357_v21 = vrot.slane %v4269_v9, %v952_v60  ;;  %v3371_v29 = vpack.c.bf16 %v1412_v11, %v1408_v38  ;;  %v1414_v19 = vld [vmem:[#allocation12 + $0x600] sm:$0xff] }
 0x388   :  { %v1179_v41 = vrot.slane %v1178_v34, 4  ;;  %3106 = vmatprep.subr.bf16.mxu0 %v3105_v35  ;;  %3362 = vmatprep.subr.bf16.mxu1 %v3361_v36  ;;  %v1127_v6 = vrot.slane %v1126_v49, 1  ;;  %v1416_v36 = vld [vmem:[#allocation12 + $0x610] sm:$0xff]  ;;  %v3117_v40 = vpack.c.bf16 %v1419_v24, %v1415_v7  ;;  %v4368_v42 = vrot.slane %v4278_v14, %v952_v60  ;;  %v1435_v60 = vld [vmem:[#allocation12 + $0x6a8] sm:$0xff]  ;;  %v1434_v38 = vld [vmem:[#allocation12 + $0x6a0] sm:$0xff] }
 0x389   :  { %v1173_v45 = vmax.f32 %v1171_v26, %v1172_v12  ;;  %v1421_v26 = vld [vmem:[#allocation12 + $0x638] sm:$0xff]  ;;  %v1121_v31 = vmax.f32 %v1119_v44, %v1120_v3  ;;  %v3123_v3 = vpack.c.bf16 %v1426_v1, %v1422_v47 }
 0x38a   :  { %v1180_v20 = vmax.f32 %v1178_v34, %v1179_v41  ;;  %v4360_v34 = vrot.slane %v4278_v14, %v948_v53  ;;  %v1128_v9 = vmax.f32 %v1126_v49, %v1127_v6  ;;  %v3373_v41 = vpack.c.bf16 %v1421_v26, %v1417_v28  ;;  %v1429_v44 = vld [vmem:[#allocation12 + $0x678] sm:$0xff]  ;;  %v1424_v53 = vld [vmem:[#allocation12 + $0x650] sm:$0xff] }
 0x38b   :  { %v1174_v52 = vrot.slane %v1173_v45, 2  ;;  %3108 = vmatpush1.bf16.msra.mxu0 %v3107_v15  ;;  %3364 = vmatpush1.bf16.msra.mxu1 %v3363_v43  ;;  %v1427_v15 = vld [vmem:[#allocation12 + $0x668] sm:$0xff]  ;;  %v1425_v43 = vld [vmem:[#allocation12 + $0x658] sm:$0xff] }
 0x38c   :  { %v1181_v59 = vrot.slane %v1180_v20, 2  ;;  %3110 = vmatprep.subr.bf16.mxu0 %v3109_v22  ;;  %3366 = vmatprep.subr.bf16.mxu1 %v3365_v46  ;;  %v3375_v46 = vpack.c.bf16 %v1420_v37, %v1416_v36  ;;  %v3121_v49 = vpack.c.bf16 %v1427_v15, %v1423_v39  ;;  %v1442_v36 = vld [vmem:[#allocation12 + $0x6e0] sm:$0xff] }
 0x38d   :  { %v1175_v61 = vmax.f32 %v1173_v45, %v1174_v52  ;;  %v3377_v52 = vpack.c.bf16 %v1429_v44, %v1425_v43 }
 0x38e   :  { %v1182_v5 = vmax.f32 %v1180_v20, %v1181_v59  ;;  %v3119_v20 = vpack.c.bf16 %v1418_v30, %v1414_v19  ;;  %v1443_v19 = vld [vmem:[#allocation12 + $0x6e8] sm:$0xff]  ;;  %v1441_v30 = vld [vmem:[#allocation12 + $0x6d8] sm:$0xff] }
 0x38f   :  { %v1176_v17 = vrot.slane %v1175_v61, 1  ;;  %3112 = vmatpush1.bf16.msra.mxu0 %v3111_v62  ;;  %3368 = vmatpush1.bf16.msra.mxu1 %v3367_v63  ;;  %v1437_v62 = vld [vmem:[#allocation12 + $0x6b8] sm:$0xff] }
 0x390   :  { %v1183_v23 = vrot.slane %v1182_v5, 1  ;;  %3114 = vmatprep.subr.bf16.mxu0 %v3113_v27  ;;  %3370 = vmatprep.subr.bf16.mxu1 %v3369_v4  ;;  %v3379_v27 = vpack.c.bf16 %v1428_v54, %v1424_v53  ;;  %v1430_v4 = vld [vmem:[#allocation12 + $0x680] sm:$0xff] }
 0x391   :  { %v1177_v32 = vmax.f32 %v1175_v61, %v1176_v17  ;;  %v1433_v61 = vld [vmem:[#allocation12 + $0x698] sm:$0xff]  ;;  %v1432_v17 = vld [vmem:[#allocation12 + $0x690] sm:$0xff]  ;;  %v3127_v39 = vpack.c.bf16 %v1434_v38, %v1430_v4  ;;  %v1459_v38 = vld [vmem:[#allocation12 + $0x768] sm:$0xff] }
 0x392   :  { %v897_v33 = vpop.f32.mrb[24].mxu1  ;;  %v1184_v35 = vmax.f32 %v1182_v5, %v1183_v23  ;;  %v3125_v5 = vpack.c.bf16 %v1435_v60, %v1431_v56  ;;  %v3381_v7 = vpack.c.bf16 %v1437_v62, %v1433_v61  ;;  %v1439_v23 = vld [vmem:[#allocation12 + $0x6c8] sm:$0xff]  ;;  %v1446_v61 = vld [vmem:[#allocation12 + $0x700] sm:$0xff] }
 0x393   :  { %v968_v12 = vmul.f32 %v4354_v16, %v897_v33  ;;  %v899_v13 = vpop.f32.mrb[25].mxu1  ;;  %v4364_v45 = vsel %vm1213_vm3, %v1121_v31, %v1177_v32  ;;  %3116 = vmatpush1.bf16.msra.mxu0 %v3115_v2  ;;  %3372 = vmatpush1.bf16.msra.mxu1 %v3371_v29  ;;  %v1436_v2 = vld [vmem:[#allocation12 + $0x6b0] sm:$0xff]  ;;  %v1445_v31 = vld [vmem:[#allocation12 + $0x6f8] sm:$0xff]  ;;  %v3129_v43 = vpack.c.bf16 %v1443_v19, %v1439_v23  ;;  %v1450_v62 = vld [vmem:[#allocation12 + $0x720] sm:$0xff] }
 0x394   :  { %v969_v22 = vmul.f32 %v4357_v21, %v899_v13  ;;  %v1217_v18 = vsel %vm1213_vm3, %v1128_v9, %v1184_v35  ;;  %3118 = vmatprep.subr.bf16.mxu0 %v3117_v40  ;;  %3374 = vmatprep.subr.bf16.mxu1 %v3373_v41  ;;  %v1438_v35 = vld [vmem:[#allocation12 + $0x6c0] sm:$0xff]  ;;  %v1440_v13 = vld [vmem:[#allocation12 + $0x6d0] sm:$0xff]  ;;  %v3385_v44 = vpack.c.bf16 %v1445_v31, %v1441_v30 }
 0x395   :  { %1869 = vmatprep.mubr.f32.mxu0 %v1217_v18  ;;  %2153 = vmatprep.mubr.f32.mxu1 %v1217_v18  ;;  %v1043_v57 = vadd.f32 %v4360_v34, %v968_v12  ;;  %v3383_v12 = vpack.c.bf16 %v1436_v2, %v1432_v17  ;;  %v1444_v40 = vld [vmem:[#allocation12 + $0x6f0] sm:$0xff]  ;;  %v1451_v18 = vld [vmem:[#allocation12 + $0x728] sm:$0xff]  ;;  %v3135_v23 = vpack.c.bf16 %v1450_v62, %v1446_v61 }
 0x396   :  { %v903_v25 = vpop.f32.mrb[26].mxu1  ;;  %v1044_v63 = vadd.f32 %v4368_v42, %v969_v22  ;;  %v1447_v22 = vld [vmem:[#allocation12 + $0x708] sm:$0xff]  ;;  %v1476_v61 = vld [vmem:[#allocation12 + $0x7f0] sm:$0xff] }
 0x397   :  { %v976_v14 = vmul.f32 %v4354_v16, %v903_v25  ;;  %v905_v59 = vpop.f32.mrb[27].mxu1  ;;  %3120 = vmatpush1.bf16.msra.mxu0 %v3119_v20  ;;  %3376 = vmatpush1.bf16.msra.mxu1 %v3375_v46  ;;  %v1075_v24 = vmax.f32 %v1043_v57, 0.0  ;;  %v3131_v25 = vpack.c.bf16 %v1442_v36, %v1438_v35  ;;  %v3387_v57 = vpack.c.bf16 %v1444_v40, %v1440_v13  ;;  %v1465_v35 = vld [vmem:[#allocation12 + $0x798] sm:$0xff] }
 0x398   :  { %v977_v0 = vmul.f32 %v4357_v21, %v905_v59  ;;  %3122 = vmatprep.subr.bf16.mxu0 %v3121_v49  ;;  %3378 = vmatprep.subr.bf16.mxu1 %v3377_v52  ;;  %v1076_v32 = vmax.f32 %v1044_v63, 0.0  ;;  %v1449_v49 = vld [vmem:[#allocation12 + $0x718] sm:$0xff]  ;;  %v3133_v60 = vpack.c.bf16 %v1451_v18, %v1447_v22  ;;  %v1464_v18 = vld [vmem:[#allocation12 + $0x790] sm:$0xff] }
 0x399   :  { %v1051_v58 = vadd.f32 %v4360_v34, %v976_v14  ;;  %v1453_v52 = vld [vmem:[#allocation12 + $0x738] sm:$0xff] }
 0x39a   :  { %v1052_v11 = vadd.f32 %v4368_v42, %v977_v0  ;;  %v909_v6 = vpop.f32.mrb[28].mxu1  ;;  %v3389_v0 = vpack.c.bf16 %v1453_v52, %v1449_v49  ;;  %v1469_v36 = vld [vmem:[#allocation12 + $0x7b8] sm:$0xff] }
 0x39b   :  { %v1083_v28 = vmax.f32 %v1051_v58, 0.0  ;;  %v984_v26 = vmul.f32 %v4354_v16, %v909_v6  ;;  %v911_v29 = vpop.f32.mrb[29].mxu1  ;;  %3124 = vmatpush1.bf16.msra.mxu0 %v3123_v3  ;;  %3380 = vmatpush1.bf16.msra.mxu1 %v3379_v27  ;;  %v1448_v58 = vld [vmem:[#allocation12 + $0x710] sm:$0xff]  ;;  %v1455_v27 = vld [vmem:[#allocation12 + $0x748] sm:$0xff]  ;;  %v1461_v6 = vld [vmem:[#allocation12 + $0x778] sm:$0xff]  ;;  %v3397_v22 = vpack.c.bf16 %v1469_v36, %v1465_v35 }
 0x39c   :  { %v1084_v33 = vmax.f32 %v1052_v11, 0.0  ;;  %v985_v9 = vmul.f32 %v4357_v21, %v911_v29  ;;  %3126 = vmatprep.subr.bf16.mxu0 %v3125_v5  ;;  %3382 = vmatprep.subr.bf16.mxu1 %v3381_v7  ;;  %v1452_v3 = vld [vmem:[#allocation12 + $0x730] sm:$0xff]  ;;  %v1457_v11 = vld [vmem:[#allocation12 + $0x758] sm:$0xff]  ;;  %v1454_v7 = vld [vmem:[#allocation12 + $0x740] sm:$0xff]  ;;  %v3137_v30 = vpack.c.bf16 %v1459_v38, %v1455_v27 }
 0x39d   :  { %v1143_v37 = vmax.f32 %v1075_v24, %v1083_v28  ;;  %v1059_v46 = vadd.f32 %v4360_v34, %v984_v26  ;;  %v1458_v24 = vld [vmem:[#allocation12 + $0x760] sm:$0xff]  ;;  %v1456_v28 = vld [vmem:[#allocation12 + $0x750] sm:$0xff]  ;;  %v3393_v31 = vpack.c.bf16 %v1461_v6, %v1457_v11  ;;  %v1473_v49 = vld [vmem:[#allocation12 + $0x7d8] sm:$0xff] }
 0x39e   :  { %v1150_v41 = vmax.f32 %v1076_v32, %v1084_v33  ;;  %v915_v15 = vpop.f32.mrb[30].mxu1  ;;  %v1060_v54 = vadd.f32 %v4368_v42, %v985_v9  ;;  %v1460_v26 = vld [vmem:[#allocation12 + $0x770] sm:$0xff]  ;;  %v1463_v32 = vld [vmem:[#allocation12 + $0x788] sm:$0xff]  ;;  %v1477_v52 = vld [vmem:[#allocation12 + $0x7f8] sm:$0xff] }
 0x39f   :  { %v1144_v20 = vrot.slane %v1143_v37, 4  ;;  %v992_v47 = vmul.f32 %v4354_v16, %v915_v15  ;;  %v917_v1 = vpop.f32.mrb[31].mxu1  ;;  %3128 = vmatpush1.bf16.msra.mxu0 %v3127_v39  ;;  %3384 = vmatpush1.bf16.msra.mxu1 %v3383_v12  ;;  %v1091_v4 = vmax.f32 %v1059_v46, 0.0  ;;  %v1467_v33 = vld [vmem:[#allocation12 + $0x7a8] sm:$0xff]  ;;  %v3139_v39 = vpack.c.bf16 %v1458_v24, %v1454_v7  ;;  %v1462_v15 = vld [vmem:[#allocation12 + $0x780] sm:$0xff] }
 0x3a0   :  { %v1151_v53 = vrot.slane %v1150_v41, 4  ;;  %v993_v56 = vmul.f32 %v4357_v21, %v917_v1  ;;  %3130 = vmatprep.subr.bf16.mxu0 %v3129_v43  ;;  %3386 = vmatprep.subr.bf16.mxu1 %v3385_v44  ;;  %v3395_v12 = vpack.c.bf16 %v1460_v26, %v1456_v28  ;;  %v1466_v43 = vld [vmem:[#allocation12 + $0x7a0] sm:$0xff]  ;;  %v1471_v46 = vld [vmem:[#allocation12 + $0x7c8] sm:$0xff]  ;;  %v1480_v26 = vld [vmem:[#allocation12 + $0x810] sm:$0xff] }
 0x3a1   :  { %v1145_v14 = vmax.f32 %v1143_v37, %v1144_v20  ;;  %v1067_v59 = vadd.f32 %v4360_v34, %v992_v47  ;;  %v1092_v34 = vmax.f32 %v1060_v54, 0.0  ;;  %v1468_v20 = vld [vmem:[#allocation12 + $0x7b0] sm:$0xff]  ;;  %v1470_v54 = vld [vmem:[#allocation12 + $0x7c0] sm:$0xff] }
 0x3a2   :  { %v1152_v63 = vmax.f32 %v1150_v41, %v1151_v53  ;;  %v1068_v16 = vadd.f32 %v4368_v42, %v993_v56  ;;  %v3391_v42 = vpack.c.bf16 %v1452_v3, %v1448_v58  ;;  %v3141_v41 = vpack.c.bf16 %v1467_v33, %v1463_v32  ;;  %v1483_v58 = vld [vmem:[#allocation12 + $0x828] sm:$0xff]  ;;  %v1489_v32 = vld [vmem:[#allocation12 + $0x858] sm:$0xff] }
 0x3a3   :  { %v1099_v21 = vmax.f32 %v1067_v59, 0.0  ;;  %v1146_v17 = vrot.slane %v1145_v14, 2  ;;  %3132 = vmatpush1.bf16.msra.mxu0 %v3131_v25  ;;  %3388 = vmatpush1.bf16.msra.mxu1 %v3387_v57  ;;  %v1475_v25 = vld [vmem:[#allocation12 + $0x7e8] sm:$0xff]  ;;  %v3143_v57 = vpack.c.bf16 %v1466_v43, %v1462_v15  ;;  %v1474_v59 = vld [vmem:[#allocation12 + $0x7e0] sm:$0xff]  ;;  %v1493_v33 = vld [vmem:[#allocation12 + $0x878] sm:$0xff] }
 0x3a4   :  { %v1100_v5 = vmax.f32 %v1068_v16, 0.0  ;;  %v1153_v29 = vrot.slane %v1152_v63, 2  ;;  %3134 = vmatprep.subr.bf16.mxu0 %v3133_v60  ;;  %3390 = vmatprep.subr.bf16.mxu1 %v3389_v0  ;;  %v1472_v60 = vld [vmem:[#allocation12 + $0x7d0] sm:$0xff]  ;;  %v3145_v16 = vpack.c.bf16 %v1475_v25, %v1471_v46  ;;  %v3401_v0 = vpack.c.bf16 %v1477_v52, %v1473_v49  ;;  %v1495_v15 = vld [vmem:[#allocation12 + $0x888] sm:$0xff] }
 0x3a5   :  { %v1199_v2 = vmax.f32 %v1091_v4, %v1099_v21  ;;  %v1147_v13 = vmax.f32 %v1145_v14, %v1146_v17  ;;  %v3399_v14 = vpack.c.bf16 %v1468_v20, %v1464_v18  ;;  %v1481_v4 = vld [vmem:[#allocation12 + $0x818] sm:$0xff]  ;;  %v3147_v11 = vpack.c.bf16 %v1474_v59, %v1470_v54  ;;  %v1499_v43 = vld [vmem:[#allocation12 + $0x8a8] sm:$0xff]  ;;  %v1496_v25 = vld [vmem:[#allocation12 + $0x890] sm:$0xff] }
 0x3a6   :  { %v1206_v19 = vmax.f32 %v1092_v34, %v1100_v5  ;;  %v1154_v47 = vmax.f32 %v1152_v63, %v1153_v29  ;;  %v1479_v63 = vld [vmem:[#allocation12 + $0x808] sm:$0xff]  ;;  %v1485_v21 = vld [vmem:[#allocation12 + $0x838] sm:$0xff]  ;;  %v3403_v6 = vpack.c.bf16 %v1476_v61, %v1472_v60  ;;  %v1484_v29 = vld [vmem:[#allocation12 + $0x830] sm:$0xff]  ;;  %v3157_v46 = vpack.c.bf16 %v1499_v43, %v1495_v15 }
 0x3a7   :  { %v1200_v9 = vrot.slane %v1199_v2, 4  ;;  %3136 = vmatpush1.bf16.msra.mxu0 %v3135_v23  ;;  %3392 = vmatpush1.bf16.msra.mxu1 %v3391_v42  ;;  %v1148_v62 = vrot.slane %v1147_v13, 1  ;;  %v3149_v5 = vpack.c.bf16 %v1483_v58, %v1479_v63  ;;  %v1478_v23 = vld [vmem:[#allocation12 + $0x800] sm:$0xff]  ;;  %v3407_v36 = vpack.c.bf16 %v1484_v29, %v1480_v26  ;;  %v1500_v52 = vld [vmem:[#allocation12 + $0x8b0] sm:$0xff]  ;;  %v1505_v54 = vld [vmem:[#allocation12 + $0x8d8] sm:$0xff] }
 0x3a8   :  { %v1207_v37 = vrot.slane %v1206_v19, 4  ;;  %3138 = vmatprep.subr.bf16.mxu0 %v3137_v30  ;;  %3394 = vmatprep.subr.bf16.mxu1 %v3393_v31  ;;  %v1155_v3 = vrot.slane %v1154_v47, 1  ;;  %v1482_v42 = vld [vmem:[#allocation12 + $0x820] sm:$0xff]  ;;  %v1491_v31 = vld [vmem:[#allocation12 + $0x868] sm:$0xff]  ;;  %v1504_v61 = vld [vmem:[#allocation12 + $0x8d0] sm:$0xff] }
 0x3a9   :  { %v1201_v40 = vmax.f32 %v1199_v2, %v1200_v9  ;;  %v1149_v7 = vmax.f32 %v1147_v13, %v1148_v62  ;;  %v3405_v2 = vpack.c.bf16 %v1485_v21, %v1481_v4  ;;  %v3151_v35 = vpack.c.bf16 %v1482_v42, %v1478_v23  ;;  %v1506_v60 = vld [vmem:[#allocation12 + $0x8e0] sm:$0xff]  ;;  %v1515_v63 = vld [vmem:[#allocation12 + $0x928] sm:$0xff]  ;;  %v1513_v58 = vld [vmem:[#allocation12 + $0x918] sm:$0xff] }
 0x3aa   :  { %v1208_v44 = vmax.f32 %v1206_v19, %v1207_v37  ;;  %v1156_v24 = vmax.f32 %v1154_v47, %v1155_v3  ;;  %v1487_v19 = vld [vmem:[#allocation12 + $0x848] sm:$0xff]  ;;  %v1486_v37 = vld [vmem:[#allocation12 + $0x840] sm:$0xff]  ;;  %v1517_v3 = vld [vmem:[#allocation12 + $0x938] sm:$0xff] }
 0x3ab   :  { %v1202_v1 = vrot.slane %v1201_v40, 2  ;;  %3140 = vmatpush1.bf16.msra.mxu0 %v3139_v39  ;;  %3396 = vmatpush1.bf16.msra.mxu1 %v3395_v12  ;;  %v1490_v39 = vld [vmem:[#allocation12 + $0x860] sm:$0xff]  ;;  %v1488_v12 = vld [vmem:[#allocation12 + $0x850] sm:$0xff]  ;;  %v3153_v13 = vpack.c.bf16 %v1491_v31, %v1487_v19  ;;  %v1525_v23 = vld [vmem:[#allocation12 + $0x978] sm:$0xff] }
 0x3ac   :  { %v1209_v53 = vrot.slane %v1208_v44, 2  ;;  %3142 = vmatprep.subr.bf16.mxu0 %v3141_v41  ;;  %3398 = vmatprep.subr.bf16.mxu1 %v3397_v22  ;;  %v1492_v41 = vld [vmem:[#allocation12 + $0x870] sm:$0xff]  ;;  %v1501_v22 = vld [vmem:[#allocation12 + $0x8b8] sm:$0xff]  ;;  %v3155_v18 = vpack.c.bf16 %v1490_v39, %v1486_v37  ;;  %v1494_v47 = vld [vmem:[#allocation12 + $0x880] sm:$0xff] }
 0x3ad   :  { %v1203_v56 = vmax.f32 %v1201_v40, %v1202_v1  ;;  %v3409_v40 = vpack.c.bf16 %v1493_v33, %v1489_v32  ;;  %v3411_v20 = vpack.c.bf16 %v1492_v41, %v1488_v12  ;;  %v1498_v1 = vld [vmem:[#allocation12 + $0x8a0] sm:$0xff]  ;;  %v1520_v19 = vld [vmem:[#allocation12 + $0x950] sm:$0xff]  ;;  %v1527_v33 = vld [vmem:[#allocation12 + $0x988] sm:$0xff] }
 0x3ae   :  { %v1210_v27 = vmax.f32 %v1208_v44, %v1209_v53  ;;  %v1497_v44 = vld [vmem:[#allocation12 + $0x898] sm:$0xff]  ;;  %v1503_v53 = vld [vmem:[#allocation12 + $0x8c8] sm:$0xff]  ;;  %v1518_v26 = vld [vmem:[#allocation12 + $0x940] sm:$0xff] }
 0x3af   :  { %v1204_v38 = vrot.slane %v1203_v56, 1  ;;  %3144 = vmatpush1.bf16.msra.mxu0 %v3143_v57  ;;  %3400 = vmatpush1.bf16.msra.mxu1 %v3399_v14  ;;  %v3413_v49 = vpack.c.bf16 %v1501_v22, %v1497_v44  ;;  %v3159_v57 = vpack.c.bf16 %v1498_v1, %v1494_v47  ;;  %v3415_v14 = vpack.c.bf16 %v1500_v52, %v1496_v25  ;;  %v1522_v29 = vld [vmem:[#allocation12 + $0x960] sm:$0xff]  ;;  %v1524_v32 = vld [vmem:[#allocation12 + $0x970] sm:$0xff]  ;;  %v1533_v37 = vld [vmem:[#allocation12 + $0x9b8] sm:$0xff] }
 0x3b0   :  { %v1211_v34 = vrot.slane %v1210_v27, 1  ;;  %3146 = vmatprep.subr.bf16.mxu0 %v3145_v16  ;;  %3402 = vmatprep.subr.bf16.mxu1 %v3401_v0  ;;  %v1508_v16 = vld [vmem:[#allocation12 + $0x8f0] sm:$0xff]  ;;  %v1511_v0 = vld [vmem:[#allocation12 + $0x908] sm:$0xff]  ;;  %v3171_v39 = vpack.c.bf16 %v1522_v29, %v1518_v26  ;;  %v3427_v12 = vpack.c.bf16 %v1524_v32, %v1520_v19  ;;  %v1530_v41 = vld [vmem:[#allocation12 + $0x9a0] sm:$0xff] }
 0x3b1   :  { %v1205_v17 = vmax.f32 %v1203_v56, %v1204_v38  ;;  %v1509_v56 = vld [vmem:[#allocation12 + $0x8f8] sm:$0xff]  ;;  %v3419_v4 = vpack.c.bf16 %v1508_v16, %v1504_v61  ;;  %v3165_v21 = vpack.c.bf16 %v1515_v63, %v1511_v0  ;;  %v1510_v38 = vld [vmem:[#allocation12 + $0x900] sm:$0xff]  ;;  %v1528_v15 = vld [vmem:[#allocation12 + $0x990] sm:$0xff] }
 0x3b2   :  { %v1212_v28 = vmax.f32 %v1210_v27, %v1211_v34  ;;  %v3417_v62 = vpack.c.bf16 %v1509_v56, %v1505_v54  ;;  %v3421_v34 = vpack.c.bf16 %v1517_v3, %v1513_v58  ;;  %v1532_v44 = vld [vmem:[#allocation12 + $0x9b0] sm:$0xff]  ;;  %v1535_v22 = vld [vmem:[#allocation12 + $0x9c8] sm:$0xff]  ;;  %v1538_v52 = vld [vmem:[#allocation12 + $0x9e0] sm:$0xff] }
 0x3b3   :  { %v4386_v30 = vsel %vm1213_vm3, %v1149_v7, %v1205_v17  ;;  %3148 = vmatpush1.bf16.msra.mxu0 %v3147_v11  ;;  %3404 = vmatpush1.bf16.msra.mxu1 %v3403_v6  ;;  %v1514_v11 = vld [vmem:[#allocation12 + $0x920] sm:$0xff]  ;;  %v1512_v6 = vld [vmem:[#allocation12 + $0x910] sm:$0xff]  ;;  %v1519_v7 = vld [vmem:[#allocation12 + $0x948] sm:$0xff]  ;;  %v3431_v1 = vpack.c.bf16 %v1532_v44, %v1528_v15 }
 0x3b4   :  { %v4389_v9 = vsel %vm1213_vm3, %v1156_v24, %v1212_v28  ;;  %3150 = vmatprep.subr.bf16.mxu0 %v3149_v5  ;;  %3406 = vmatprep.subr.bf16.mxu1 %v3405_v2  ;;  %v1516_v5 = vld [vmem:[#allocation12 + $0x930] sm:$0xff]  ;;  %v1523_v17 = vld [vmem:[#allocation12 + $0x968] sm:$0xff]  ;;  %v1521_v2 = vld [vmem:[#allocation12 + $0x958] sm:$0xff]  ;;  %v3167_v42 = vpack.c.bf16 %v1514_v11, %v1510_v38 }
 0x3b5   :  { %v3423_v24 = vpack.c.bf16 %v1516_v5, %v1512_v6  ;;  %v3169_v28 = vpack.c.bf16 %v1523_v17, %v1519_v7  ;;  %v3425_v31 = vpack.c.bf16 %v1525_v23, %v1521_v2  ;;  %v1540_v54 = vld [vmem:[#allocation12 + $0x9f0] sm:$0xff]  ;;  %v1543_v56 = vld [vmem:[#allocation12 + $0xa08] sm:$0xff]  ;;  %v1546_v16 = vld [vmem:[#allocation12 + $0xa20] sm:$0xff] }
 0x3b6   :  { %1870 = vmatmul.mubr.f32.vlgmr.msra.gmra.mrb[8].mxu0 %v4364_v45  ;;  %2154 = vmatmul.mubr.f32.vlgmr.msra.gmra.mrb[32].mxu1 %v4364_v45  ;;  %v1507_v45 = vld [vmem:[#allocation12 + $0x8e8] sm:$0xff]  ;;  %v1544_v0 = vld [vmem:[#allocation12 + $0xa10] sm:$0xff]  ;;  %v1554_v5 = vld [vmem:[#allocation12 + $0xa60] sm:$0xff] }
 0x3b7   :  { %3152 = vmatpush1.bf16.msra.mxu0 %v3151_v35  ;;  %1940 = vmatprep.mubr.f32.mxu0 %v4331_v50  ;;  %v3161_v59 = vpack.c.bf16 %v1507_v45, %v1503_v53  ;;  %v1531_v35 = vld [vmem:[#allocation12 + $0x9a8] sm:$0xff]  ;;  %v1536_v53 = vld [vmem:[#allocation12 + $0x9d0] sm:$0xff]  ;;  %v1562_v32 = vld [vmem:[#allocation12 + $0xaa0] sm:$0xff] }
 0x3b8   :  { %3408 = vmatpush1.bf16.msra.mxu1 %v3407_v36  ;;  %2224 = vmatprep.mubr.f32.mxu1 %v4331_v50  ;;  %v1502_v50 = vld [vmem:[#allocation12 + $0x8c0] sm:$0xff]  ;;  %v1529_v36 = vld [vmem:[#allocation12 + $0x998] sm:$0xff]  ;;  %v1548_v58 = vld [vmem:[#allocation12 + $0xa30] sm:$0xff] }
 0x3b9   :  { %3154 = vmatprep.subr.bf16.mxu0 %v3153_v13  ;;  %3410 = vmatprep.subr.bf16.mxu1 %v3409_v40  ;;  %v3163_v27 = vpack.c.bf16 %v1506_v60, %v1502_v50  ;;  %v3173_v13 = vpack.c.bf16 %v1531_v35, %v1527_v33  ;;  %v1526_v40 = vld [vmem:[#allocation12 + $0x980] sm:$0xff]  ;;  %v3429_v43 = vpack.c.bf16 %v1533_v37, %v1529_v36  ;;  %v1551_v3 = vld [vmem:[#allocation12 + $0xa48] sm:$0xff]  ;;  %v1552_v7 = vld [vmem:[#allocation12 + $0xa50] sm:$0xff] }
 0x3ba   :  { %v3175_v47 = vpack.c.bf16 %v1530_v41, %v1526_v40  ;;  %v3435_v60 = vpack.c.bf16 %v1540_v54, %v1536_v53  ;;  %v3439_v11 = vpack.c.bf16 %v1548_v58, %v1544_v0  ;;  %v1556_v2 = vld [vmem:[#allocation12 + $0xa70] sm:$0xff]  ;;  %v1559_v23 = vld [vmem:[#allocation12 + $0xa88] sm:$0xff]  ;;  %v1570_v44 = vld [vmem:[#allocation12 + $0xae0] sm:$0xff] }
 0x3bb   :  { %3156 = vmatpush1.bf16.msra.mxu0 %v3155_v18  ;;  %v1539_v18 = vld [vmem:[#allocation12 + $0x9e8] sm:$0xff]  ;;  %v3443_v29 = vpack.c.bf16 %v1556_v2, %v1552_v7  ;;  %v1560_v33 = vld [vmem:[#allocation12 + $0xa90] sm:$0xff]  ;;  %v1578_v54 = vld [vmem:[#allocation12 + $0xb20] sm:$0xff] }
 0x3bc   :  { %3412 = vmatpush1.bf16.msra.mxu1 %v3411_v20  ;;  %3158 = vmatprep.subr.bf16.mxu0 %v3157_v46  ;;  %v1537_v20 = vld [vmem:[#allocation12 + $0x9d8] sm:$0xff]  ;;  %v3177_v25 = vpack.c.bf16 %v1539_v18, %v1535_v22  ;;  %v1564_v36 = vld [vmem:[#allocation12 + $0xab0] sm:$0xff]  ;;  %v1567_v37 = vld [vmem:[#allocation12 + $0xac8] sm:$0xff] }
 0x3bd   :  { %3414 = vmatprep.subr.bf16.mxu1 %v3413_v49  ;;  %v1541_v46 = vld [vmem:[#allocation12 + $0x9f8] sm:$0xff]  ;;  %v1534_v49 = vld [vmem:[#allocation12 + $0x9c0] sm:$0xff]  ;;  %v3447_v41 = vpack.c.bf16 %v1564_v36, %v1560_v33  ;;  %v1568_v22 = vld [vmem:[#allocation12 + $0xad0] sm:$0xff] }
 0x3be   :  { %v3433_v45 = vpack.c.bf16 %v1541_v46, %v1537_v20  ;;  %v3179_v50 = vpack.c.bf16 %v1538_v52, %v1534_v49  ;;  %v1572_v20 = vld [vmem:[#allocation12 + $0xaf0] sm:$0xff]  ;;  %v1575_v46 = vld [vmem:[#allocation12 + $0xb08] sm:$0xff]  ;;  %v1586_v58 = vld [vmem:[#allocation12 + $0xb60] sm:$0xff] }
 0x3bf   :  { %3160 = vmatpush1.bf16.msra.mxu0 %v3159_v57  ;;  %v1547_v57 = vld [vmem:[#allocation12 + $0xa28] sm:$0xff]  ;;  %v3451_v52 = vpack.c.bf16 %v1572_v20, %v1568_v22  ;;  %v1594_v2 = vld [vmem:[#allocation12 + $0xba0] sm:$0xff] }
 0x3c0   :  { %3416 = vmatpush1.bf16.msra.mxu1 %v3415_v14  ;;  %3162 = vmatprep.subr.bf16.mxu0 %v3161_v59  ;;  %v1545_v14 = vld [vmem:[#allocation12 + $0xa18] sm:$0xff]  ;;  %v3181_v61 = vpack.c.bf16 %v1547_v57, %v1543_v56  ;;  %v1576_v56 = vld [vmem:[#allocation12 + $0xb10] sm:$0xff]  ;;  %v1602_v36 = vld [vmem:[#allocation12 + $0xbe0] sm:$0xff] }
 0x3c1   :  { %3418 = vmatprep.subr.bf16.mxu1 %v3417_v62  ;;  %v1549_v59 = vld [vmem:[#allocation12 + $0xa38] sm:$0xff]  ;;  %v1542_v62 = vld [vmem:[#allocation12 + $0xa00] sm:$0xff] }
 0x3c2   :  { %v3437_v63 = vpack.c.bf16 %v1549_v59, %v1545_v14  ;;  %v3183_v38 = vpack.c.bf16 %v1546_v16, %v1542_v62  ;;  %v1580_v14 = vld [vmem:[#allocation12 + $0xb30] sm:$0xff]  ;;  %v1583_v59 = vld [vmem:[#allocation12 + $0xb48] sm:$0xff]  ;;  %v1610_v20 = vld [vmem:[#allocation12 + $0xc20] sm:$0xff] }
 0x3c3   :  { %3164 = vmatpush1.bf16.msra.mxu0 %v3163_v27  ;;  %v1555_v27 = vld [vmem:[#allocation12 + $0xa68] sm:$0xff]  ;;  %v3455_v16 = vpack.c.bf16 %v1580_v14, %v1576_v56  ;;  %v1614_v56 = vld [vmem:[#allocation12 + $0xc40] sm:$0xff]  ;;  %v1616_v14 = vld [vmem:[#allocation12 + $0xc50] sm:$0xff] }
 0x3c4   :  { %3420 = vmatpush1.bf16.msra.mxu1 %v3419_v4  ;;  %3166 = vmatprep.subr.bf16.mxu0 %v3165_v21  ;;  %v1553_v4 = vld [vmem:[#allocation12 + $0xa58] sm:$0xff]  ;;  %v3185_v6 = vpack.c.bf16 %v1555_v27, %v1551_v3  ;;  %v1584_v3 = vld [vmem:[#allocation12 + $0xb50] sm:$0xff] }
 0x3c5   :  { %3422 = vmatprep.subr.bf16.mxu1 %v3421_v34  ;;  %v1557_v21 = vld [vmem:[#allocation12 + $0xa78] sm:$0xff]  ;;  %v1550_v34 = vld [vmem:[#allocation12 + $0xa40] sm:$0xff] }
 0x3c6   :  { %v3441_v17 = vpack.c.bf16 %v1557_v21, %v1553_v4  ;;  %v3187_v26 = vpack.c.bf16 %v1554_v5, %v1550_v34  ;;  %v1588_v4 = vld [vmem:[#allocation12 + $0xb70] sm:$0xff]  ;;  %v1591_v21 = vld [vmem:[#allocation12 + $0xb88] sm:$0xff] }
 0x3c7   :  { %3168 = vmatpush1.bf16.msra.mxu0 %v3167_v42  ;;  %v1563_v42 = vld [vmem:[#allocation12 + $0xaa8] sm:$0xff]  ;;  %v3459_v5 = vpack.c.bf16 %v1588_v4, %v1584_v3  ;;  %v1626_v4 = vld [vmem:[#allocation12 + $0xca0] sm:$0xff] }
 0x3c8   :  { %3424 = vmatpush1.bf16.msra.mxu1 %v3423_v24  ;;  %3170 = vmatprep.subr.bf16.mxu0 %v3169_v28  ;;  %v1561_v24 = vld [vmem:[#allocation12 + $0xa98] sm:$0xff]  ;;  %v3189_v19 = vpack.c.bf16 %v1563_v42, %v1559_v23  ;;  %v1592_v23 = vld [vmem:[#allocation12 + $0xb90] sm:$0xff] }
 0x3c9   :  { %3426 = vmatprep.subr.bf16.mxu1 %v3425_v31  ;;  %v1565_v28 = vld [vmem:[#allocation12 + $0xab8] sm:$0xff]  ;;  %v1558_v31 = vld [vmem:[#allocation12 + $0xa80] sm:$0xff] }
 0x3ca   :  { %v3445_v35 = vpack.c.bf16 %v1565_v28, %v1561_v24  ;;  %v3191_v40 = vpack.c.bf16 %v1562_v32, %v1558_v31  ;;  %v1596_v24 = vld [vmem:[#allocation12 + $0xbb0] sm:$0xff]  ;;  %v1599_v28 = vld [vmem:[#allocation12 + $0xbc8] sm:$0xff] }
 0x3cb   :  { %3172 = vmatpush1.bf16.msra.mxu0 %v3171_v39  ;;  %v1571_v39 = vld [vmem:[#allocation12 + $0xae8] sm:$0xff]  ;;  %v3463_v32 = vpack.c.bf16 %v1596_v24, %v1592_v23  ;;  %v1630_v23 = vld [vmem:[#allocation12 + $0xcc0] sm:$0xff]  ;;  %v1632_v24 = vld [vmem:[#allocation12 + $0xcd0] sm:$0xff] }
 0x3cc   :  { %3428 = vmatpush1.bf16.msra.mxu1 %v3427_v12  ;;  %3174 = vmatprep.subr.bf16.mxu0 %v3173_v13  ;;  %v1569_v12 = vld [vmem:[#allocation12 + $0xad8] sm:$0xff]  ;;  %v3193_v15 = vpack.c.bf16 %v1571_v39, %v1567_v37  ;;  %v1600_v37 = vld [vmem:[#allocation12 + $0xbd0] sm:$0xff] }
 0x3cd   :  { %3430 = vmatprep.subr.bf16.mxu1 %v3429_v43  ;;  %v1573_v13 = vld [vmem:[#allocation12 + $0xaf8] sm:$0xff]  ;;  %v1566_v43 = vld [vmem:[#allocation12 + $0xac0] sm:$0xff] }
 0x3ce   :  { %v3449_v18 = vpack.c.bf16 %v1573_v13, %v1569_v12  ;;  %v3195_v49 = vpack.c.bf16 %v1570_v44, %v1566_v43  ;;  %v1604_v12 = vld [vmem:[#allocation12 + $0xbf0] sm:$0xff]  ;;  %v1607_v13 = vld [vmem:[#allocation12 + $0xc08] sm:$0xff] }
 0x3cf   :  { %3176 = vmatpush1.bf16.msra.mxu0 %v3175_v47  ;;  %v1579_v47 = vld [vmem:[#allocation12 + $0xb28] sm:$0xff]  ;;  %v3467_v44 = vpack.c.bf16 %v1604_v12, %v1600_v37  ;;  %v1642_v37 = vld [vmem:[#allocation12 + $0xd20] sm:$0xff] }
 0x3d0   :  { %3432 = vmatpush1.bf16.msra.mxu1 %v3431_v1  ;;  %3178 = vmatprep.subr.bf16.mxu0 %v3177_v25  ;;  %v1577_v1 = vld [vmem:[#allocation12 + $0xb18] sm:$0xff]  ;;  %v3197_v53 = vpack.c.bf16 %v1579_v47, %v1575_v46  ;;  %v1608_v47 = vld [vmem:[#allocation12 + $0xc10] sm:$0xff] }
 0x3d1   :  { %3434 = vmatprep.subr.bf16.mxu1 %v3433_v45  ;;  %v1581_v25 = vld [vmem:[#allocation12 + $0xb38] sm:$0xff]  ;;  %v1574_v45 = vld [vmem:[#allocation12 + $0xb00] sm:$0xff] }
 0x3d2   :  { %v3453_v57 = vpack.c.bf16 %v1581_v25, %v1577_v1  ;;  %v3199_v62 = vpack.c.bf16 %v1578_v54, %v1574_v45  ;;  %v1612_v1 = vld [vmem:[#allocation12 + $0xc30] sm:$0xff]  ;;  %v1615_v25 = vld [vmem:[#allocation12 + $0xc48] sm:$0xff]  ;;  %v1621_v45 = vld [vmem:[#allocation12 + $0xc78] sm:$0xff] }
 0x3d3   :  { %3180 = vmatpush1.bf16.msra.mxu0 %v3179_v50  ;;  %v1587_v50 = vld [vmem:[#allocation12 + $0xb68] sm:$0xff]  ;;  %v3471_v54 = vpack.c.bf16 %v1612_v1, %v1608_v47  ;;  %v1648_v47 = vld [vmem:[#allocation12 + $0xd50] sm:$0xff] }
 0x3d4   :  { %3436 = vmatpush1.bf16.msra.mxu1 %v3435_v60  ;;  %3182 = vmatprep.subr.bf16.mxu0 %v3181_v61  ;;  %v1585_v60 = vld [vmem:[#allocation12 + $0xb58] sm:$0xff]  ;;  %v3201_v0 = vpack.c.bf16 %v1587_v50, %v1583_v59  ;;  %v1620_v50 = vld [vmem:[#allocation12 + $0xc70] sm:$0xff] }
 0x3d5   :  { %3438 = vmatprep.subr.bf16.mxu1 %v3437_v63  ;;  %v1589_v61 = vld [vmem:[#allocation12 + $0xb78] sm:$0xff]  ;;  %v1582_v63 = vld [vmem:[#allocation12 + $0xb40] sm:$0xff] }
 0x3d6   :  { %v3457_v27 = vpack.c.bf16 %v1589_v61, %v1585_v60  ;;  %v3203_v34 = vpack.c.bf16 %v1586_v58, %v1582_v63  ;;  %v1623_v60 = vld [vmem:[#allocation12 + $0xc88] sm:$0xff]  ;;  %v3475_v58 = vpack.c.bf16 %v1620_v50, %v1616_v14  ;;  %v1654_v14 = vld [vmem:[#allocation12 + $0xd80] sm:$0xff]  ;;  %v1656_v50 = vld [vmem:[#allocation12 + $0xd90] sm:$0xff] }
 0x3d7   :  { %3184 = vmatpush1.bf16.msra.mxu0 %v3183_v38  ;;  %v1595_v38 = vld [vmem:[#allocation12 + $0xba8] sm:$0xff] }
 0x3d8   :  { %3440 = vmatpush1.bf16.msra.mxu1 %v3439_v11  ;;  %3186 = vmatprep.subr.bf16.mxu0 %v3185_v6  ;;  %v1593_v11 = vld [vmem:[#allocation12 + $0xb98] sm:$0xff]  ;;  %v3205_v7 = vpack.c.bf16 %v1595_v38, %v1591_v21  ;;  %v1627_v61 = vld [vmem:[#allocation12 + $0xca8] sm:$0xff]  ;;  %v1624_v21 = vld [vmem:[#allocation12 + $0xc90] sm:$0xff] }
 0x3d9   :  { %3442 = vmatprep.subr.bf16.mxu1 %v3441_v17  ;;  %v1597_v6 = vld [vmem:[#allocation12 + $0xbb8] sm:$0xff]  ;;  %v1590_v17 = vld [vmem:[#allocation12 + $0xb80] sm:$0xff]  ;;  %v3221_v3 = vpack.c.bf16 %v1627_v61, %v1623_v60  ;;  %v1660_v61 = vld [vmem:[#allocation12 + $0xdb0] sm:$0xff] }
 0x3da   :  { %v3461_v42 = vpack.c.bf16 %v1597_v6, %v1593_v11  ;;  %v3207_v31 = vpack.c.bf16 %v1594_v2, %v1590_v17  ;;  %v1628_v11 = vld [vmem:[#allocation12 + $0xcb0] sm:$0xff]  ;;  %v1631_v6 = vld [vmem:[#allocation12 + $0xcc8] sm:$0xff] }
 0x3db   :  { %3188 = vmatpush1.bf16.msra.mxu0 %v3187_v26  ;;  %v1603_v26 = vld [vmem:[#allocation12 + $0xbe8] sm:$0xff]  ;;  %v3479_v17 = vpack.c.bf16 %v1628_v11, %v1624_v21  ;;  %v1666_v21 = vld [vmem:[#allocation12 + $0xde0] sm:$0xff] }
 0x3dc   :  { %3444 = vmatpush1.bf16.msra.mxu1 %v3443_v29  ;;  %3190 = vmatprep.subr.bf16.mxu0 %v3189_v19  ;;  %v1601_v29 = vld [vmem:[#allocation12 + $0xbd8] sm:$0xff]  ;;  %v3209_v33 = vpack.c.bf16 %v1603_v26, %v1599_v28  ;;  %v1639_v26 = vld [vmem:[#allocation12 + $0xd08] sm:$0xff] }
 0x3dd   :  { %3446 = vmatprep.subr.bf16.mxu1 %v3445_v35  ;;  %v1605_v19 = vld [vmem:[#allocation12 + $0xbf8] sm:$0xff]  ;;  %v1598_v35 = vld [vmem:[#allocation12 + $0xbc0] sm:$0xff] }
 0x3de   :  { %v3465_v39 = vpack.c.bf16 %v1605_v19, %v1601_v29  ;;  %v3211_v43 = vpack.c.bf16 %v1602_v36, %v1598_v35  ;;  %v1643_v29 = vld [vmem:[#allocation12 + $0xd28] sm:$0xff]  ;;  %v1641_v19 = vld [vmem:[#allocation12 + $0xd18] sm:$0xff]  ;;  %v1638_v36 = vld [vmem:[#allocation12 + $0xd00] sm:$0xff] }
 0x3df   :  { %3192 = vmatpush1.bf16.msra.mxu0 %v3191_v40  ;;  %v1611_v40 = vld [vmem:[#allocation12 + $0xc28] sm:$0xff]  ;;  %v3229_v35 = vpack.c.bf16 %v1643_v29, %v1639_v26  ;;  %v1676_v26 = vld [vmem:[#allocation12 + $0xe30] sm:$0xff] }
 0x3e0   :  { %3448 = vmatpush1.bf16.msra.mxu1 %v3447_v41  ;;  %3194 = vmatprep.subr.bf16.mxu0 %v3193_v15  ;;  %v1609_v41 = vld [vmem:[#allocation12 + $0xc18] sm:$0xff]  ;;  %v3213_v22 = vpack.c.bf16 %v1611_v40, %v1607_v13  ;;  %v1644_v13 = vld [vmem:[#allocation12 + $0xd30] sm:$0xff]  ;;  %v1647_v40 = vld [vmem:[#allocation12 + $0xd48] sm:$0xff] }
 0x3e1   :  { %3450 = vmatprep.subr.bf16.mxu1 %v3449_v18  ;;  %v1613_v15 = vld [vmem:[#allocation12 + $0xc38] sm:$0xff]  ;;  %v1606_v18 = vld [vmem:[#allocation12 + $0xc00] sm:$0xff]  ;;  %v1679_v29 = vld [vmem:[#allocation12 + $0xe48] sm:$0xff] }
 0x3e2   :  { %v3469_v46 = vpack.c.bf16 %v1613_v15, %v1609_v41  ;;  %v1651_v41 = vld [vmem:[#allocation12 + $0xd68] sm:$0xff]  ;;  %v1649_v15 = vld [vmem:[#allocation12 + $0xd58] sm:$0xff] }
 0x3e3   :  { %3196 = vmatpush1.bf16.msra.mxu0 %v3195_v49  ;;  %v1619_v49 = vld [vmem:[#allocation12 + $0xc68] sm:$0xff] }
 0x3e4   :  { %3452 = vmatpush1.bf16.msra.mxu1 %v3451_v52  ;;  %3198 = vmatprep.subr.bf16.mxu0 %v3197_v53  ;;  %v3215_v52 = vpack.c.bf16 %v1610_v20, %v1606_v18  ;;  %v1617_v53 = vld [vmem:[#allocation12 + $0xc58] sm:$0xff]  ;;  %v3217_v59 = vpack.c.bf16 %v1619_v49, %v1615_v25  ;;  %v3233_v18 = vpack.c.bf16 %v1651_v41, %v1647_v40  ;;  %v1646_v20 = vld [vmem:[#allocation12 + $0xd40] sm:$0xff]  ;;  %v1652_v25 = vld [vmem:[#allocation12 + $0xd70] sm:$0xff] }
 0x3e5   :  { %3454 = vmatprep.subr.bf16.mxu1 %v3453_v57  ;;  %v1618_v57 = vld [vmem:[#allocation12 + $0xc60] sm:$0xff]  ;;  %v1655_v49 = vld [vmem:[#allocation12 + $0xd88] sm:$0xff]  ;;  %v1684_v40 = vld [vmem:[#allocation12 + $0xe70] sm:$0xff] }
 0x3e6   :  { %v3219_v63 = vpack.c.bf16 %v1618_v57, %v1614_v56  ;;  %v3491_v56 = vpack.c.bf16 %v1652_v25, %v1648_v47  ;;  %v1687_v41 = vld [vmem:[#allocation12 + $0xe88] sm:$0xff]  ;;  %v1690_v47 = vld [vmem:[#allocation12 + $0xea0] sm:$0xff] }
 0x3e7   :  { %3200 = vmatpush1.bf16.msra.mxu0 %v3199_v62  ;;  %v3473_v62 = vpack.c.bf16 %v1621_v45, %v1617_v53  ;;  %v1657_v53 = vld [vmem:[#allocation12 + $0xd98] sm:$0xff] }
 0x3e8   :  { %3456 = vmatpush1.bf16.msra.mxu1 %v3455_v16  ;;  %3202 = vmatprep.subr.bf16.mxu0 %v3201_v0  ;;  %v1625_v16 = vld [vmem:[#allocation12 + $0xc98] sm:$0xff] }
 0x3e9   :  { %3458 = vmatprep.subr.bf16.mxu1 %v3457_v27  ;;  %v1629_v0 = vld [vmem:[#allocation12 + $0xcb8] sm:$0xff]  ;;  %v1622_v27 = vld [vmem:[#allocation12 + $0xc80] sm:$0xff] }
 0x3ea   :  { %v3477_v38 = vpack.c.bf16 %v1629_v0, %v1625_v16  ;;  %v1661_v45 = vld [vmem:[#allocation12 + $0xdb8] sm:$0xff]  ;;  %v1667_v16 = vld [vmem:[#allocation12 + $0xde8] sm:$0xff] }
 0x3eb   :  { %3204 = vmatpush1.bf16.msra.mxu0 %v3203_v34  ;;  %v1635_v34 = vld [vmem:[#allocation12 + $0xce8] sm:$0xff]  ;;  %v3493_v60 = vpack.c.bf16 %v1661_v45, %v1657_v53  ;;  %v1665_v0 = vld [vmem:[#allocation12 + $0xdd8] sm:$0xff] }
 0x3ec   :  { %3460 = vmatpush1.bf16.msra.mxu1 %v3459_v5  ;;  %3206 = vmatprep.subr.bf16.mxu0 %v3205_v7  ;;  %v1633_v5 = vld [vmem:[#allocation12 + $0xcd8] sm:$0xff]  ;;  %v3223_v7 = vpack.c.bf16 %v1626_v4, %v1622_v27  ;;  %v3225_v2 = vpack.c.bf16 %v1635_v34, %v1631_v6  ;;  %v1662_v4 = vld [vmem:[#allocation12 + $0xdc0] sm:$0xff]  ;;  %v1668_v6 = vld [vmem:[#allocation12 + $0xdf0] sm:$0xff] }
 0x3ed   :  { %3462 = vmatprep.subr.bf16.mxu1 %v3461_v42  ;;  %v1634_v42 = vld [vmem:[#allocation12 + $0xce0] sm:$0xff]  ;;  %v1671_v34 = vld [vmem:[#allocation12 + $0xe08] sm:$0xff]  ;;  %v1697_v45 = vld [vmem:[#allocation12 + $0xed8] sm:$0xff] }
 0x3ee   :  { %v1699_v53 = vld [vmem:[#allocation12 + $0xee8] sm:$0xff] }
 0x3ef   :  { %3208 = vmatpush1.bf16.msra.mxu0 %v3207_v31  ;;  %v1645_v31 = vld [vmem:[#allocation12 + $0xd38] sm:$0xff] }
 0x3f0   :  { %3464 = vmatpush1.bf16.msra.mxu1 %v3463_v32  ;;  %3210 = vmatprep.subr.bf16.mxu0 %v3209_v33  ;;  %v3227_v32 = vpack.c.bf16 %v1634_v42, %v1630_v23  ;;  %v3485_v12 = vpack.c.bf16 %v1645_v31, %v1641_v19  ;;  %v1670_v42 = vld [vmem:[#allocation12 + $0xe00] sm:$0xff]  ;;  %v1683_v19 = vld [vmem:[#allocation12 + $0xe68] sm:$0xff]  ;;  %v1681_v31 = vld [vmem:[#allocation12 + $0xe58] sm:$0xff] }
 0x3f1   :  { %3466 = vmatprep.subr.bf16.mxu1 %v3465_v39  ;;  %v1640_v39 = vld [vmem:[#allocation12 + $0xd10] sm:$0xff] }
 0x3f3   :  { %3212 = vmatpush1.bf16.msra.mxu0 %v3211_v43  ;;  %v1653_v43 = vld [vmem:[#allocation12 + $0xd78] sm:$0xff] }
 0x3f4   :  { %3468 = vmatpush1.bf16.msra.mxu1 %v3467_v44  ;;  %3214 = vmatprep.subr.bf16.mxu0 %v3213_v22  ;;  %v3231_v44 = vpack.c.bf16 %v1642_v37, %v1638_v36  ;;  %v3487_v22 = vpack.c.bf16 %v1644_v13, %v1640_v39  ;;  %v3489_v1 = vpack.c.bf16 %v1653_v43, %v1649_v15  ;;  %v1678_v37 = vld [vmem:[#allocation12 + $0xe40] sm:$0xff]  ;;  %v1691_v15 = vld [vmem:[#allocation12 + $0xea8] sm:$0xff]  ;;  %v1689_v43 = vld [vmem:[#allocation12 + $0xe98] sm:$0xff] }
 0x3f5   :  { %3470 = vmatprep.subr.bf16.mxu1 %v3469_v46  ;;  %v1650_v46 = vld [vmem:[#allocation12 + $0xd60] sm:$0xff]  ;;  %v3249_v36 = vpack.c.bf16 %v1683_v19, %v1679_v29  ;;  %v1716_v29 = vld [vmem:[#allocation12 + $0xf70] sm:$0xff]  ;;  %v1719_v19 = vld [vmem:[#allocation12 + $0xf88] sm:$0xff] }
 0x3f6   :  { %1941 = vmatmul.mubr.f32.vlgmr.msra.gmra.mrb[8].mxu0 %v4343_v51  ;;  %v1682_v39 = vld [vmem:[#allocation12 + $0xe60] sm:$0xff] }
 0x3f7   :  { %2225 = vmatmul.mubr.f32.vlgmr.msra.gmra.mrb[32].mxu1 %v4343_v51  ;;  %3216 = vmatpush1.bf16.msra.mxu0 %v3215_v52  ;;  %v1637_v51 = vld [vmem:[#allocation12 + $0xcf8] sm:$0xff]  ;;  %v1659_v52 = vld [vmem:[#allocation12 + $0xda8] sm:$0xff] }
 0x3f8   :  { %2011 = vmatprep.mubr.f32.mxu0 %v4389_v9  ;;  %3472 = vmatpush1.bf16.msra.mxu1 %v3471_v54  ;;  %v3481_v28 = vpack.c.bf16 %v1637_v51, %v1633_v5  ;;  %v3235_v54 = vpack.c.bf16 %v1650_v46, %v1646_v20  ;;  %v3237_v57 = vpack.c.bf16 %v1659_v52, %v1655_v49  ;;  %v1675_v5 = vld [vmem:[#allocation12 + $0xe28] sm:$0xff]  ;;  %v1673_v51 = vld [vmem:[#allocation12 + $0xe18] sm:$0xff]  ;;  %v1686_v46 = vld [vmem:[#allocation12 + $0xe80] sm:$0xff] }
 0x3f9   :  { %2295 = vmatprep.mubr.f32.mxu1 %v4389_v9  ;;  %3218 = vmatprep.subr.bf16.mxu0 %v3217_v59  ;;  %v1636_v9 = vld [vmem:[#allocation12 + $0xcf0] sm:$0xff]  ;;  %v1658_v59 = vld [vmem:[#allocation12 + $0xda0] sm:$0xff]  ;;  %v3245_v23 = vpack.c.bf16 %v1675_v5, %v1671_v34  ;;  %v3253_v20 = vpack.c.bf16 %v1691_v15, %v1687_v41  ;;  %v1695_v52 = vld [vmem:[#allocation12 + $0xec8] sm:$0xff] }
 0x3fa   :  { %3474 = vmatprep.subr.bf16.mxu1 %v3473_v62  ;;  %v3483_v33 = vpack.c.bf16 %v1636_v9, %v1632_v24  ;;  %v1663_v62 = vld [vmem:[#allocation12 + $0xdc8] sm:$0xff]  ;;  %v1674_v24 = vld [vmem:[#allocation12 + $0xe20] sm:$0xff]  ;;  %v1692_v49 = vld [vmem:[#allocation12 + $0xeb0] sm:$0xff] }
 0x3fb   :  { %3220 = vmatpush1.bf16.msra.mxu0 %v3219_v63  ;;  %v1669_v63 = vld [vmem:[#allocation12 + $0xdf8] sm:$0xff]  ;;  %v3241_v27 = vpack.c.bf16 %v1667_v16, %v1663_v62  ;;  %v1700_v62 = vld [vmem:[#allocation12 + $0xef0] sm:$0xff]  ;;  %v1703_v16 = vld [vmem:[#allocation12 + $0xf08] sm:$0xff] }
 0x3fc   :  { %3476 = vmatpush1.bf16.msra.mxu1 %v3475_v58  ;;  %3222 = vmatprep.subr.bf16.mxu0 %v3221_v3  ;;  %v3239_v58 = vpack.c.bf16 %v1658_v59, %v1654_v14  ;;  %v3495_v3 = vpack.c.bf16 %v1660_v61, %v1656_v50  ;;  %v3497_v11 = vpack.c.bf16 %v1669_v63, %v1665_v0  ;;  %v1694_v59 = vld [vmem:[#allocation12 + $0xec0] sm:$0xff]  ;;  %v1707_v0 = vld [vmem:[#allocation12 + $0xf28] sm:$0xff]  ;;  %v1705_v63 = vld [vmem:[#allocation12 + $0xf18] sm:$0xff] }
 0x3fd   :  { %3478 = vmatprep.subr.bf16.mxu1 %v3477_v38  ;;  %v1664_v38 = vld [vmem:[#allocation12 + $0xdd0] sm:$0xff]  ;;  %v3257_v14 = vpack.c.bf16 %v1699_v53, %v1695_v52  ;;  %v1698_v50 = vld [vmem:[#allocation12 + $0xee0] sm:$0xff]  ;;  %v1711_v5 = vld [vmem:[#allocation12 + $0xf48] sm:$0xff] }
 0x3fe   :  { %v1708_v34 = vld [vmem:[#allocation12 + $0xf30] sm:$0xff]  ;;  %v1727_v15 = vld [vmem:[#allocation12 + $0xfc8] sm:$0xff] }
 0x3ff   :  { %3224 = vmatpush1.bf16.msra.mxu0 %v3223_v7  ;;  %v1677_v7 = vld [vmem:[#allocation12 + $0xe38] sm:$0xff]  ;;  %v1724_v41 = vld [vmem:[#allocation12 + $0xfb0] sm:$0xff] }
 0x400   :  { %3480 = vmatpush1.bf16.msra.mxu1 %v3479_v17  ;;  %3226 = vmatprep.subr.bf16.mxu0 %v3225_v2  ;;  %v3243_v17 = vpack.c.bf16 %v1666_v21, %v1662_v4  ;;  %v3499_v2 = vpack.c.bf16 %v1668_v6, %v1664_v38  ;;  %v3501_v9 = vpack.c.bf16 %v1677_v7, %v1673_v51  ;;  %v1702_v21 = vld [vmem:[#allocation12 + $0xf00] sm:$0xff]  ;;  %v1715_v51 = vld [vmem:[#allocation12 + $0xf68] sm:$0xff]  ;;  %v1713_v7 = vld [vmem:[#allocation12 + $0xf58] sm:$0xff] }
 0x401   :  { %3482 = vmatprep.subr.bf16.mxu1 %v3481_v28  ;;  %v1672_v28 = vld [vmem:[#allocation12 + $0xe10] sm:$0xff]  ;;  %v3261_v4 = vpack.c.bf16 %v1707_v0, %v1703_v16  ;;  %v1706_v38 = vld [vmem:[#allocation12 + $0xf20] sm:$0xff]  ;;  %v2363_v16 = vld [vmem:[#allocation15 + $0x20] sm:$0xff] }
 0x402   :  { %v1732_v52 = vld [vmem:[#allocation12 + $0xff0] sm:$0xff]  ;;  %v2365_v0 = vld [vmem:[#allocation15 + $0x30] sm:$0xff] }
 0x403   :  { %3228 = vmatpush1.bf16.msra.mxu0 %v3227_v32  ;;  %v1685_v32 = vld [vmem:[#allocation12 + $0xe78] sm:$0xff]  ;;  %v2360_v53 = vld [vmem:[#allocation15 + $0x8] sm:$0xff] }
 0x404   :  { %3484 = vmatpush1.bf16.msra.mxu1 %v3483_v33  ;;  %3230 = vmatprep.subr.bf16.mxu0 %v3229_v35  ;;  %v3247_v33 = vpack.c.bf16 %v1674_v24, %v1670_v42  ;;  %v3503_v35 = vpack.c.bf16 %v1676_v26, %v1672_v28  ;;  %v3505_v13 = vpack.c.bf16 %v1685_v32, %v1681_v31  ;;  %v1710_v24 = vld [vmem:[#allocation12 + $0xf40] sm:$0xff]  ;;  %v1723_v31 = vld [vmem:[#allocation12 + $0xfa8] sm:$0xff]  ;;  %v1721_v32 = vld [vmem:[#allocation12 + $0xf98] sm:$0xff] }
 0x405   :  { %3486 = vmatprep.subr.bf16.mxu1 %v3485_v12  ;;  %v1680_v12 = vld [vmem:[#allocation12 + $0xe50] sm:$0xff]  ;;  %v3265_v42 = vpack.c.bf16 %v1715_v51, %v1711_v5  ;;  %v1714_v28 = vld [vmem:[#allocation12 + $0xf60] sm:$0xff]  ;;  %v2371_v5 = vld [vmem:[#allocation15 + $0x60] sm:$0xff] }
 0x406   :  { %v2373_v51 = vld [vmem:[#allocation15 + $0x70] sm:$0xff] }
 0x407   :  { %3232 = vmatpush1.bf16.msra.mxu0 %v3231_v44  ;;  %v1693_v44 = vld [vmem:[#allocation12 + $0xeb8] sm:$0xff] }
 0x408   :  { %3488 = vmatpush1.bf16.msra.mxu1 %v3487_v22  ;;  %3234 = vmatprep.subr.bf16.mxu0 %v3233_v18  ;;  %v3251_v22 = vpack.c.bf16 %v1682_v39, %v1678_v37  ;;  %v3507_v18 = vpack.c.bf16 %v1684_v40, %v1680_v12  ;;  %v3509_v25 = vpack.c.bf16 %v1693_v44, %v1689_v43  ;;  %v1718_v39 = vld [vmem:[#allocation12 + $0xf80] sm:$0xff]  ;;  %v1731_v43 = vld [vmem:[#allocation12 + $0xfe8] sm:$0xff]  ;;  %v1729_v44 = vld [vmem:[#allocation12 + $0xfd8] sm:$0xff] }
 0x409   :  { %3490 = vmatprep.subr.bf16.mxu1 %v3489_v1  ;;  %v1688_v1 = vld [vmem:[#allocation12 + $0xe90] sm:$0xff]  ;;  %v3269_v37 = vpack.c.bf16 %v1723_v31, %v1719_v19  ;;  %v1722_v12 = vld [vmem:[#allocation12 + $0xfa0] sm:$0xff]  ;;  %v2381_v19 = vld [vmem:[#allocation15 + $0xb0] sm:$0xff] }
 0x40a   :  { %v2384_v31 = vld [vmem:[#allocation15 + $0xc8] sm:$0xff] }
 0x40b   :  { %3236 = vmatpush1.bf16.msra.mxu0 %v3235_v54  ;;  %v1701_v54 = vld [vmem:[#allocation12 + $0xef8] sm:$0xff] }
 0x40c   :  { %3492 = vmatpush1.bf16.msra.mxu1 %v3491_v56  ;;  %3238 = vmatprep.subr.bf16.mxu0 %v3237_v57  ;;  %v3255_v56 = vpack.c.bf16 %v1690_v47, %v1686_v46  ;;  %v3511_v57 = vpack.c.bf16 %v1692_v49, %v1688_v1  ;;  %v3513_v61 = vpack.c.bf16 %v1701_v54, %v1697_v45  ;;  %v1726_v47 = vld [vmem:[#allocation12 + $0xfc0] sm:$0xff] }
 0x40d   :  { %3494 = vmatprep.subr.bf16.mxu1 %v3493_v60  ;;  %v1696_v60 = vld [vmem:[#allocation12 + $0xed0] sm:$0xff]  ;;  %v3273_v46 = vpack.c.bf16 %v1731_v43, %v1727_v15  ;;  %v1730_v1 = vld [vmem:[#allocation12 + $0xfe0] sm:$0xff]  ;;  %v2389_v15 = vld [vmem:[#allocation15 + $0xf0] sm:$0xff] }
 0x40e   :  { %v2362_v45 = vld [vmem:[#allocation15 + $0x18] sm:$0xff]  ;;  %v3275_v54 = vpack.c.bf16 %v1730_v1, %v1726_v47  ;;  %v2392_v43 = vld [vmem:[#allocation15 + $0x108] sm:$0xff] }
 0x40f   :  { %3240 = vmatpush1.bf16.msra.mxu0 %v3239_v58  ;;  %v1709_v58 = vld [vmem:[#allocation12 + $0xf38] sm:$0xff]  ;;  %v2396_v47 = vld [vmem:[#allocation15 + $0x128] sm:$0xff]  ;;  %v2398_v1 = vld [vmem:[#allocation15 + $0x138] sm:$0xff] }
 0x410   :  { %3496 = vmatpush1.bf16.msra.mxu1 %v3495_v3  ;;  %3242 = vmatprep.subr.bf16.mxu0 %v3241_v27  ;;  %v3259_v3 = vpack.c.bf16 %v1698_v50, %v1694_v59  ;;  %v3515_v27 = vpack.c.bf16 %v1700_v62, %v1696_v60  ;;  %v3517_v6 = vpack.c.bf16 %v1709_v58, %v1705_v63  ;;  %v2361_v59 = vld [vmem:[#allocation15 + $0x10] sm:$0xff]  ;;  %v2364_v50 = vld [vmem:[#allocation15 + $0x28] sm:$0xff]  ;;  %v2366_v60 = vld [vmem:[#allocation15 + $0x38] sm:$0xff] }
 0x411   :  { %3498 = vmatprep.subr.bf16.mxu1 %v3497_v11  ;;  %v1704_v11 = vld [vmem:[#allocation12 + $0xf10] sm:$0xff]  ;;  %v3537_v62 = vpack.c.bf16 %v2366_v60, %v2364_v50  ;;  %v2370_v58 = vld [vmem:[#allocation15 + $0x58] sm:$0xff] }
 0x412   :  { %v2368_v63 = vld [vmem:[#allocation15 + $0x48] sm:$0xff]  ;;  %v2406_v60 = vld [vmem:[#allocation15 + $0x178] sm:$0xff] }
 0x413   :  { %3244 = vmatpush1.bf16.msra.mxu0 %v3243_v17  ;;  %v1717_v17 = vld [vmem:[#allocation12 + $0xf78] sm:$0xff]  ;;  %v2404_v50 = vld [vmem:[#allocation15 + $0x168] sm:$0xff] }
 0x414   :  { %3500 = vmatpush1.bf16.msra.mxu1 %v3499_v2  ;;  %3246 = vmatprep.subr.bf16.mxu0 %v3245_v23  ;;  %v3263_v2 = vpack.c.bf16 %v1706_v38, %v1702_v21  ;;  %v3519_v23 = vpack.c.bf16 %v1708_v34, %v1704_v11  ;;  %v3521_v26 = vpack.c.bf16 %v1717_v17, %v1713_v7  ;;  %v2369_v21 = vld [vmem:[#allocation15 + $0x50] sm:$0xff]  ;;  %v2372_v38 = vld [vmem:[#allocation15 + $0x68] sm:$0xff]  ;;  %v2374_v11 = vld [vmem:[#allocation15 + $0x78] sm:$0xff] }
 0x415   :  { %3502 = vmatprep.subr.bf16.mxu1 %v3501_v9  ;;  %v1712_v9 = vld [vmem:[#allocation12 + $0xf50] sm:$0xff]  ;;  %v3545_v34 = vpack.c.bf16 %v2374_v11, %v2372_v38  ;;  %v2378_v17 = vld [vmem:[#allocation15 + $0x98] sm:$0xff] }
 0x416   :  { %v2376_v7 = vld [vmem:[#allocation15 + $0x88] sm:$0xff]  ;;  %v2414_v11 = vld [vmem:[#allocation15 + $0x1b8] sm:$0xff] }
 0x417   :  { %3248 = vmatpush1.bf16.msra.mxu0 %v3247_v33  ;;  %v1725_v33 = vld [vmem:[#allocation12 + $0xfb8] sm:$0xff]  ;;  %v2412_v38 = vld [vmem:[#allocation15 + $0x1a8] sm:$0xff] }
 0x418   :  { %3504 = vmatpush1.bf16.msra.mxu1 %v3503_v35  ;;  %3250 = vmatprep.subr.bf16.mxu0 %v3249_v36  ;;  %v3267_v35 = vpack.c.bf16 %v1714_v28, %v1710_v24  ;;  %v3523_v36 = vpack.c.bf16 %v1716_v29, %v1712_v9  ;;  %v3525_v40 = vpack.c.bf16 %v1725_v33, %v1721_v32  ;;  %v2380_v24 = vld [vmem:[#allocation15 + $0xa8] sm:$0xff]  ;;  %v2382_v28 = vld [vmem:[#allocation15 + $0xb8] sm:$0xff]  ;;  %v2379_v29 = vld [vmem:[#allocation15 + $0xa0] sm:$0xff] }
 0x419   :  { %3506 = vmatprep.subr.bf16.mxu1 %v3505_v13  ;;  %v1720_v13 = vld [vmem:[#allocation12 + $0xf90] sm:$0xff]  ;;  %v2386_v32 = vld [vmem:[#allocation15 + $0xd8] sm:$0xff]  ;;  %v3555_v33 = vpack.c.bf16 %v2381_v19, %v2379_v29  ;;  %v2421_v29 = vld [vmem:[#allocation15 + $0x1f0] sm:$0xff] }
 0x41b   :  { %3252 = vmatpush1.bf16.msra.mxu0 %v3251_v22  ;;  %v1733_v22 = vld [vmem:[#allocation12 + $0xff8] sm:$0xff] }
 0x41c   :  { %3508 = vmatpush1.bf16.msra.mxu1 %v3507_v18  ;;  %3254 = vmatprep.subr.bf16.mxu0 %v3253_v20  ;;  %v3271_v18 = vpack.c.bf16 %v1722_v12, %v1718_v39  ;;  %v3527_v20 = vpack.c.bf16 %v1724_v41, %v1720_v13  ;;  %v3529_v49 = vpack.c.bf16 %v1733_v22, %v1729_v44  ;;  %v2388_v39 = vld [vmem:[#allocation15 + $0xe8] sm:$0xff]  ;;  %v2390_v12 = vld [vmem:[#allocation15 + $0xf8] sm:$0xff]  ;;  %v2387_v41 = vld [vmem:[#allocation15 + $0xe0] sm:$0xff] }
 0x41d   :  { %3510 = vmatprep.subr.bf16.mxu1 %v3509_v25  ;;  %v1728_v25 = vld [vmem:[#allocation12 + $0xfd0] sm:$0xff]  ;;  %v2394_v44 = vld [vmem:[#allocation15 + $0x118] sm:$0xff]  ;;  %v3563_v22 = vpack.c.bf16 %v2389_v15, %v2387_v41 }
 0x41e   :  { %v2679_v41 = vld [vmem:[%s4526_s11 + $0x98] sm:$0xff] }
 0x41f   :  { %3256 = vmatpush1.bf16.msra.mxu0 %v3255_v56  ;;  %v3531_v56 = vpack.c.bf16 %v1732_v52, %v1728_v25  ;;  %v2395_v52 = vld [vmem:[#allocation15 + $0x120] sm:$0xff] }
 0x420   :  { %3512 = vmatpush1.bf16.msra.mxu1 %v3511_v57  ;;  %3258 = vmatprep.subr.bf16.mxu0 %v3257_v14  ;;  %v3533_v57 = vpack.c.bf16 %v2362_v45, %v2360_v53  ;;  %v2359_v14 = vld [vmem:[#allocation15] sm:$0xff]  ;;  %v2397_v53 = vld [vmem:[#allocation15 + $0x130] sm:$0xff]  ;;  %v2400_v45 = vld [vmem:[#allocation15 + $0x148] sm:$0xff] }
 0x421   :  { %3514 = vmatprep.subr.bf16.mxu1 %v3513_v61  ;;  %v3535_v61 = vpack.c.bf16 %v2361_v59, %v2359_v14  ;;  %v2399_v14 = vld [vmem:[#allocation15 + $0x140] sm:$0xff]  ;;  %v2401_v59 = vld [vmem:[#allocation15 + $0x150] sm:$0xff] }
 0x423   :  { %3260 = vmatpush1.bf16.msra.mxu0 %v3259_v3  ;;  %v3539_v3 = vpack.c.bf16 %v2365_v0, %v2363_v16  ;;  %v2403_v16 = vld [vmem:[#allocation15 + $0x160] sm:$0xff]  ;;  %v2405_v0 = vld [vmem:[#allocation15 + $0x170] sm:$0xff] }
 0x424   :  { %3516 = vmatpush1.bf16.msra.mxu1 %v3515_v27  ;;  %3262 = vmatprep.subr.bf16.mxu0 %v3261_v4  ;;  %v3541_v27 = vpack.c.bf16 %v2370_v58, %v2368_v63  ;;  %v2367_v4 = vld [vmem:[#allocation15 + $0x40] sm:$0xff]  ;;  %v2408_v63 = vld [vmem:[#allocation15 + $0x188] sm:$0xff]  ;;  %v2410_v58 = vld [vmem:[#allocation15 + $0x198] sm:$0xff] }
 0x425   :  { %3518 = vmatprep.subr.bf16.mxu1 %v3517_v6  ;;  %v3543_v6 = vpack.c.bf16 %v2369_v21, %v2367_v4  ;;  %v2407_v4 = vld [vmem:[#allocation15 + $0x180] sm:$0xff]  ;;  %v2409_v21 = vld [vmem:[#allocation15 + $0x190] sm:$0xff] }
 0x427   :  { %3264 = vmatpush1.bf16.msra.mxu0 %v3263_v2  ;;  %v3547_v2 = vpack.c.bf16 %v2373_v51, %v2371_v5  ;;  %v2411_v5 = vld [vmem:[#allocation15 + $0x1a0] sm:$0xff]  ;;  %v2413_v51 = vld [vmem:[#allocation15 + $0x1b0] sm:$0xff] }
 0x428   :  { %3520 = vmatpush1.bf16.msra.mxu1 %v3519_v23  ;;  %3266 = vmatprep.subr.bf16.mxu0 %v3265_v42  ;;  %v2375_v23 = vld [vmem:[#allocation15 + $0x80] sm:$0xff]  ;;  %v2377_v42 = vld [vmem:[#allocation15 + $0x90] sm:$0xff] }
 0x429   :  { %3522 = vmatprep.subr.bf16.mxu1 %v3521_v26  ;;  %v3551_v9 = vpack.c.bf16 %v2377_v42, %v2375_v23  ;;  %v3553_v26 = vpack.c.bf16 %v2382_v28, %v2380_v24  ;;  %v2415_v23 = vld [vmem:[#allocation15 + $0x1c0] sm:$0xff]  ;;  %v2417_v42 = vld [vmem:[#allocation15 + $0x1d0] sm:$0xff]  ;;  %v2420_v24 = vld [vmem:[#allocation15 + $0x1e8] sm:$0xff] }
 0x42a   :  { %v3591_v28 = vpack.c.bf16 %v2417_v42, %v2415_v23 }
 0x42b   :  { %3268 = vmatpush1.bf16.msra.mxu0 %v3267_v35  ;;  %v3557_v35 = vpack.c.bf16 %v2386_v32, %v2384_v31  ;;  %v2424_v31 = vld [vmem:[#allocation15 + $0x208] sm:$0xff]  ;;  %v2426_v32 = vld [vmem:[#allocation15 + $0x218] sm:$0xff] }
 0x42c   :  { %3524 = vmatpush1.bf16.msra.mxu1 %v3523_v36  ;;  %3270 = vmatprep.subr.bf16.mxu0 %v3269_v37  ;;  %v2383_v36 = vld [vmem:[#allocation15 + $0xc0] sm:$0xff]  ;;  %v2385_v37 = vld [vmem:[#allocation15 + $0xd0] sm:$0xff] }
 0x42d   :  { %3526 = vmatprep.subr.bf16.mxu1 %v3525_v40  ;;  %v3559_v13 = vpack.c.bf16 %v2385_v37, %v2383_v36  ;;  %v3561_v40 = vpack.c.bf16 %v2390_v12, %v2388_v39  ;;  %v2676_v36 = vld [vmem:[%s4526_s11 + $0x80] sm:$0xff]  ;;  %v2677_v37 = vld [vmem:[%s4526_s11 + $0x88] sm:$0xff] }
 0x42e   :  { %v2660_v39 = vld [vmem:[%s4526_s11] sm:$0xff]  ;;  %v3661_v12 = vpack.c.bf16 %v2677_v37, %v2676_v36  ;;  %v2430_v36 = vld [vmem:[#allocation15 + $0x238] sm:$0xff] }
 0x42f   :  { %3272 = vmatpush1.bf16.msra.mxu0 %v3271_v18  ;;  %v3565_v18 = vpack.c.bf16 %v2394_v44, %v2392_v43  ;;  %v2662_v44 = vld [vmem:[%s4526_s11 + $0x10] sm:$0xff] }
 0x430   :  { %3528 = vmatpush1.bf16.msra.mxu1 %v3527_v20  ;;  %3274 = vmatprep.subr.bf16.mxu0 %v3273_v46  ;;  %v2391_v20 = vld [vmem:[#allocation15 + $0x100] sm:$0xff]  ;;  %v2393_v46 = vld [vmem:[#allocation15 + $0x110] sm:$0xff] }
 0x431   :  { %3530 = vmatprep.subr.bf16.mxu1 %v3529_v49  ;;  %v3567_v25 = vpack.c.bf16 %v2393_v46, %v2391_v20  ;;  %v3569_v49 = vpack.c.bf16 %v2398_v1, %v2396_v47  ;;  %v2681_v20 = vld [vmem:[%s4526_s11 + $0xa8] sm:$0xff]  ;;  %v2664_v1 = vld [vmem:[%s4526_s11 + $0x20] sm:$0xff] }
 0x433   :  { %3276 = vmatpush1.bf16.msra.mxu0 %v3275_v54  ;;  %v2402_v54 = vld [vmem:[#allocation15 + $0x158] sm:$0xff] }
 0x434   :  { %3532 = vmatpush1.bf16.msra.mxu1 %v3531_v56  ;;  %3534 = vmatprep.subr.bf16.mxu0 %v3533_v57  ;;  %v3571_v56 = vpack.c.bf16 %v2397_v53, %v2395_v52  ;;  %v3573_v57 = vpack.c.bf16 %v2402_v54, %v2400_v45  ;;  %v2683_v52 = vld [vmem:[%s4526_s11 + $0xb8] sm:$0xff]  ;;  %v2666_v54 = vld [vmem:[%s4526_s11 + $0x30] sm:$0xff] }
 0x435   :  { %3662 = vmatprep.subr.bf16.mxu1 %v3661_v12 }
 0x436   :  { %2012 = vmatmul.mubr.f32.vlgmr.msra.gmra.mrb[8].mxu0 %v4386_v30 }
 0x437   :  { %2296 = vmatmul.mubr.f32.vlgmr.msra.gmra.mrb[32].mxu1 %v4386_v30  ;;  %3536 = vmatpush1.bf16.msra.mxu0 %v3535_v61  ;;  %v3549_v30 = vpack.c.bf16 %v2378_v17, %v2376_v7  ;;  %v3575_v61 = vpack.c.bf16 %v2401_v59, %v2399_v14  ;;  %v3587_v7 = vpack.c.bf16 %v2413_v51, %v2411_v5  ;;  %v2416_v17 = vld [vmem:[#allocation15 + $0x1c8] sm:$0xff] }
 0x438   :  { %3538 = vmatprep.subr.bf16.mxu0 %v3537_v62  ;;  %v3577_v62 = vpack.c.bf16 %v2406_v60, %v2404_v50  ;;  %v2685_v14 = vld [vmem:[%s4526_s11 + $0xc8] sm:$0xff]  ;;  %v2668_v60 = vld [vmem:[%s4526_s11 + $0x40] sm:$0xff] }
 0x43b   :  { %3540 = vmatpush1.bf16.msra.mxu0 %v3539_v3  ;;  %v3579_v3 = vpack.c.bf16 %v2405_v0, %v2403_v16  ;;  %v2687_v16 = vld [vmem:[%s4526_s11 + $0xd8] sm:$0xff] }
 0x43c   :  { %3542 = vmatprep.subr.bf16.mxu0 %v3541_v27  ;;  %v3581_v27 = vpack.c.bf16 %v2410_v58, %v2408_v63  ;;  %v2670_v58 = vld [vmem:[%s4526_s11 + $0x50] sm:$0xff] }
 0x43f   :  { %3544 = vmatpush1.bf16.msra.mxu0 %v3543_v6  ;;  %v3583_v6 = vpack.c.bf16 %v2409_v21, %v2407_v4  ;;  %v2302_v4 = vld [vmem:[#allocation13] ss:$2 sm:$0xf]  ;;  %v2329_v21 = vld [vmem:[#allocation13 + $0x1] ss:$2 sm:$0xf] }
 0x440   :  { %3546 = vmatprep.subr.bf16.mxu0 %v3545_v34  ;;  %v3585_v34 = vpack.c.bf16 %v2414_v11, %v2412_v38  ;;  %v2307_v38 = vrot.slane %v2302_v4, %v4266_v8  ;;  %v2315_v11 = vrot.slane %v2302_v4, %v4302_v48  ;;  %v2319_v5 = vrot.slane %v2302_v4, %v4305_v55 }
 0x441   :  { %v2346_v42 = vrot.slane %v2329_v21, %v4305_v55 }
 0x443   :  { %3548 = vmatpush1.bf16.msra.mxu0 %v3547_v2  ;;  %v2418_v2 = vld [vmem:[#allocation15 + $0x1d8] sm:$0xff] }
 0x444   :  { %3550 = vmatprep.subr.bf16.mxu0 %v3549_v30  ;;  %v3589_v30 = vpack.c.bf16 %v2418_v2, %v2416_v17  ;;  %v2338_v17 = vrot.slane %v2329_v21, %v4272_v10 }
 0x447   :  { %3552 = vmatpush1.bf16.msra.mxu0 %v3551_v9  ;;  %v2422_v9 = vld [vmem:[#allocation15 + $0x1f8] sm:$0xff] }
 0x448   :  { %3554 = vmatprep.subr.bf16.mxu0 %v3553_v26  ;;  %v2419_v26 = vld [vmem:[#allocation15 + $0x1e0] sm:$0xff]  ;;  %v3593_v19 = vpack.c.bf16 %v2422_v9, %v2420_v24 }
 0x44b   :  { %3556 = vmatpush1.bf16.msra.mxu0 %v3555_v33  ;;  %v3595_v33 = vpack.c.bf16 %v2421_v29, %v2419_v26 }
 0x44c   :  { %3558 = vmatprep.subr.bf16.mxu0 %v3557_v35  ;;  %v3597_v35 = vpack.c.bf16 %v2426_v32, %v2424_v31  ;;  %v2425_v31 = vld [vmem:[#allocation15 + $0x210] sm:$0xff] }
 0x44f   :  { %3560 = vmatpush1.bf16.msra.mxu0 %v3559_v13  ;;  %v2661_v13 = vld [vmem:[%s4526_s11 + $0x8] sm:$0xff] }
 0x450   :  { %3562 = vmatprep.subr.bf16.mxu0 %v3561_v40  ;;  %v2678_v40 = vld [vmem:[%s4526_s11 + $0x90] sm:$0xff]  ;;  %v3663_v15 = vpack.c.bf16 %v2661_v13, %v2660_v39 }
 0x451   :  { %v3665_v43 = vpack.c.bf16 %v2679_v41, %v2678_v40  ;;  %v2427_v40 = vld [vmem:[#allocation15 + $0x220] sm:$0xff]  ;;  %v2429_v41 = vld [vmem:[#allocation15 + $0x230] sm:$0xff] }
 0x452   :  { %3664 = vmatpush3.bf16.msra.mxu1 %v3663_v15  ;;  %v2432_v15 = vld [vmem:[#allocation15 + $0x248] sm:$0xff] }
 0x453   :  { %3564 = vmatpush1.bf16.msra.mxu0 %v3563_v22  ;;  %v2663_v22 = vld [vmem:[%s4526_s11 + $0x18] sm:$0xff]  ;;  %3666 = vmatprep.subr.bf16.mxu1 %v3665_v43 }
 0x454   :  { %3566 = vmatprep.subr.bf16.mxu0 %v3565_v18  ;;  %v2680_v18 = vld [vmem:[%s4526_s11 + $0xa0] sm:$0xff]  ;;  %v3667_v46 = vpack.c.bf16 %v2663_v22, %v2662_v44  ;;  %v2434_v43 = vld [vmem:[#allocation15 + $0x258] sm:$0xff]  ;;  %v3603_v44 = vpack.c.bf16 %v2429_v41, %v2427_v40  ;;  %v2469_v41 = vld [vmem:[#allocation15 + $0x370] sm:$0xff] }
 0x455   :  { %v3669_v47 = vpack.c.bf16 %v2681_v20, %v2680_v18  ;;  %v3605_v22 = vpack.c.bf16 %v2434_v43, %v2432_v15  ;;  %v2431_v18 = vld [vmem:[#allocation15 + $0x240] sm:$0xff]  ;;  %v2433_v20 = vld [vmem:[#allocation15 + $0x250] sm:$0xff]  ;;  %v2474_v15 = vld [vmem:[#allocation15 + $0x398] sm:$0xff] }
 0x456   :  { %3668 = vmatpush3.bf16.msra.mxu1 %v3667_v46  ;;  %v2436_v46 = vld [vmem:[#allocation15 + $0x268] sm:$0xff]  ;;  %v2467_v40 = vld [vmem:[#allocation15 + $0x360] sm:$0xff] }
 0x457   :  { %3568 = vmatpush1.bf16.msra.mxu0 %v3567_v25  ;;  %v2665_v25 = vld [vmem:[%s4526_s11 + $0x28] sm:$0xff]  ;;  %3670 = vmatprep.subr.bf16.mxu1 %v3669_v47  ;;  %v2438_v47 = vld [vmem:[#allocation15 + $0x278] sm:$0xff]  ;;  %v3643_v43 = vpack.c.bf16 %v2469_v41, %v2467_v40 }
 0x458   :  { %3570 = vmatprep.subr.bf16.mxu0 %v3569_v49  ;;  %v2682_v49 = vld [vmem:[%s4526_s11 + $0xb0] sm:$0xff]  ;;  %v3671_v53 = vpack.c.bf16 %v2665_v25, %v2664_v1  ;;  %v3607_v1 = vpack.c.bf16 %v2433_v20, %v2431_v18  ;;  %v3609_v25 = vpack.c.bf16 %v2438_v47, %v2436_v46  ;;  %v2476_v20 = vld [vmem:[#allocation15 + $0x3a8] sm:$0xff]  ;;  %v2478_v46 = vld [vmem:[#allocation15 + $0x3b8] sm:$0xff] }
 0x459   :  { %v3673_v45 = vpack.c.bf16 %v2683_v52, %v2682_v49  ;;  %v2435_v49 = vld [vmem:[#allocation15 + $0x260] sm:$0xff]  ;;  %v2437_v52 = vld [vmem:[#allocation15 + $0x270] sm:$0xff] }
 0x45a   :  { %3672 = vmatpush3.bf16.msra.mxu1 %v3671_v53  ;;  %v2440_v53 = vld [vmem:[#allocation15 + $0x288] sm:$0xff]  ;;  %v2473_v18 = vld [vmem:[#allocation15 + $0x390] sm:$0xff] }
 0x45b   :  { %3572 = vmatpush1.bf16.msra.mxu0 %v3571_v56  ;;  %v2667_v56 = vld [vmem:[%s4526_s11 + $0x38] sm:$0xff]  ;;  %3674 = vmatprep.subr.bf16.mxu1 %v3673_v45 }
 0x45c   :  { %3574 = vmatprep.subr.bf16.mxu0 %v3573_v57  ;;  %v2684_v57 = vld [vmem:[%s4526_s11 + $0xc0] sm:$0xff]  ;;  %v3675_v59 = vpack.c.bf16 %v2667_v56, %v2666_v54  ;;  %v2442_v45 = vld [vmem:[#allocation15 + $0x298] sm:$0xff]  ;;  %v3611_v54 = vpack.c.bf16 %v2437_v52, %v2435_v49  ;;  %v2477_v49 = vld [vmem:[#allocation15 + $0x3b0] sm:$0xff] }
 0x45d   :  { %v3677_v50 = vpack.c.bf16 %v2685_v14, %v2684_v57  ;;  %v3613_v56 = vpack.c.bf16 %v2442_v45, %v2440_v53  ;;  %v2439_v57 = vld [vmem:[#allocation15 + $0x280] sm:$0xff]  ;;  %v2441_v14 = vld [vmem:[#allocation15 + $0x290] sm:$0xff]  ;;  %v2480_v52 = vld [vmem:[#allocation15 + $0x3c8] sm:$0xff] }
 0x45e   :  { %3676 = vmatpush3.bf16.msra.mxu1 %v3675_v59  ;;  %v2444_v59 = vld [vmem:[#allocation15 + $0x2a8] sm:$0xff]  ;;  %v2482_v53 = vld [vmem:[#allocation15 + $0x3d8] sm:$0xff] }
 0x45f   :  { %3576 = vmatpush1.bf16.msra.mxu0 %v3575_v61  ;;  %v2669_v61 = vld [vmem:[%s4526_s11 + $0x48] sm:$0xff]  ;;  %3678 = vmatprep.subr.bf16.mxu1 %v3677_v50  ;;  %v2446_v50 = vld [vmem:[#allocation15 + $0x2b8] sm:$0xff] }
 0x460   :  { %3578 = vmatprep.subr.bf16.mxu0 %v3577_v62  ;;  %v2686_v62 = vld [vmem:[%s4526_s11 + $0xd0] sm:$0xff]  ;;  %v3679_v0 = vpack.c.bf16 %v2669_v61, %v2668_v60  ;;  %v3615_v60 = vpack.c.bf16 %v2441_v14, %v2439_v57  ;;  %v3617_v61 = vpack.c.bf16 %v2446_v50, %v2444_v59  ;;  %v2484_v14 = vld [vmem:[#allocation15 + $0x3e8] sm:$0xff]  ;;  %v2486_v59 = vld [vmem:[#allocation15 + $0x3f8] sm:$0xff] }
 0x461   :  { %v3681_v63 = vpack.c.bf16 %v2687_v16, %v2686_v62  ;;  %v2443_v62 = vld [vmem:[#allocation15 + $0x2a0] sm:$0xff]  ;;  %v2445_v16 = vld [vmem:[#allocation15 + $0x2b0] sm:$0xff] }
 0x462   :  { %3680 = vmatpush3.bf16.msra.mxu1 %v3679_v0  ;;  %v2448_v0 = vld [vmem:[#allocation15 + $0x2c8] sm:$0xff]  ;;  %v2481_v57 = vld [vmem:[#allocation15 + $0x3d0] sm:$0xff] }
 0x463   :  { %3580 = vmatpush1.bf16.msra.mxu0 %v3579_v3  ;;  %v2671_v3 = vld [vmem:[%s4526_s11 + $0x58] sm:$0xff]  ;;  %3682 = vmatprep.subr.bf16.mxu1 %v3681_v63 }
 0x464   :  { %3582 = vmatprep.subr.bf16.mxu0 %v3581_v27  ;;  %v3683_v27 = vpack.c.bf16 %v2671_v3, %v2670_v58  ;;  %v2450_v63 = vld [vmem:[#allocation15 + $0x2d8] sm:$0xff]  ;;  %v3619_v58 = vpack.c.bf16 %v2445_v16, %v2443_v62  ;;  %v2485_v62 = vld [vmem:[#allocation15 + $0x3f0] sm:$0xff] }
 0x465   :  { %v3621_v3 = vpack.c.bf16 %v2450_v63, %v2448_v0  ;;  %v2688_v63 = vld [vmem:[%s4526_s11 + $0xe0] sm:$0xff] }
 0x466   :  { %3684 = vmatpush3.bf16.msra.mxu1 %v3683_v27  ;;  %v2447_v27 = vld [vmem:[#allocation15 + $0x2c0] sm:$0xff] }
 0x467   :  { %3584 = vmatpush1.bf16.msra.mxu0 %v3583_v6  ;;  %v2311_v6 = vrot.slane %v2302_v4, %v4272_v10  ;;  %v2449_v4 = vld [vmem:[#allocation15 + $0x2d0] sm:$0xff] }
 0x468   :  { %3586 = vmatprep.subr.bf16.mxu0 %v3585_v34  ;;  %v2334_v34 = vrot.slane %v2329_v21, %v4266_v8 }
 0x46b   :  { %3588 = vmatpush1.bf16.msra.mxu0 %v3587_v7  ;;  %v2342_v7 = vrot.slane %v2329_v21, %v4302_v48  ;;  %v2452_v21 = vld [vmem:[#allocation15 + $0x2e8] sm:$0xff] }
 0x46c   :  { %3590 = vmatprep.subr.bf16.mxu0 %v3589_v30 }
 0x46f   :  { %3592 = vmatpush1.bf16.msra.mxu0 %v3591_v28 }
 0x470   :  { %3594 = vmatprep.subr.bf16.mxu0 %v3593_v19  ;;  %v2423_v19 = vld [vmem:[#allocation15 + $0x200] sm:$0xff] }
 0x471   :  { %v3599_v39 = vpack.c.bf16 %v2425_v31, %v2423_v19  ;;  %v2464_v19 = vld [vmem:[#allocation15 + $0x348] sm:$0xff]  ;;  %v2466_v31 = vld [vmem:[#allocation15 + $0x358] sm:$0xff] }
 0x473   :  { %3596 = vmatpush1.bf16.msra.mxu0 %v3595_v33 }
 0x474   :  { %3598 = vmatprep.subr.bf16.mxu0 %v3597_v35  ;;  %v2428_v35 = vld [vmem:[#allocation15 + $0x228] sm:$0xff] }
 0x475   :  { %v3601_v13 = vpack.c.bf16 %v2430_v36, %v2428_v35  ;;  %v3637_v35 = vpack.c.bf16 %v2466_v31, %v2464_v19  ;;  %v2463_v36 = vld [vmem:[#allocation15 + $0x340] sm:$0xff] }
 0x509   :  { %v2013_v51 = vpop.f32.mrb[8].mxu0 }
 0x50a   :  { %v2324_v2 = vmul.f32 %v2307_v38, %v2013_v51  ;;  %v2297_v30 = vpop.f32.mrb[32].mxu1  ;;  %v2015_v23 = vpop.f32.mrb[9].mxu0  ;;  %v2454_v38 = vld [vmem:[#allocation15 + $0x2f8] sm:$0xff]  ;;  %v2456_v51 = vld [vmem:[#allocation15 + $0x308] sm:$0xff] }
 0x50b   :  { %v2326_v24 = vmul.f32 %v2315_v11, %v2297_v30  ;;  %v2325_v28 = vmul.f32 %v2311_v6, %v2015_v23  ;;  %v2299_v9 = vpop.f32.mrb[33].mxu1  ;;  %v3623_v11 = vpack.c.bf16 %v2449_v4, %v2447_v27  ;;  %v3625_v6 = vpack.c.bf16 %v2454_v38, %v2452_v21  ;;  %v2455_v30 = vld [vmem:[#allocation15 + $0x300] sm:$0xff]  ;;  %v2457_v23 = vld [vmem:[#allocation15 + $0x310] sm:$0xff]  ;;  %v2673_v4 = vld [vmem:[%s4526_s11 + $0x68] sm:$0xff] }
 0x50c   :  { %v2351_v26 = vadd.f32 %v2334_v34, %v2324_v2  ;;  %v2327_v29 = vmul.f32 %v2319_v5, %v2299_v9  ;;  %v2451_v34 = vld [vmem:[#allocation15 + $0x2e0] sm:$0xff]  ;;  %v2453_v5 = vld [vmem:[#allocation15 + $0x2f0] sm:$0xff]  ;;  %v2691_v21 = vld [vmem:[%s4526_s11 + $0xf8] sm:$0xff] }
 0x50d   :  { %v4481_v32 = vadd.f32 %v2342_v7, %v2326_v24  ;;  %v2352_v33 = vadd.f32 %v2338_v17, %v2325_v28  ;;  %v2458_v7 = vld [vmem:[#allocation15 + $0x318] sm:$0xff]  ;;  %v3627_v17 = vpack.c.bf16 %v2453_v5, %v2451_v34  ;;  %v3631_v28 = vpack.c.bf16 %v2457_v23, %v2455_v30 }
 0x50e   :  { %v2354_v48 = vadd.f32 %v2346_v42, %v2327_v29  ;;  %v2355_v12 = vmax.f32 %v2351_v26, 0.0  ;;  %v3629_v2 = vpack.c.bf16 %v2458_v7, %v2456_v51  ;;  %v2460_v42 = vld [vmem:[#allocation15 + $0x328] sm:$0xff]  ;;  %v2462_v24 = vld [vmem:[#allocation15 + $0x338] sm:$0xff]  ;;  %v2459_v26 = vld [vmem:[#allocation15 + $0x320] sm:$0xff] }
 0x50f   :  { %v2356_v37 = vmax.f32 %v2352_v33, 0.0  ;;  %v3633_v9 = vpack.c.bf16 %v2462_v24, %v2460_v42  ;;  %v2461_v29 = vld [vmem:[#allocation15 + $0x330] sm:$0xff]  ;;  %v2357_v0 = vmax.f32 %v4481_v32, 0.0  ;;  %v2675_v34 = vld [vmem:[%s4526_s11 + $0x78] sm:$0xff] }
 0x510   :  { %v2358_v55 = vmax.f32 %v2354_v48, 0.0  ;;  %v3635_v33 = vpack.c.bf16 %v2461_v29, %v2459_v26  ;;  %v2465_v48 = vld [vmem:[#allocation15 + $0x350] sm:$0xff]  ;;  %v2629_v51 = vld [vmem:[#allocation16] ss:$2 sm:$0x3] }
 0x511   :  { %2551 = vmatprep.mubr.f32.mxu0 %v2356_v37  ;;  %v2468_v37 = vld [vmem:[#allocation15 + $0x368] sm:$0xff]  ;;  %v2690_v32 = vld [vmem:[%s4526_s11 + $0xf0] sm:$0xff]  ;;  %v2644_v7 = vld [vmem:[#allocation16 + $0x1] ss:$2 sm:$0x3] }
 0x512   :  { %2552 = vmatmul.mubr.f32.vlgmr.msra.gmra.mrb[10].mxu0 %v2355_v12  ;;  %v3639_v12 = vpack.c.bf16 %v2465_v48, %v2463_v36  ;;  %v2649_v30 = vrot.slane %v2644_v7, %v4266_v8  ;;  %v2653_v42 = vrot.slane %v2644_v7, %v4272_v10 }
 0x513   :  { %3600 = vmatpush1.bf16.msra.mxu0 %v3599_v39  ;;  %2622 = vmatprep.mubr.f32.mxu0 %v2358_v55  ;;  %v2470_v39 = vld [vmem:[#allocation15 + $0x378] sm:$0xff]  ;;  %v2472_v55 = vld [vmem:[#allocation15 + $0x388] sm:$0xff] }
 0x514   :  { %3602 = vmatprep.subr.bf16.mxu0 %v3601_v13  ;;  %v3641_v13 = vpack.c.bf16 %v2470_v39, %v2468_v37 }
 0x517   :  { %3604 = vmatpush1.bf16.msra.mxu0 %v3603_v44  ;;  %v3645_v44 = vpack.c.bf16 %v2474_v15, %v2472_v55 }
 0x518   :  { %3606 = vmatprep.subr.bf16.mxu0 %v3605_v22  ;;  %v2471_v22 = vld [vmem:[#allocation15 + $0x380] sm:$0xff] }
 0x519   :  { %v3647_v47 = vpack.c.bf16 %v2473_v18, %v2471_v22 }
 0x51b   :  { %3608 = vmatpush1.bf16.msra.mxu0 %v3607_v1  ;;  %v3649_v1 = vpack.c.bf16 %v2478_v46, %v2476_v20 }
 0x51c   :  { %3610 = vmatprep.subr.bf16.mxu0 %v3609_v25  ;;  %v2475_v25 = vld [vmem:[#allocation15 + $0x3a0] sm:$0xff] }
 0x51d   :  { %v3651_v45 = vpack.c.bf16 %v2477_v49, %v2475_v25 }
 0x51f   :  { %3612 = vmatpush1.bf16.msra.mxu0 %v3611_v54  ;;  %v3653_v54 = vpack.c.bf16 %v2482_v53, %v2480_v52 }
 0x520   :  { %3614 = vmatprep.subr.bf16.mxu0 %v3613_v56  ;;  %v2479_v56 = vld [vmem:[#allocation15 + $0x3c0] sm:$0xff] }
 0x521   :  { %v3655_v50 = vpack.c.bf16 %v2481_v57, %v2479_v56 }
 0x523   :  { %3616 = vmatpush1.bf16.msra.mxu0 %v3615_v60  ;;  %v3657_v60 = vpack.c.bf16 %v2486_v59, %v2484_v14 }
 0x524   :  { %3618 = vmatprep.subr.bf16.mxu0 %v3617_v61  ;;  %v2483_v61 = vld [vmem:[#allocation15 + $0x3e0] sm:$0xff] }
 0x525   :  { %v3659_v16 = vpack.c.bf16 %v2485_v62, %v2483_v61 }
 0x527   :  { %3620 = vmatpush1.bf16.msra.mxu0 %v3619_v58  ;;  %v2689_v58 = vld [vmem:[%s4526_s11 + $0xe8] sm:$0xff] }
 0x528   :  { %3622 = vmatprep.subr.bf16.mxu0 %v3621_v3  ;;  %v2672_v3 = vld [vmem:[%s4526_s11 + $0x60] sm:$0xff]  ;;  %v3685_v27 = vpack.c.bf16 %v2689_v58, %v2688_v63 }
 0x529   :  { %v3687_v38 = vpack.c.bf16 %v2673_v4, %v2672_v3 }
 0x52a   :  { %3686 = vmatprep.subr.bf16.mxu1 %v3685_v27 }
 0x52b   :  { %3624 = vmatpush1.bf16.msra.mxu0 %v3623_v11  ;;  %v3689_v11 = vpack.c.bf16 %v2691_v21, %v2690_v32  ;;  %3688 = vmatpush3.bf16.msra.mxu1 %v3687_v38 }
 0x52c   :  { %3626 = vmatprep.subr.bf16.mxu0 %v3625_v6  ;;  %v2674_v6 = vld [vmem:[%s4526_s11 + $0x70] sm:$0xff] }
 0x52d   :  { %v3691_v5 = vpack.c.bf16 %v2675_v34, %v2674_v6  ;;  %3690 = vmatprep.subr.bf16.mxu1 %v3689_v11 }
 0x52f   :  { %3628 = vmatpush1.bf16.msra.mxu0 %v3627_v17  ;;  %3692 = vmatpush3.bf16.msra.mxu1 %v3691_v5  ;;  %v2634_v17 = vrot.slane %v2629_v51, %v4266_v8 }
 0x530   :  { %3630 = vmatprep.subr.bf16.mxu0 %v3629_v2  ;;  %v2638_v2 = vrot.slane %v2629_v51, %v4272_v10 }
 0x533   :  { %3632 = vmatpush1.bf16.msra.mxu0 %v3631_v28 }
 0x534   :  { %3634 = vmatprep.subr.bf16.mxu0 %v3633_v9 }
 0x537   :  { %3636 = vmatpush1.bf16.msra.mxu0 %v3635_v33 }
 0x538   :  { %3638 = vmatprep.subr.bf16.mxu0 %v3637_v35  ;;  %v2794_v35 = vld [vmem:[#allocation18] ss:$0 sm:$0xff] }
 0x53b   :  { %3640 = vmatpush1.bf16.msra.mxu0 %v3639_v12 }
 0x53c   :  { %3642 = vmatprep.subr.bf16.mxu0 %v3641_v13 }
 0x53f   :  { %3644 = vmatpush1.bf16.msra.mxu0 %v3643_v43 }
 0x540   :  { %3646 = vmatprep.subr.bf16.mxu0 %v3645_v44 }
 0x543   :  { %3648 = vmatpush1.bf16.msra.mxu0 %v3647_v47 }
 0x544   :  { %3650 = vmatprep.subr.bf16.mxu0 %v3649_v1 }
 0x547   :  { %3652 = vmatpush1.bf16.msra.mxu0 %v3651_v45 }
 0x548   :  { %3654 = vmatprep.subr.bf16.mxu0 %v3653_v54 }
 0x54b   :  { %3656 = vmatpush1.bf16.msra.mxu0 %v3655_v50 }
 0x54c   :  { %3658 = vmatprep.subr.bf16.mxu0 %v3657_v60 }
 0x54f   :  { %3660 = vmatpush1.bf16.msra.mxu0 %v3659_v16 }
 0x552   :  { %2623 = vmatmul.mubr.f32.vlgmr.msra.gmra.mrb[10].mxu0 %v2357_v0 }
 0x625   :  { %v2624_v23 = vpop.f32.mrb[10].mxu0 }
 0x626   :  { %v2641_v24 = vmul.f32 %v2634_v17, %v2624_v23  ;;  %v2626_v28 = vpop.f32.mrb[11].mxu0 }
 0x627   :  { %v2642_v9 = vmul.f32 %v2638_v2, %v2626_v28 }
 0x628   :  { %v2656_v26 = vadd.f32 %v2649_v30, %v2641_v24 }
 0x629   :  { %v2657_v29 = vadd.f32 %v2653_v42, %v2642_v9 }
 0x62a   :  { %v2658_v31 = vmax.f32 %v2656_v26, 0.0 }
 0x62b   :  { %v2659_v19 = vmax.f32 %v2657_v29, 0.0 }
 0x62d   :  { %2763 = vmatprep.mubr.f32.mxu1 %v2659_v19 }
 0x62e   :  { %2764 = vmatmul.mubr.f32.vlgmr.msra.gmra.mrb[34].mxu1 %v2658_v31 }
 0x701   :  { %v2844_v33 = vpop.f32.mrb[34].mxu1 }
 0x702   :  { %v2845_v36 = vpop.f32.mrb[35].mxu1 }
 0x703   :  { %v2846_v48 = vadd.f32 %v2845_v36, %v2844_v33 }
 0x705   :  { %v2766_v37 = vadd.f32 %v2846_v48, %v2794_v35 }
 0x707   :  { %2770 = vst.msk [vmem:[%s4528_s13] sm:$0x3] %vm2769_vm4, %v2766_v37 }
 0x708   :  { %2775 = vsyncpa [#allocation3], 1 }
 0x709   :  { %2776 = vsyncpa [#allocation5], 1 }
 0x70a   :  { %2777 = vsyncpa [#allocation8], 1 }
 0x70b   :  { %2778 = vsyncpa [#allocation11], 1 }
 0x70c   :  { %2779 = vsyncpa [#allocation14], 1 }
 0x70d   :  { %2780 = vsyncpa [#allocation17], 1 }

</bundles_post_ra>
